<compile_context>
chip_gen: v7x
topology: tpu7x:2x2x1
jax: 0.10.0
libtpu: 0.0.40
codegen_flags: <defaults>
</compile_context>

<pallas_src>
import functools

import jax
import jax.numpy as jnp
from jax import lax
from jax.experimental import pallas as pl
from jax.experimental.pallas import tpu as pltpu

LANE = 128      # TPU lane width; feature dims are padded to a multiple of this
MAX_TB = 512    # max batch-tile (sublane) rows per grid step (multiple of 8)
LEAK = 0.01


def _round_up(x, m):
    return ((x + m - 1) // m) * m


def _activation(x, kind, leak, *, in_kernel, approx_recip=False):
    """'MML' | 'ReLU' (leaky, slope .01) | 'Sigmoid'; anything else = identity."""
    if kind == "MML":
        # x <= 0   -> leak * x
        # x > 0.5  -> 1 - 0.25 / x
        # else     -> x
        safe = jnp.where(x > 0.5, x, 1.0)          # guard divisor: never 1/0
        if in_kernel:
            hi = 1.0 - 0.25 * pl.reciprocal(safe, approx=approx_recip)
        else:
            hi = 1.0 - 0.25 / safe
        return jnp.where(x <= 0.0, leak * x, jnp.where(x > 0.5, hi, x))
    elif kind == "ReLU":
        # torch.nn.functional.leaky_relu default negative_slope = 0.01
        return jnp.where(x >= 0.0, x, 0.01 * x)
    elif kind == "Sigmoid":
        return jax.nn.sigmoid(x)
    return x


def _mlp_kernel(scale_ref, x_ref, w0_ref, b0_ref, wr_ref, br_ref, o_ref, *,
                num_rest, size_in, out_dim, afunc, leak, approx_recip):
    """Fused MLP forward for one (TB, ...) batch tile.

    scale_ref : SMEM (1,)            -- scaleFactor (applied once at the end;
                                        pre-folded into the hidden weights)
    x_ref     : VMEM (TB, size_in)   -- un-padded input rows
    w0_ref    : VMEM (size_in, PAD)  -- first-layer weights (in, out), padded cols
    b0_ref    : VMEM (1, PAD)        -- first-layer bias (padded)
    wr_ref    : VMEM (R, PAD, PAD)   -- layers 1..L-1 weights, pre-scaled by s
    br_ref    : VMEM (R, 1, PAD)     -- layers 1..L-1 biases
    o_ref     : VMEM (TB, out_dim)   -- only the valid output lanes
    """
    x = x_ref[...]                                     # (TB, size_in)
    w0 = w0_ref[...]                                   # (size_in, PAD)

    # First layer: size_in (=2) broadcast FMAs on the VPU instead of a
    # K-padded 128x128 matmul (input stays lane-thin in HBM).
    h = b0_ref[...]                                    # (1, PAD) -> broadcasts
    for k in range(size_in):                           # static, size_in == 2
        h = h + x[:, k:k + 1] * w0[k:k + 1, :]         # (TB, PAD)
    h = _activation(h, afunc, leak, in_kernel=True, approx_recip=approx_recip)

    # Remaining layers: MXU matmuls on the padded width; weights stay in VMEM.
    def layer(h, w, b):
        z = jnp.dot(h, w, preferred_element_type=jnp.float32) + b
        return _activation(z, afunc, leak, in_kernel=True,
                           approx_recip=approx_recip)

    if num_rest <= 8:
        for l in range(num_rest):                      # static unroll (shallow nets)
            h = layer(h, wr_ref[l], br_ref[l])
    else:
        # Deep nets: bound code size / vreg live ranges with a real loop.
        h = lax.fori_loop(0, num_rest,
                          lambda l, h: layer(h, wr_ref[l], br_ref[l]), h)

    # scaleFactor was folded into wr (W'_l = s*W_l, l>=1); apply final s here,
    # only on the valid output lanes (lane-thin store -> minimal HBM writeback).
    o_ref[...] = scale_ref[0] * h[:, :out_dim]


def linear_network_forward(x, weights, biases, scale, afunc="MML", leak=LEAK,
                           approx_recip=False):
    """Fused linearNetwork forward.

    x          : (N, size_in) float32
    weights[i] : (in_i, out_i) float32   (transpose of torch.nn.Linear layout)
    biases[i]  : (out_i,)      float32
    scale      : scalar scaleFactor
    """
    x = jnp.asarray(x, jnp.float32)
    n, size_in = x.shape
    num_layers = len(weights)
    out_dim = weights[-1].shape[1]

    # Padded feature width (lanes). Zero-padding is safe: padded weight
    # rows/cols are zero, so padded lanes never contaminate valid lanes.
    pad = _round_up(max(w.shape[1] for w in weights), LANE)

    # Batch tiling: one tile when the batch is small, else MAX_TB-row tiles.
    tb = min(MAX_TB, _round_up(n, 8))
    n_pad = _round_up(n, tb)
    xp = x if n_pad == n else jnp.zeros((n_pad, size_in), jnp.float32).at[:n].set(x)

    scale_f = jnp.float32(scale)   # TODO(synk): f64 scaleFactor runs in f32 on TPU

    # First layer kept separate (un-padded K); later weights pre-scaled by s.
    w0p = jnp.zeros((size_in, pad), jnp.float32).at[:, :weights[0].shape[1]].set(weights[0])
    b0p = jnp.zeros((1, pad), jnp.float32).at[0, :biases[0].shape[0]].set(biases[0])

    num_rest = num_layers - 1
    r = max(num_rest, 1)                       # avoid zero-sized pallas operands
    wrp = jnp.zeros((r, pad, pad), jnp.float32)
    brp = jnp.zeros((r, 1, pad), jnp.float32)
    for i in range(num_rest):
        w, b = weights[i + 1], biases[i + 1]
        # fold the previous layer's output scale into this layer's weights
        wrp = wrp.at[i, :w.shape[0], :w.shape[1]].set(scale_f * w)
        brp = brp.at[i, 0, :b.shape[0]].set(b)

    scale_arr = jnp.asarray([scale_f], jnp.float32)

    kernel = functools.partial(_mlp_kernel, num_rest=num_rest, size_in=size_in,
                               out_dim=out_dim, afunc=afunc, leak=leak,
                               approx_recip=approx_recip)

    out_padded = pl.pallas_call(
        kernel,
        out_shape=jax.ShapeDtypeStruct((n_pad, out_dim), jnp.float32),
        grid=(n_pad // tb,),
        in_specs=[
            pl.BlockSpec(memory_space=pltpu.MemorySpace.SMEM),        # scale
            pl.BlockSpec((tb, size_in), lambda i: (i, 0)),            # x tile (lane-thin)
            pl.BlockSpec((size_in, pad), lambda i: (0, 0)),           # first-layer W
            pl.BlockSpec((1, pad), lambda i: (0, 0)),                 # first-layer b
            pl.BlockSpec((r, pad, pad), lambda i: (0, 0, 0)),         # hidden/out W (VMEM-resident)
            pl.BlockSpec((r, 1, pad), lambda i: (0, 0, 0)),           # hidden/out b (VMEM-resident)
        ],
        out_specs=pl.BlockSpec((tb, out_dim), lambda i: (i, 0)),      # valid lanes only
        compiler_params=pltpu.CompilerParams(
            dimension_semantics=("parallel",),       # batch tiles shard across v7x TCs
            vmem_limit_bytes=32 * 1024 * 1024,       # safe on v5e/v6e/v7x; far above need
        ),
    )(scale_arr, xp, w0p, b0p, wrp, brp)

    return out_padded[:n]


def reference_forward(x, weights, biases, scale, afunc="MML", leak=LEAK):
    h = jnp.asarray(x, jnp.float32)
    s = jnp.float32(scale)
    for w, b in zip(weights, biases):
        h = jnp.dot(h, w, precision=lax.Precision.HIGHEST) + b
        h = _activation(h, afunc, leak, in_kernel=False)
        h = s * h
    return h


def init_params(key, hidden_layers, width, size_in=2, size_out=1):
    """Deterministic PyTorch-Linear-style init: U(-1/sqrt(fan_in), 1/sqrt(fan_in))."""
    if hidden_layers == 0:
        dims = [(size_in, size_out)]
    else:
        dims = [(size_in, width)]
        dims += [(width, width)] * (hidden_layers - 1)
        dims += [(width, size_out)]

    weights, biases = [], []
    for (fan_in, fan_out) in dims:
        key, kw, kb = jax.random.split(key, 3)
        bound = 1.0 / jnp.sqrt(jnp.float32(fan_in))
        weights.append(jax.random.uniform(kw, (fan_in, fan_out), jnp.float32,
                                          minval=-bound, maxval=bound))
        biases.append(jax.random.uniform(kb, (fan_out,), jnp.float32,
                                         minval=-bound, maxval=bound))
    return weights, biases


if __name__ == "__main__":
    key = jax.random.PRNGKey(0)

    # (afunc, hidden_layers, width, batch, scale, approx_recip, tol)
    configs = [
        ("MML",     2, 32, 1000, 1.25, False, 1e-4),   # exact reciprocal path
        ("MML",     2, 32, 1000, 1.25, True,  1e-2),   # EUP approx-reciprocal path
        ("ReLU",    1, 16,   64, 0.80, False, 1e-4),
        ("Sigmoid", 0,  8,   10, 1.00, False, 1e-4),
    ]

    for afunc, hl, width, batch, scale, approx, tol in configs:
        key, kx, kp = jax.random.split(key, 3)
        x = jax.random.normal(kx, (batch, 2), jnp.float32)
        weights, biases = init_params(kp, hl, width)

        out = linear_network_forward(x, weights, biases, scale, afunc=afunc,
                                     approx_recip=approx)
        out = jax.block_until_ready(out)

        ref = reference_forward(x, weights, biases, scale, afunc=afunc)
        assert out.shape == (batch, 1), (afunc, out.shape)
        max_err = float(jnp.max(jnp.abs(out - ref)))
        assert jnp.allclose(out, ref, atol=tol, rtol=tol), (
            f"{afunc} approx={approx}: max abs err = {max_err}")

    print("KERNEL_OK")
</pallas_src>

<mosaic_0001>
module attributes {stable_mosaic.version = 11 : i64} {
  func.func @_mlp_kernel(%arg0: i32, %arg1: memref<1xf32, #tpu.memory_space<smem>>, %arg2: memref<512x2xf32, #tpu.memory_space<vmem>>, %arg3: memref<2x128xf32, #tpu.memory_space<vmem>>, %arg4: memref<1x128xf32, #tpu.memory_space<vmem>>, %arg5: memref<2x128x128xf32, #tpu.memory_space<vmem>>, %arg6: memref<2x1x128xf32, #tpu.memory_space<vmem>>, %arg7: memref<512x1xf32, #tpu.memory_space<vmem>>) attributes {dimension_semantics = [#tpu.dimension_semantics<parallel>], iteration_bounds = array<i64: 2>, scalar_prefetch = 0 : i64, scratch_operands = 0 : i64, tpu.core_type = #tpu.core_type<tc>, window_params = [{transform_indices = @transform_0, window_bounds = array<i64: 1>}, {transform_indices = @transform_1, window_bounds = array<i64: 512, 2>}, {pipeline_mode = #tpu.pipeline_mode<synchronous>, transform_indices = @transform_2, window_bounds = array<i64: 2, 128>}, {pipeline_mode = #tpu.pipeline_mode<synchronous>, transform_indices = @transform_3, window_bounds = array<i64: 1, 128>}, {pipeline_mode = #tpu.pipeline_mode<synchronous>, transform_indices = @transform_4, window_bounds = array<i64: 2, 128, 128>}, {pipeline_mode = #tpu.pipeline_mode<synchronous>, transform_indices = @transform_5, window_bounds = array<i64: 2, 1, 128>}, {transform_indices = @transform_6, window_bounds = array<i64: 512, 1>}]} {
    %c0 = arith.constant 0 : index
    %c0_0 = arith.constant 0 : index
    %0 = vector.load %arg2[%c0, %c0_0] : memref<512x2xf32, #tpu.memory_space<vmem>>, vector<512x2xf32>
    %c0_1 = arith.constant 0 : index
    %c0_2 = arith.constant 0 : index
    %1 = vector.load %arg3[%c0_1, %c0_2] : memref<2x128xf32, #tpu.memory_space<vmem>>, vector<2x128xf32>
    %c0_3 = arith.constant 0 : index
    %c0_4 = arith.constant 0 : index
    %2 = vector.load %arg4[%c0_3, %c0_4] : memref<1x128xf32, #tpu.memory_space<vmem>>, vector<1x128xf32>
    %3 = vector.extract_strided_slice %0 {offsets = [0, 0], sizes = [512, 1], strides = [1, 1]} : vector<512x2xf32> to vector<512x1xf32>
    %4 = vector.extract_strided_slice %1 {offsets = [0, 0], sizes = [1, 128], strides = [1, 1]} : vector<2x128xf32> to vector<1x128xf32>
    %5 = vector.broadcast %3 : vector<512x1xf32> to vector<512x128xf32>
    %6 = vector.broadcast %4 : vector<1x128xf32> to vector<512x128xf32>
    %7 = arith.mulf %5, %6 : vector<512x128xf32>
    %8 = vector.broadcast %2 : vector<1x128xf32> to vector<512x128xf32>
    %9 = arith.addf %8, %7 : vector<512x128xf32>
    %10 = vector.extract_strided_slice %0 {offsets = [0, 1], sizes = [512, 1], strides = [1, 1]} : vector<512x2xf32> to vector<512x1xf32>
    %11 = vector.extract_strided_slice %1 {offsets = [1, 0], sizes = [1, 128], strides = [1, 1]} : vector<2x128xf32> to vector<1x128xf32>
    %12 = vector.broadcast %10 : vector<512x1xf32> to vector<512x128xf32>
    %13 = vector.broadcast %11 : vector<1x128xf32> to vector<512x128xf32>
    %14 = arith.mulf %12, %13 : vector<512x128xf32>
    %15 = arith.addf %9, %14 : vector<512x128xf32>
    %cst = arith.constant 5.000000e-01 : f32
    %16 = vector.broadcast %cst : f32 to vector<512x128xf32>
    %17 = arith.cmpf ogt, %15, %16 : vector<512x128xf32>
    %cst_5 = arith.constant 1.000000e+00 : f32
    %18 = vector.broadcast %cst_5 : f32 to vector<512x128xf32>
    %19 = arith.select %17, %15, %18 : vector<512x128xi1>, vector<512x128xf32>
    %20 = tpu.reciprocal %19 : vector<512x128xf32> -> vector<512x128xf32>
    %cst_6 = arith.constant 2.500000e-01 : f32
    %21 = vector.broadcast %cst_6 : f32 to vector<512x128xf32>
    %22 = arith.mulf %21, %20 : vector<512x128xf32>
    %cst_7 = arith.constant 1.000000e+00 : f32
    %23 = vector.broadcast %cst_7 : f32 to vector<512x128xf32>
    %24 = arith.subf %23, %22 : vector<512x128xf32>
    %cst_8 = arith.constant 0.000000e+00 : f32
    %25 = vector.broadcast %cst_8 : f32 to vector<512x128xf32>
    %26 = arith.cmpf ole, %15, %25 : vector<512x128xf32>
    %cst_9 = arith.constant 0.00999999977 : f32
    %27 = vector.broadcast %cst_9 : f32 to vector<512x128xf32>
    %28 = arith.mulf %27, %15 : vector<512x128xf32>
    %cst_10 = arith.constant 5.000000e-01 : f32
    %29 = vector.broadcast %cst_10 : f32 to vector<512x128xf32>
    %30 = arith.cmpf ogt, %15, %29 : vector<512x128xf32>
    %31 = arith.select %30, %24, %15 : vector<512x128xi1>, vector<512x128xf32>
    %32 = arith.select %26, %28, %31 : vector<512x128xi1>, vector<512x128xf32>
    %c0_11 = arith.constant 0 : index
    %c0_12 = arith.constant 0 : index
    %c0_13 = arith.constant 0 : index
    %33 = vector.load %arg5[%c0_11, %c0_12, %c0_13] : memref<2x128x128xf32, #tpu.memory_space<vmem>>, vector<1x128x128xf32>
    %34 = vector.shape_cast %33 : vector<1x128x128xf32> to vector<128x128xf32>
    %c0_14 = arith.constant 0 : index
    %c0_15 = arith.constant 0 : index
    %c0_16 = arith.constant 0 : index
    %35 = vector.load %arg6[%c0_14, %c0_15, %c0_16] : memref<2x1x128xf32, #tpu.memory_space<vmem>>, vector<1x1x128xf32>
    %36 = vector.shape_cast %35 : vector<1x1x128xf32> to vector<1x128xf32>
    %cst_17 = arith.constant dense<0.000000e+00> : vector<512x128xf32>
    %37 = tpu.matmul %32, %34, %cst_17 {dimension_numbers = #tpu.dot_dimension_numbers<[1], [0], [0], [1], [0, 0, 1, 1], [], []>} : vector<512x128xf32>, vector<128x128xf32>, vector<512x128xf32> -> vector<512x128xf32>
    %38 = vector.broadcast %36 : vector<1x128xf32> to vector<512x128xf32>
    %39 = arith.addf %37, %38 : vector<512x128xf32>
    %cst_18 = arith.constant 5.000000e-01 : f32
    %40 = vector.broadcast %cst_18 : f32 to vector<512x128xf32>
    %41 = arith.cmpf ogt, %39, %40 : vector<512x128xf32>
    %cst_19 = arith.constant 1.000000e+00 : f32
    %42 = vector.broadcast %cst_19 : f32 to vector<512x128xf32>
    %43 = arith.select %41, %39, %42 : vector<512x128xi1>, vector<512x128xf32>
    %44 = tpu.reciprocal %43 : vector<512x128xf32> -> vector<512x128xf32>
    %cst_20 = arith.constant 2.500000e-01 : f32
    %45 = vector.broadcast %cst_20 : f32 to vector<512x128xf32>
    %46 = arith.mulf %45, %44 : vector<512x128xf32>
    %cst_21 = arith.constant 1.000000e+00 : f32
    %47 = vector.broadcast %cst_21 : f32 to vector<512x128xf32>
    %48 = arith.subf %47, %46 : vector<512x128xf32>
    %cst_22 = arith.constant 0.000000e+00 : f32
    %49 = vector.broadcast %cst_22 : f32 to vector<512x128xf32>
    %50 = arith.cmpf ole, %39, %49 : vector<512x128xf32>
    %cst_23 = arith.constant 0.00999999977 : f32
    %51 = vector.broadcast %cst_23 : f32 to vector<512x128xf32>
    %52 = arith.mulf %51, %39 : vector<512x128xf32>
    %cst_24 = arith.constant 5.000000e-01 : f32
    %53 = vector.broadcast %cst_24 : f32 to vector<512x128xf32>
    %54 = arith.cmpf ogt, %39, %53 : vector<512x128xf32>
    %55 = arith.select %54, %48, %39 : vector<512x128xi1>, vector<512x128xf32>
    %56 = arith.select %50, %52, %55 : vector<512x128xi1>, vector<512x128xf32>
    %c1 = arith.constant 1 : index
    %c0_25 = arith.constant 0 : index
    %c0_26 = arith.constant 0 : index
    %57 = vector.load %arg5[%c1, %c0_25, %c0_26] : memref<2x128x128xf32, #tpu.memory_space<vmem>>, vector<1x128x128xf32>
    %58 = vector.shape_cast %57 : vector<1x128x128xf32> to vector<128x128xf32>
    %c1_27 = arith.constant 1 : index
    %c0_28 = arith.constant 0 : index
    %c0_29 = arith.constant 0 : index
    %59 = vector.load %arg6[%c1_27, %c0_28, %c0_29] : memref<2x1x128xf32, #tpu.memory_space<vmem>>, vector<1x1x128xf32>
    %60 = vector.shape_cast %59 : vector<1x1x128xf32> to vector<1x128xf32>
    %cst_30 = arith.constant dense<0.000000e+00> : vector<512x128xf32>
    %61 = tpu.matmul %56, %58, %cst_30 {dimension_numbers = #tpu.dot_dimension_numbers<[1], [0], [0], [1], [0, 0, 1, 1], [], []>} : vector<512x128xf32>, vector<128x128xf32>, vector<512x128xf32> -> vector<512x128xf32>
    %62 = vector.broadcast %60 : vector<1x128xf32> to vector<512x128xf32>
    %63 = arith.addf %61, %62 : vector<512x128xf32>
    %cst_31 = arith.constant 5.000000e-01 : f32
    %64 = vector.broadcast %cst_31 : f32 to vector<512x128xf32>
    %65 = arith.cmpf ogt, %63, %64 : vector<512x128xf32>
    %cst_32 = arith.constant 1.000000e+00 : f32
    %66 = vector.broadcast %cst_32 : f32 to vector<512x128xf32>
    %67 = arith.select %65, %63, %66 : vector<512x128xi1>, vector<512x128xf32>
    %68 = tpu.reciprocal %67 : vector<512x128xf32> -> vector<512x128xf32>
    %cst_33 = arith.constant 2.500000e-01 : f32
    %69 = vector.broadcast %cst_33 : f32 to vector<512x128xf32>
    %70 = arith.mulf %69, %68 : vector<512x128xf32>
    %cst_34 = arith.constant 1.000000e+00 : f32
    %71 = vector.broadcast %cst_34 : f32 to vector<512x128xf32>
    %72 = arith.subf %71, %70 : vector<512x128xf32>
    %cst_35 = arith.constant 0.000000e+00 : f32
    %73 = vector.broadcast %cst_35 : f32 to vector<512x128xf32>
    %74 = arith.cmpf ole, %63, %73 : vector<512x128xf32>
    %cst_36 = arith.constant 0.00999999977 : f32
    %75 = vector.broadcast %cst_36 : f32 to vector<512x128xf32>
    %76 = arith.mulf %75, %63 : vector<512x128xf32>
    %cst_37 = arith.constant 5.000000e-01 : f32
    %77 = vector.broadcast %cst_37 : f32 to vector<512x128xf32>
    %78 = arith.cmpf ogt, %63, %77 : vector<512x128xf32>
    %79 = arith.select %78, %72, %63 : vector<512x128xi1>, vector<512x128xf32>
    %80 = arith.select %74, %76, %79 : vector<512x128xi1>, vector<512x128xf32>
    %c0_38 = arith.constant 0 : index
    %81 = memref.load %arg1[%c0_38] : memref<1xf32, #tpu.memory_space<smem>>
    %82 = vector.extract_strided_slice %80 {offsets = [0, 0], sizes = [512, 1], strides = [1, 1]} : vector<512x128xf32> to vector<512x1xf32>
    %83 = vector.broadcast %81 : f32 to vector<512x1xf32>
    %84 = arith.mulf %83, %82 : vector<512x1xf32>
    %c0_39 = arith.constant 0 : index
    %c0_40 = arith.constant 0 : index
    %85 = vector.load %arg7[%c0_39, %c0_40] : memref<512x1xf32, #tpu.memory_space<vmem>>, vector<512x1xf32>
    tpu.vector_store %arg7[%c0_39, %c0_40], %84 {strides = array<i32>} : memref<512x1xf32, #tpu.memory_space<vmem>>, vector<512x1xf32>,
    return
  }
  func.func @transform_0(%arg0: i32) -> i32 {
    %c0_i32 = arith.constant 0 : i32
    %c0_i32_0 = arith.constant 0 : i32
    return %c0_i32 : i32
  }
  func.func @transform_1(%arg0: i32) -> (i32, i32) {
    %c0_i32 = arith.constant 0 : i32
    %c0_i32_0 = arith.constant 0 : i32
    return %arg0, %c0_i32 : i32, i32
  }
  func.func @transform_2(%arg0: i32) -> (i32, i32) {
    %c0_i32 = arith.constant 0 : i32
    %c0_i32_0 = arith.constant 0 : i32
    %c0_i32_1 = arith.constant 0 : i32
    return %c0_i32, %c0_i32_0 : i32, i32
  }
  func.func @transform_3(%arg0: i32) -> (i32, i32) {
    %c0_i32 = arith.constant 0 : i32
    %c0_i32_0 = arith.constant 0 : i32
    %c0_i32_1 = arith.constant 0 : i32
    return %c0_i32, %c0_i32_0 : i32, i32
  }
  func.func @transform_4(%arg0: i32) -> (i32, i32, i32) {
    %c0_i32 = arith.constant 0 : i32
    %c0_i32_0 = arith.constant 0 : i32
    %c0_i32_1 = arith.constant 0 : i32
    %c0_i32_2 = arith.constant 0 : i32
    return %c0_i32, %c0_i32_0, %c0_i32_1 : i32, i32, i32
  }
  func.func @transform_5(%arg0: i32) -> (i32, i32, i32) {
    %c0_i32 = arith.constant 0 : i32
    %c0_i32_0 = arith.constant 0 : i32
    %c0_i32_1 = arith.constant 0 : i32
    %c0_i32_2 = arith.constant 0 : i32
    return %c0_i32, %c0_i32_0, %c0_i32_1 : i32, i32, i32
  }
  func.func @transform_6(%arg0: i32) -> (i32, i32) {
    %c0_i32 = arith.constant 0 : i32
    %c0_i32_0 = arith.constant 0 : i32
    return %arg0, %c0_i32 : i32, i32
  }
}

</mosaic_0001>

<bundles_post_ra>
// kernel: tpu_custom_call.1
= control target key start
LH: loop header
LB: loop body
LE: loop exit
PB: predicated region body
PF: predicated region fallthrough
CT: control target
= control target key end

     0   :  { %s4929_s23 = smov 0   ;;  %s7866_s0 = inlined_call_operand.<no memory space> [shape: f32[1], index: 0, kind: input, shape index: {}]   ;;  %s7867_s1 = inlined_call_operand.vmem [shape: f32[1024,2], index: 1, kind: input, shape index: {}]   ;;  %s7868_s2 = inlined_call_operand.vmem [shape: f32[2,128], index: 2, kind: input, shape index: {}]   ;;  %s7869_s3 = inlined_call_operand.vmem [shape: f32[1,128], index: 3, kind: input, shape index: {}]   ;;  %s7870_s4 = inlined_call_operand.vmem [shape: f32[2,128,128], index: 4, kind: input, shape index: {}]   ;;  %s7871_s5 = inlined_call_operand.vmem [shape: f32[2,1,128], index: 5, kind: input, shape index: {}]   ;;  %s7872_s6 = inlined_call_operand.vmem [shape: f32[1024,1], index: 6, kind: output, shape index: {}]  }
   0x1   :  { %11 = sst [smem:[#allocation2]] %s7866_s0 }
   0x2 LB: > { %s3901_s24 = sadd.s32 4294967295, %s4887_s23   ;;  %p3905_p0 = scmp.ge.s32.totalorder %s4887_s23, 1  ;;  %s4887_s23 = sphi %s4929_s23, %s17_s23  }
   0x3   : > { %p214_p1 = scmp.lt.s32.totalorder %s4887_s23, 3 }
   0x5   : > { %p215_p2 = pnand %p3905_p0, %p214_p1 }
   0x6   : > { %s3906_s25 = sshll.u32 (!%p215_p2), %s3901_s24, 6  ;;  %v4889_v0 = vmov (!%p215_p2), 1   ;;  %v4890_v7 = vmov (!%p215_p2), 0   ;;  %v1744_v26 = vld [vmem:[%s7870_s4] sm:$0xff] (!%p215_p2)  ;;  %v1745_v27 = vld [vmem:[%s7870_s4 + $0x8] sm:$0xff] (!%p215_p2)  ;;  %v1746_v29 = vld [vmem:[%s7870_s4 + $0x10] sm:$0xff] (!%p215_p2) }
   0x7   : > { %218 = sbr.rel (%p215_p2) target bundleno = 1045 (0x415), region = 44  ;;  %4424 = vset.pattern.permute.xlu0 (!%p215_p2), %v4889_v0  ;;  %4422 = vset.pattern.permute.xlu1 (!%p215_p2), %v4889_v0  ;;  %p245_p3 = scmp.lt.s32.totalorder (!%p215_p2), %s3906_s25, 127  ;;  %v4348_v28 = vpack.c.bf16 (!%p215_p2), %v1745_v27, %v1744_v26  ;;  %v1747_v30 = vld [vmem:[%s7870_s4 + $0x18] sm:$0xff] (!%p215_p2)  ;;  %v1748_v32 = vld [vmem:[%s7870_s4 + $0x20] sm:$0xff] (!%p215_p2)  ;;  %v1749_v33 = vld [vmem:[%s7870_s4 + $0x28] sm:$0xff] (!%p215_p2) }
   0x8   : > { %v4352_v31 = vpack.c.bf16 (!%p215_p2), %v1747_v30, %v1746_v29  ;;  %v4356_v35 = vpack.c.bf16 (!%p215_p2), %v1749_v33, %v1748_v32  ;;  %v1750_v36 = vld [vmem:[%s7870_s4 + $0x30] sm:$0xff] (!%p215_p2)  ;;  %v1751_v37 = vld [vmem:[%s7870_s4 + $0x38] sm:$0xff] (!%p215_p2)  ;;  %v1752_v39 = vld [vmem:[%s7870_s4 + $0x40] sm:$0xff] (!%p215_p2)  ;;  %s6898_s19 = sld [smem:[#allocation2]] (!%p215_p2) }
   0x9   : > { %4349 = vmatprep.subr.bf16.mxu0 (!%p215_p2), %v4348_v28  ;;  %v4360_v38 = vpack.c.bf16 (!%p215_p2), %v1751_v37, %v1750_v36  ;;  %v1753_v40 = vld [vmem:[%s7870_s4 + $0x48] sm:$0xff] (!%p215_p2)  ;;  %v1754_v43 = vld [vmem:[%s7870_s4 + $0x50] sm:$0xff] (!%p215_p2)  ;;  %v1755_v44 = vld [vmem:[%s7870_s4 + $0x58] sm:$0xff] (!%p215_p2) }
   0xa   : > { %4351 = vmatpush3.bf16.msra.mxu0 (!%p215_p2), %v4348_v28  ;;  %v4364_v41 = vpack.c.bf16 (!%p215_p2), %v1753_v40, %v1752_v39  ;;  %v4368_v45 = vpack.c.bf16 (!%p215_p2), %v1755_v44, %v1754_v43  ;;  %v1756_v47 = vld [vmem:[%s7870_s4 + $0x60] sm:$0xff] (!%p215_p2)  ;;  %v1757_v48 = vld [vmem:[%s7870_s4 + $0x68] sm:$0xff] (!%p215_p2)  ;;  %v1758_v50 = vld [vmem:[%s7870_s4 + $0x70] sm:$0xff] (!%p215_p2) }
   0xb   : > { %4353 = vmatprep.subr.bf16.mxu0 (!%p215_p2), %v4352_v31  ;;  %v4372_v49 = vpack.c.bf16 (!%p215_p2), %v1757_v48, %v1756_v47  ;;  %v1759_v51 = vld [vmem:[%s7870_s4 + $0x78] sm:$0xff] (!%p215_p2)  ;;  %v320_v29 = vld [vmem:[%s7868_s2] sm:$0x3] (!%p215_p2) }
   0xc   : > { %v4376_v52 = vpack.c.bf16 (!%p215_p2), %v1759_v51, %v1758_v50  ;;  %v5190_v37 = vld [vmem:[%s7869_s3] ss:$0 sm:$0xff] (!%p215_p2) }
   0xe   : > { %s7874_s25 = smov (!%p245_p3, %s3906_s25), 127  ;;  %4355 = vmatpush3.bf16.msra.mxu0 %v4352_v31 }
   0xf   : > { %s3907_s0 = sshll.u32 %s7874_s25, 3  ;;  %4357 = vmatprep.subr.bf16.mxu0 %v4356_v35 }
  0x10   : > { %s4947_s28 = scalar_lea.vmem %s7867_s1, %s3907_s0  ;;  %s6970_s22 = scalar_lea.vmem %s7872_s6, %s3907_s0 }
  0x11   : > { %v4950_v1 = vld [vmem:[%s4947_s28 + $0x10] sm:$0xff]  ;;  %v4953_v2 = vld [vmem:[%s4947_s28] sm:$0xff]  ;;  %v4961_v4 = vld [vmem:[%s4947_s28 + $0x8] sm:$0xff] }
  0x12   : > { %789 = vperm.xlu0 %4424, %v4950_v1   ;;  %781 = vperm.xlu1 %4422, %v4953_v2   ;;  %v4958_v3 = vld [vmem:[%s4947_s28 + $0x30] sm:$0xff]  ;;  %v259_v6 = vld [vmem:[%s4947_s28 + $0x18] sm:$0xff]  ;;  %v260_v10 = vld [vmem:[%s4947_s28 + $0x20] sm:$0xff] }
  0x13   : > { %v4966_v5 = vld [vmem:[%s4947_s28 + $0x50] sm:$0xff]  ;;  %v4995_v14 = vld [vmem:[%s4947_s28 + $0x28] sm:$0xff]  ;;  %v263_v16 = vld [vmem:[%s4947_s28 + $0x38] sm:$0xff]  ;;  %4359 = vmatpush3.bf16.msra.mxu0 %v4356_v35 }
  0x14   : > { %v4972_v8 = vld [vmem:[%s4947_s28 + $0x70] sm:$0xff]  ;;  %v264_v19 = vld [vmem:[%s4947_s28 + $0x40] sm:$0xff]  ;;  %v265_v23 = vld [vmem:[%s4947_s28 + $0x48] sm:$0xff]  ;;  %4361 = vmatprep.subr.bf16.mxu0 %v4360_v38 }
  0x15   : > { %v4977_v9 = vld [vmem:[%s4947_s28 + $0x90] sm:$0xff]  ;;  %v267_v25 = vld [vmem:[%s4947_s28 + $0x58] sm:$0xff]  ;;  %v268_v34 = vld [vmem:[%s4947_s28 + $0x60] sm:$0xff] }
  0x16   : > { %805 = vperm.xlu0 %4424, %v4958_v3   ;;  %785 = vperm.xlu1 %4422, %v4961_v4   ;;  %v4982_v11 = vld [vmem:[%s4947_s28 + $0xb0] sm:$0xff]  ;;  %v269_v42 = vld [vmem:[%s4947_s28 + $0x68] sm:$0xff]  ;;  %v271_v46 = vld [vmem:[%s4947_s28 + $0x78] sm:$0xff] }
  0x17   : > { %v4987_v12 = vld [vmem:[%s4947_s28 + $0xd0] sm:$0xff]  ;;  %4363 = vmatpush3.bf16.msra.mxu0 %v4360_v38  ;;  %v272_v53 = vld [vmem:[%s4947_s28 + $0x80] sm:$0xff]  ;;  %v273_v54 = vld [vmem:[%s4947_s28 + $0x88] sm:$0xff] }
  0x18   : > { %v4992_v13 = vld [vmem:[%s4947_s28 + $0xf0] sm:$0xff]  ;;  %4365 = vmatprep.subr.bf16.mxu0 %v4364_v41  ;;  %v277_v55 = vld [vmem:[%s4947_s28 + $0xa8] sm:$0xff]  ;;  %v275_v56 = vld [vmem:[%s4947_s28 + $0x98] sm:$0xff] }
  0x19   : > { %v5000_v15 = vld [vmem:[%s4947_s28 + $0x110] sm:$0xff]  ;;  %v281_v57 = vld [vmem:[%s4947_s28 + $0xc8] sm:$0xff]  ;;  %v276_v58 = vld [vmem:[%s4947_s28 + $0xa0] sm:$0xff] }
  0x1a   : > { %821 = vperm.xlu0 %4424, %v4966_v5   ;;  %4423 = vset.pattern.permute.xlu1 %v4890_v7  ;;  %v5006_v17 = vld [vmem:[%s4947_s28 + $0x130] sm:$0xff]  ;;  %v5115_v59 = vld [vmem:[%s4947_s28 + $0xe8] sm:$0xff]  ;;  %v279_v61 = vld [vmem:[%s4947_s28 + $0xb8] sm:$0xff] }
  0x1b   : > { %339 = vperm.xlu1 %4423, %v259_v6   ;;  %v5011_v18 = vld [vmem:[%s4947_s28 + $0x150] sm:$0xff]  ;;  %4367 = vmatpush3.bf16.msra.mxu0 %v4364_v41  ;;  %v5121_v60 = vld [vmem:[%s4947_s28 + $0x108] sm:$0xff]  ;;  %v284_v31 = vld [vmem:[%s4947_s28 + $0xe0] sm:$0xff] }
  0x1c   : > { %v5016_v20 = vld [vmem:[%s4947_s28 + $0x170] sm:$0xff]  ;;  %4369 = vmatprep.subr.bf16.mxu0 %v4368_v45  ;;  %v305_v27 = vld [vmem:[%s4947_s28 + $0x188] sm:$0xff]  ;;  %v287_v51 = vld [vmem:[%s4947_s28 + $0xf8] sm:$0xff] }
  0x1d   : > { %v5021_v21 = vld [vmem:[%s4947_s28 + $0x190] sm:$0xff]  ;;  %v309_v39 = vld [vmem:[%s4947_s28 + $0x1a8] sm:$0xff] }
  0x1e   : > { %837 = vperm.xlu0 %4424, %v4972_v8   ;;  %v5026_v22 = vld [vmem:[%s4947_s28 + $0x1b0] sm:$0xff]  ;;  %v313_v50 = vld [vmem:[%s4947_s28 + $0x1c8] sm:$0xff] }
  0x1f   : > { %4425 = vset.pattern.permute.xlu1 %v4889_v0  ;;  %v5031_v24 = vld [vmem:[%s4947_s28 + $0x1d0] sm:$0xff]  ;;  %4371 = vmatpush3.bf16.msra.mxu0 %v4368_v45 }
  0x20   : > { %793 = vperm.xlu1 %4425, %v259_v6   ;;  %4373 = vmatprep.subr.bf16.mxu0 %v4372_v49  ;;  %v280_v6 = vld [vmem:[%s4947_s28 + $0xc0] sm:$0xff] }
  0x22   : > { %853 = vperm.xlu0 %4424, %v4977_v9  }
  0x23   : > { %4375 = vmatpush3.bf16.msra.mxu0 %v4372_v49 }
  0x24   : > { %4426 = vset.pattern.permute.xlu1 %v4890_v7  ;;  %4377 = vmatprep.subr.bf16.mxu0 %v4376_v52 }
  0x25   : > { %344 = vperm.xlu1 %4426, %v260_v10  }
  0x26   : > { %869 = vperm.xlu0 %4424, %v4982_v11  }
  0x27   : > { %4379 = vmatpush3.bf16.msra.mxu0 %v4376_v52 }
  0x29   : > { %4427 = vset.pattern.permute.xlu1 %v4889_v0 }
  0x2a   : > { %885 = vperm.xlu0 %4424, %v4987_v12   ;;  %797 = vperm.xlu1 %4427, %v260_v10   ;;  %v5148_v10 = vld [vmem:[%s4947_s28 + $0x148] sm:$0xff] }
  0x2e   : > { %901 = vperm.xlu0 %4424, %v4992_v13   ;;  %801 = vperm.xlu1 %4427, %v4995_v14  }
  0x32   : > { %917 = vperm.xlu0 %4424, %v5000_v15   ;;  %4428 = vset.pattern.permute.xlu1 %v4890_v7 }
  0x33   : > { %359 = vperm.xlu1 %4428, %v263_v16  }
  0x36   : > { %933 = vperm.xlu0 %4424, %v5006_v17  }
  0x37   : > { %4429 = vset.pattern.permute.xlu1 %v4889_v0 }
  0x38   : > { %809 = vperm.xlu1 %4429, %v263_v16   ;;  %v642_v16 = vlaneseq }
  0x3a   : > { %949 = vperm.xlu0 %4424, %v5011_v18  }
  0x3c   : > { %4430 = vset.pattern.permute.xlu1 %v4890_v7 }
  0x3d   : > { %364 = vperm.xlu1 %4430, %v264_v19  }
  0x3e   : > { %965 = vperm.xlu0 %4424, %v5016_v20  }
  0x41   : > { %4431 = vset.pattern.permute.xlu1 %v4889_v0 }
  0x42   : > { %981 = vperm.xlu0 %4424, %v5021_v21   ;;  %813 = vperm.xlu1 %4431, %v264_v19  }
  0x46   : > { %997 = vperm.xlu0 %4424, %v5026_v22   ;;  %817 = vperm.xlu1 %4431, %v265_v23  }
  0x4a   : > { %1013 = vperm.xlu0 %4424, %v5031_v24   ;;  %4432 = vset.pattern.permute.xlu1 %v4890_v7 }
  0x4b   : > { %379 = vperm.xlu1 %4432, %v267_v25  }
  0x4e   : > { %4481 = vset.pattern.permute.xlu0 %v4890_v7 }
  0x4f   : > { %324 = vperm.xlu0 %4481, %v4953_v2   ;;  %4433 = vset.pattern.permute.xlu1 %v4889_v0 }
  0x50   : > { %825 = vperm.xlu1 %4433, %v267_v25  }
  0x53   : > { %329 = vperm.xlu0 %4481, %v4961_v4  }
  0x54   : > { %4434 = vset.pattern.permute.xlu1 %v4890_v7 }
  0x55   : > { %384 = vperm.xlu1 %4434, %v268_v34  }
  0x57   : > { %334 = vperm.xlu0 %4481, %v4950_v1  }
  0x59   : > { %4435 = vset.pattern.permute.xlu1 %v4889_v0 }
  0x5a   : > { %829 = vperm.xlu1 %4435, %v268_v34  }
  0x5b   : > { %349 = vperm.xlu0 %4481, %v4995_v14   ;;  %v5158_v14 = vld [vmem:[%s4947_s28 + $0x168] sm:$0xff] }
  0x5e   : > { %833 = vperm.xlu1 %4435, %v269_v42  }
  0x5f   : > { %354 = vperm.xlu0 %4481, %v4958_v3   ;;  %v5137_v3 = vld [vmem:[%s4947_s28 + $0x128] sm:$0xff] }
  0x62   : > { %4436 = vset.pattern.permute.xlu1 %v4890_v7 }
  0x63   : > { %369 = vperm.xlu0 %4481, %v265_v23   ;;  %399 = vperm.xlu1 %4436, %v271_v46   ;;  %v643_v23 = vshrl.u32 %v642_v16, 7  ;;  %v288_v16 = vld [vmem:[%s4947_s28 + $0x100] sm:$0xff] }
  0x65   : > { %v1038_v32 = vsub.s32 1, %v643_v23 }
  0x67   : > { %374 = vperm.xlu0 %4481, %v4966_v5   ;;  %4437 = vset.pattern.permute.xlu1 %v4889_v0  ;;  %v5183_v34 = vrot.slane %v320_v29, %v1038_v32 }
  0x68   : > { %841 = vperm.xlu1 %4437, %v271_v46  }
  0x6b   : > { %389 = vperm.xlu0 %4481, %v269_v42  }
  0x6c   : > { %4438 = vset.pattern.permute.xlu1 %v4890_v7 }
  0x6d   : > { %404 = vperm.xlu1 %4438, %v272_v53  }
  0x6f   : > { %394 = vperm.xlu0 %4481, %v4972_v8  }
  0x71   : > { %4439 = vset.pattern.permute.xlu1 %v4889_v0 }
  0x72   : > { %845 = vperm.xlu1 %4439, %v272_v53  }
  0x73   : > { %409 = vperm.xlu0 %4481, %v273_v54  }
  0x76   : > { %849 = vperm.xlu1 %4439, %v273_v54  }
  0x77   : > { %414 = vperm.xlu0 %4481, %v4977_v9  }
  0x7a   : > { %4440 = vset.pattern.permute.xlu1 %v4890_v7 }
  0x7b   : > { %429 = vperm.xlu0 %4481, %v277_v55   ;;  %419 = vperm.xlu1 %4440, %v275_v56  }
  0x7f   : > { %434 = vperm.xlu0 %4481, %v4982_v11   ;;  %4441 = vset.pattern.permute.xlu1 %v4889_v0 }
  0x80   : > { %857 = vperm.xlu1 %4441, %v275_v56  }
  0x83   : > { %449 = vperm.xlu0 %4481, %v281_v57  }
  0x84   : > { %4442 = vset.pattern.permute.xlu1 %v4890_v7 }
  0x85   : > { %424 = vperm.xlu1 %4442, %v276_v58  }
  0x87   : > { %454 = vperm.xlu0 %4481, %v4987_v12  }
  0x89   : > { %4443 = vset.pattern.permute.xlu1 %v4889_v0 }
  0x8a   : > { %861 = vperm.xlu1 %4443, %v276_v58  }
  0x8b   : > { %469 = vperm.xlu0 %4481, %v5115_v59  }
  0x8e   : > { %865 = vperm.xlu1 %4443, %v277_v55  }
  0x8f   : > { %474 = vperm.xlu0 %4481, %v4992_v13  }
  0x91   : > { %v5124_v62 = vpop.permute.xlu1 %781  ;;  %v5126_v63 = vpop.permute.xlu0 %789 }
  0x92   : > { %4444 = vset.pattern.permute.xlu1 %v4890_v7 }
  0x93   : > { %489 = vperm.xlu0 %4481, %v5121_v60   ;;  %439 = vperm.xlu1 %4444, %v279_v61  }
  0x95   : > { %v5130_v1 = vpop.permute.xlu1 %785  ;;  %v5132_v2 = vpop.permute.xlu0 %805 }
  0x97   : > { %494 = vperm.xlu0 %4481, %v5000_v15   ;;  %4445 = vset.pattern.permute.xlu1 %v4889_v0  ;;  %v283_v15 = vld [vmem:[%s4947_s28 + $0xd8] sm:$0xff] }
  0x98   : > { %873 = vperm.xlu1 %4445, %v279_v61  }
  0x99   : > { %v5139_v4 = vpop.permute.xlu0 %821 }
  0x9a   : > { %v340_v5 = vpop.permute.xlu1 %339 }
  0x9b   : > { %509 = vperm.xlu0 %4481, %v5137_v3  }
  0x9c   : > { %4446 = vset.pattern.permute.xlu1 %v4890_v7 }
  0x9d   : > { %444 = vperm.xlu1 %4446, %v280_v6   ;;  %v5144_v8 = vpop.permute.xlu0 %837 }
  0x9f   : > { %514 = vperm.xlu0 %4481, %v5006_v17   ;;  %v794_v9 = vpop.permute.xlu1 %793 }
  0xa0   : > { %v1043_v40 = vmul.f32 %v5183_v34, %v794_v9 }
  0xa1   : > { %4447 = vset.pattern.permute.xlu1 %v4889_v0  ;;  %v5151_v11 = vpop.permute.xlu0 %853 }
  0xa2   : > { %877 = vperm.xlu1 %4447, %v280_v6   ;;  %v317_v6 = vld [vmem:[%s4947_s28 + $0x1e8] sm:$0xff] }
  0xa3   : > { %529 = vperm.xlu0 %4481, %v5148_v10  }
  0xa4   : > { %v345_v12 = vpop.permute.xlu1 %344 }
  0xa5   : > { %v5154_v13 = vpop.permute.xlu0 %869 }
  0xa6   : > { %881 = vperm.xlu1 %4447, %v281_v57  }
  0xa7   : > { %534 = vperm.xlu0 %4481, %v5011_v18   ;;  %v644_v18 = vsub.s32 0, %v643_v23 }
  0xa9   : > { %v798_v17 = vpop.permute.xlu1 %797  ;;  %v5161_v19 = vpop.permute.xlu0 %885  ;;  %v5178_v33 = vrot.slane %v320_v29, %v644_v18 }
  0xaa   : > { %4448 = vset.pattern.permute.xlu1 %v4890_v7  ;;  %v1044_v42 = vmul.f32 %v5183_v34, %v798_v17  ;;  %v318_v17 = vld [vmem:[%s4947_s28 + $0x1f0] sm:$0xff] }
  0xab   : > { %549 = vperm.xlu0 %4481, %v5158_v14   ;;  %459 = vperm.xlu1 %4448, %v283_v15   ;;  %v649_v35 = vmul.f32 %v5178_v33, %v340_v5  ;;  %v650_v38 = vmul.f32 %v5178_v33, %v345_v12 }
  0xad   : > { %v5165_v25 = vpop.permute.xlu1 %801  ;;  %v5167_v26 = vpop.permute.xlu0 %901  ;;  %v720_v43 = vadd.f32 %v5190_v37, %v650_v38 }
  0xaf   : > { %554 = vperm.xlu0 %4481, %v5016_v20   ;;  %4449 = vset.pattern.permute.xlu1 %v4889_v0  ;;  %v5205_v47 = vadd.f32 %v1044_v42, %v720_v43 }
  0xb0   : > { %889 = vperm.xlu1 %4449, %v283_v15  }
  0xb1   : > { %v5172_v28 = vpop.permute.xlu0 %917  ;;  %vm1172_vm1 = vcmp.gt.f32.partialorder %v5205_v47, 0.5  ;;  %vm1492_vm7 = vcmp.le.f32.partialorder %v5205_v47, 0.0 }
  0xb2   : > { %v360_v30 = vpop.permute.xlu1 %359 }
  0xb3   : > { %569 = vperm.xlu0 %4481, %v305_v27   ;;  %v653_v48 = vmul.f32 %v5178_v33, %v360_v30  ;;  %v1040_v30 = vmul.f32 %v5183_v34, %v5124_v62  ;;  %v1041_v62 = vmul.f32 %v5183_v34, %v5130_v1 }
  0xb4   : > { %4450 = vset.pattern.permute.xlu1 %v4890_v7 }
  0xb5   : > { %464 = vperm.xlu1 %4450, %v284_v31   ;;  %v5181_v20 = vpop.permute.xlu0 %933  ;;  %v723_v54 = vadd.f32 %v5190_v37, %v653_v48  ;;  %v1042_v48 = vmul.f32 %v5183_v34, %v5126_v63 }
  0xb7   : > { %574 = vperm.xlu0 %4481, %v5021_v21   ;;  %v810_v36 = vpop.permute.xlu1 %809  ;;  %v719_v21 = vadd.f32 %v5190_v37, %v649_v35 }
  0xb8   : > { %v1047_v49 = vmul.f32 %v5183_v34, %v810_v36 }
  0xb9   : > { %4451 = vset.pattern.permute.xlu1 %v4889_v0  ;;  %v5196_v41 = vpop.permute.xlu0 %949  ;;  %v5201_v45 = vadd.f32 %v1043_v40, %v719_v21 }
  0xba   : > { %893 = vperm.xlu1 %4451, %v284_v31   ;;  %v5219_v55 = vadd.f32 %v1047_v49, %v723_v54  ;;  %v5270_v49 = vmul.f32 %v5183_v34, %v5132_v2 }
  0xbb   : > { %589 = vperm.xlu0 %4481, %v309_v39   ;;  %vm1171_vm0 = vcmp.gt.f32.partialorder %v5201_v45, 0.5  ;;  %vm1491_vm6 = vcmp.le.f32.partialorder %v5201_v45, 0.0 }
  0xbc   : > { %v365_v44 = vpop.permute.xlu1 %364  ;;  %v1235_v56 = vsel %vm1171_vm0, %v5201_v45, 1.0  ;;  %vm1175_vm2 = vcmp.gt.f32.partialorder %v5219_v55, 0.5  ;;  %vm1495_vm12 = vcmp.le.f32.partialorder %v5219_v55, 0.0 }
  0xbd   : > { %v5203_v46 = vpop.permute.xlu0 %965  ;;  %4488 = vrcp.f32 %v1235_v56 }
  0xbe   : > { %897 = vperm.xlu1 %4451, %v5115_v59   ;;  %v1236_v59 = vsel %vm1172_vm1, %v5205_v47, 1.0 }
  0xbf   : > { %594 = vperm.xlu0 %4481, %v5026_v22   ;;  %v654_v22 = vmul.f32 %v5178_v33, %v365_v44  ;;  %4490 = vrcp.f32 %v1236_v59 }
  0xc1   : > { %v814_v52 = vpop.permute.xlu1 %813  ;;  %v5213_v53 = vpop.permute.xlu0 %981  ;;  %v724_v5 = vadd.f32 %v5190_v37, %v654_v22  ;;  %v5286_v22 = vmul.f32 %v5183_v34, %v5144_v8 }
  0xc2   : > { %4452 = vset.pattern.permute.xlu1 %v4890_v7  ;;  %v1048_v61 = vmul.f32 %v5183_v34, %v814_v52  ;;  %v5279_v52 = vmul.f32 %v5183_v34, %v5139_v4  ;;  %v291_v4 = vld [vmem:[%s4947_s28 + $0x118] sm:$0xff] }
  0xc3   : > { %609 = vperm.xlu0 %4481, %v313_v50   ;;  %479 = vperm.xlu1 %4452, %v287_v51  }
  0xc4   : > { %v5240_v12 = vadd.f32 %v1048_v61, %v724_v5 }
  0xc5   : > { %v5225_v57 = vpop.permute.xlu1 %817  ;;  %v5227_v58 = vpop.permute.xlu0 %997 }
  0xc6   : > { %vm1176_vm3 = vcmp.gt.f32.partialorder %v5240_v12, 0.5 }
  0xc7   : > { %614 = vperm.xlu0 %4481, %v5031_v24   ;;  %4453 = vset.pattern.permute.xlu1 %v4889_v0  ;;  %v1239_v24 = vsel %vm1175_vm2, %v5219_v55, 1.0  ;;  %v4489_v29 = vpop.eup %4488  ;;  %v1240_v32 = vsel %vm1176_vm3, %v5240_v12, 1.0 }
  0xc8   : > { %905 = vperm.xlu1 %4453, %v287_v51   ;;  %4492 = vrcp.f32 %v1239_v24  ;;  %v1363_v43 = vmul.f32 0.25, %v4489_v29 }
  0xc9   : > { %v5238_v9 = vpop.permute.xlu0 %1013  ;;  %v4491_v35 = vpop.eup %4490  ;;  %4494 = vrcp.f32 %v1240_v32 }
  0xca   : > { %v380_v15 = vpop.permute.xlu1 %379  ;;  %v1364_v44 = vmul.f32 0.25, %v4491_v35 }
  0xcb   : > { %629 = vperm.xlu0 %4481, %v317_v6   ;;  %v657_v40 = vmul.f32 %v5178_v33, %v380_v15  ;;  %v1427_v6 = vsub.f32 1.0, %v1363_v43 }
  0xcc   : > { %4454 = vset.pattern.permute.xlu1 %v4890_v7  ;;  %v1428_v15 = vsub.f32 1.0, %v1364_v44 }
  0xcd   : > { %484 = vperm.xlu1 %4454, %v288_v16   ;;  %v727_v56 = vadd.f32 %v5190_v37, %v657_v40  ;;  %v1619_v35 = vsel %vm1171_vm0, %v1427_v6, %v5201_v45 }
  0xce   : > { %v325_v23 = vpop.permute.xlu0 %324 }
  0xcf   : > { %v646_v18 = vmul.f32 %v5178_v33, %v325_v23  ;;  %v826_v27 = vpop.permute.xlu1 %825  ;;  %634 = vperm.xlu0 %4481, %v318_v17  }
  0xd0   : > { %v1051_v1 = vmul.f32 %v5183_v34, %v826_v27  ;;  %v1045_v27 = vmul.f32 %v5183_v34, %v5165_v25  ;;  %v1620_v25 = vsel %vm1172_vm1, %v1428_v15, %v5205_v47 }
  0xd1   : > { %v716_v31 = vadd.f32 %v5190_v37, %v646_v18  ;;  %4455 = vset.pattern.permute.xlu1 %v4889_v0 }
  0xd2   : > { %v330_v36 = vpop.permute.xlu0 %329  ;;  %909 = vperm.xlu1 %4455, %v288_v16   ;;  %v4493_v2 = vpop.eup %4492  ;;  %v5297_v16 = vadd.f32 %v1051_v1, %v727_v56 }
  0xd3   : > { %v5257_v38 = vadd.f32 %v1040_v30, %v716_v31  ;;  %v647_v39 = vmul.f32 %v5178_v33, %v330_v36  ;;  %4486 = vset.pattern.permute.xlu0 %v4889_v0  ;;  %v1367_v18 = vmul.f32 0.25, %v4493_v2  ;;  %v1555_v30 = vmul.f32 0.01, %v5201_v45  ;;  %v4495_v36 = vpop.eup %4494 }
  0xd4   : > { %v385_v42 = vpop.permute.xlu1 %384  ;;  %1029 = vperm.xlu0 %4486, %v318_v17   ;;  %vm1179_vm9 = vcmp.gt.f32.partialorder %v5297_v16, 0.5  ;;  %v5351_v56 = vmul.f32 0.25, %v4495_v36  ;;  %v1049_v45 = vmul.f32 %v5183_v34, %v5225_v57 }
  0xd5   : > { %v717_v21 = vadd.f32 %v5190_v37, %v647_v39  ;;  %vm1168_vm4 = vcmp.gt.f32.partialorder %v5257_v38, 0.5  ;;  %v658_v59 = vmul.f32 %v5178_v33, %v385_v42  ;;  %v1556_v42 = vmul.f32 0.01, %v5205_v47 }
  0xd6   : > { %v335_v50 = vpop.permute.xlu0 %334  ;;  %913 = vperm.xlu1 %4455, %v5121_v60   ;;  %v1232_v51 = vsel %vm1168_vm4, %v5257_v38, 1.0  ;;  %v5290_v60 = vmul.f32 %v5183_v34, %v5151_v11  ;;  %v1431_v44 = vsub.f32 1.0, %v1367_v18  ;;  %v5340_v1 = vsel %vm1491_vm6, %v1555_v30, %v1619_v35 }
  0xd7   : > { %v5281_v54 = vadd.f32 %v1041_v62, %v717_v21  ;;  %v648_v63 = vmul.f32 %v5178_v33, %v335_v50  ;;  %4496 = vrcp.f32 %v1232_v51  ;;  %v728_v29 = vadd.f32 %v5190_v37, %v658_v59 }
  0xd8   : > { %v5344_v50 = vsel %vm1492_vm7, %v1556_v42, %v1620_v25  ;;  %v5347_v51 = vmul.f32 0.01, %v5219_v55  ;;  %v1623_v57 = vsel %vm1175_vm2, %v1431_v44, %v5219_v55  ;;  %vm1488_vm13 = vcmp.le.f32.partialorder %v5257_v38, 0.0 }
  0xd9   : > { %v718_v61 = vadd.f32 %v5190_v37, %v648_v63  ;;  %v830_v5 = vpop.permute.xlu1 %829  ;;  %vm1169_vm5 = vcmp.gt.f32.partialorder %v5281_v54, 0.5  ;;  %vm1489_vm15 = vcmp.le.f32.partialorder %v5281_v54, 0.0 }
  0xda   : > { %v1052_v8 = vmul.f32 %v5183_v34, %v830_v5  ;;  %v350_v24 = vpop.permute.xlu0 %349  ;;  %4456 = vset.pattern.permute.xlu1 %v4890_v7  ;;  %v1233_v11 = vsel %vm1169_vm5, %v5281_v54, 1.0 }
  0xdb   : > { %v5305_v17 = vadd.f32 %v1042_v48, %v718_v61  ;;  %v651_v23 = vmul.f32 %v5178_v33, %v350_v24  ;;  %499 = vperm.xlu1 %4456, %v291_v4   ;;  %4498 = vrcp.f32 %v1233_v11  ;;  %v5336_v48 = vmul.f32 %v5183_v34, %v5154_v13 }
  0xdc   : > { %v5323_v39 = vadd.f32 %v1052_v8, %v728_v29  ;;  %v1243_v13 = vsel %vm1179_vm9, %v5297_v16, 1.0  ;;  %v1552_v24 = vmul.f32 0.01, %v5257_v38 }
  0xdd   : > { %v721_v31 = vadd.f32 %v5190_v37, %v651_v23  ;;  %v5314_v32 = vpop.permute.xlu1 %833  ;;  %vm1170_vm8 = vcmp.gt.f32.partialorder %v5305_v17, 0.5  ;;  %v1432_v23 = vsub.f32 1.0, %v5351_v56  ;;  %v1554_v44 = vmul.f32 0.01, %v5305_v17 }
  0xde   : > { %v355_v62 = vpop.permute.xlu0 %354  ;;  %v1234_v40 = vsel %vm1170_vm8, %v5305_v17, 1.0  ;;  %vm1180_vm11 = vcmp.gt.f32.partialorder %v5323_v39, 0.5  ;;  %vm1490_vm1 = vcmp.le.f32.partialorder %v5305_v17, 0.0 }
  0xdf   : > { %v5330_v21 = vadd.f32 %v1045_v27, %v721_v31  ;;  %v652_v43 = vmul.f32 %v5178_v33, %v355_v62  ;;  %4457 = vset.pattern.permute.xlu1 %v4889_v0  ;;  %4500 = vrcp.f32 %v1234_v40  ;;  %v1244_v18 = vsel %vm1180_vm11, %v5323_v39, 1.0 }
  0xe0   : > { %921 = vperm.xlu1 %4457, %v291_v4   ;;  %v292_v4 = vld [vmem:[%s4947_s28 + $0x120] sm:$0xff] }
  0xe1   : > { %v4497_v63 = vpop.eup %4496  ;;  %v722_v2 = vadd.f32 %v5190_v37, %v652_v43  ;;  %vm1173_vm10 = vcmp.gt.f32.partialorder %v5330_v21, 0.5  ;;  %v1553_v43 = vmul.f32 0.01, %v5281_v54 }
  0xe2   : > { %v370_v47 = vpop.permute.xlu0 %369  ;;  %v400_v59 = vpop.permute.xlu1 %399  ;;  %v1360_v61 = vmul.f32 0.25, %v4497_v63  ;;  %v1237_v5 = vsel %vm1173_vm10, %v5330_v21, 1.0 }
  0xe3   : > { %v5364_v6 = vadd.f32 %v5270_v49, %v722_v2  ;;  %v655_v15 = vmul.f32 %v5178_v33, %v370_v47  ;;  %4502 = vrcp.f32 %v1237_v5  ;;  %v661_v27 = vmul.f32 %v5178_v33, %v400_v59 }
  0xe4   : > { %4458 = vset.pattern.permute.xlu1 %v4890_v7  ;;  %v1424_v8 = vsub.f32 1.0, %v1360_v61  ;;  %4504 = vrcp.f32 %v1243_v13 }
  0xe5   : > { %v4499_v11 = vpop.eup %4498  ;;  %v725_v49 = vadd.f32 %v5190_v37, %v655_v15  ;;  %504 = vperm.xlu1 %4458, %v292_v4   ;;  %vm1174_vm14 = vcmp.gt.f32.partialorder %v5364_v6, 0.5  ;;  %vm1494_vm7 = vcmp.le.f32.partialorder %v5364_v6, 0.0 }
  0xe6   : > { %v375_v29 = vpop.permute.xlu0 %374  ;;  %v1616_v30 = vsel %vm1168_vm4, %v1424_v8, %v5257_v38  ;;  %v1361_v31 = vmul.f32 0.25, %v4499_v11  ;;  %v1238_v35 = vsel %vm1174_vm14, %v5364_v6, 1.0  ;;  %v731_v38 = vadd.f32 %v5190_v37, %v661_v27 }
  0xe7   : > { %v5387_v25 = vadd.f32 %v1049_v45, %v725_v49  ;;  %v656_v36 = vmul.f32 %v5178_v33, %v375_v29  ;;  %v842_v62 = vpop.permute.xlu1 %841  ;;  %v1680_v40 = vsel %vm1488_vm13, %v1552_v24, %v1616_v30  ;;  %4506 = vrcp.f32 %v1238_v35 }
  0xe8   : > { %4124 = vmatprep.mubr.f32.mxu0 %v1680_v40  ;;  %v1425_v42 = vsub.f32 1.0, %v1361_v31  ;;  %v1055_v56 = vmul.f32 %v5183_v34, %v842_v62  ;;  %4508 = vrcp.f32 %v1244_v18  ;;  %v5416_v24 = vsel %vm1495_vm12, %v5347_v51, %v1623_v57 }
  0xe9   : > { %v4501_v63 = vpop.eup %4500  ;;  %v726_v2 = vadd.f32 %v5190_v37, %v656_v36  ;;  %4459 = vset.pattern.permute.xlu1 %v4889_v0  ;;  %vm1177_vm0 = vcmp.gt.f32.partialorder %v5387_v25, 0.5  ;;  %v5419_v11 = vmul.f32 0.01, %v5240_v12  ;;  %v1053_v49 = vmul.f32 %v5183_v34, %v5314_v32  ;;  %v295_v36 = vld [vmem:[%s4947_s28 + $0x138] sm:$0xff] }
  0xea   : > { %v390_v13 = vpop.permute.xlu0 %389  ;;  %925 = vperm.xlu1 %4459, %v292_v4   ;;  %v1617_v45 = vsel %vm1169_vm5, %v1425_v42, %v5281_v54  ;;  %v1362_v47 = vmul.f32 0.25, %v4501_v63  ;;  %v1241_v59 = vsel %vm1177_vm0, %v5387_v25, 1.0  ;;  %v5423_v54 = vadd.f32 %v1055_v56, %v731_v38 }
  0xeb   : > { %v5407_v61 = vadd.f32 %v5279_v52, %v726_v2  ;;  %v659_v5 = vmul.f32 %v5178_v33, %v390_v13  ;;  %v1681_v15 = vsel %vm1489_vm15, %v1553_v43, %v1617_v45  ;;  %4510 = vrcp.f32 %v1241_v59 }
  0xec   : > { %4125 = vmatmul.mubr.f32.vlgmr.msra.gmra.mrb[0].mxu0 %v1681_v15  ;;  %v405_v4 = vpop.permute.xlu1 %404  ;;  %v1426_v8 = vsub.f32 1.0, %v1362_v47  ;;  %vm1496_vm4 = vcmp.le.f32.partialorder %v5240_v12, 0.0  ;;  %vm1493_vm5 = vcmp.le.f32.partialorder %v5330_v21, 0.0  ;;  %v1557_v40 = vmul.f32 0.01, %v5330_v21 }
  0xed   : > { %v4503_v52 = vpop.eup %4502  ;;  %v729_v18 = vadd.f32 %v5190_v37, %v659_v5  ;;  %vm1178_vm2 = vcmp.gt.f32.partialorder %v5407_v61, 0.5  ;;  %v662_v29 = vmul.f32 %v5178_v33, %v405_v4  ;;  %v1558_v59 = vmul.f32 0.01, %v5364_v6 }
  0xee   : > { %v4505_v27 = vpop.eup %4504  ;;  %v395_v55 = vpop.permute.xlu0 %394  ;;  %929 = vperm.xlu1 %4459, %v5137_v3   ;;  %v1618_v51 = vsel %vm1170_vm8, %v1426_v8, %v5305_v17  ;;  %v1365_v57 = vmul.f32 0.25, %v4503_v52  ;;  %v1242_v32 = vsel %vm1178_vm2, %v5407_v61, 1.0  ;;  %v1624_v3 = vsel %vm1176_vm3, %v1432_v23, %v5240_v12 }
  0xef   : > { %v5435_v30 = vadd.f32 %v1053_v49, %v729_v18  ;;  %v660_v31 = vmul.f32 %v5178_v33, %v395_v55  ;;  %v1682_v35 = vsel %vm1490_vm1, %v1554_v44, %v1618_v51  ;;  %4512 = vrcp.f32 %v1242_v32 }
  0xf0   : > { %4127 = vmatprep.mubr.f32.mxu0 %v1682_v35  ;;  %v1429_v62 = vsub.f32 1.0, %v1365_v57  ;;  %v5449_v44 = vmul.f32 0.25, %v4505_v27  ;;  %vm1183_vm3 = vcmp.gt.f32.partialorder %v5423_v54, 0.5  ;;  %v732_v23 = vadd.f32 %v5190_v37, %v662_v29 }
  0xf1   : > { %v4507_v42 = vpop.eup %4506  ;;  %v730_v43 = vadd.f32 %v5190_v37, %v660_v31  ;;  %4128 = vmatmul.mubr.f32.gmra.mrb[2].mxu0 %v5340_v1  ;;  %v846_v17 = vpop.permute.xlu1 %845  ;;  %vm1181_vm6 = vcmp.gt.f32.partialorder %v5435_v30, 0.5  ;;  %v1688_v31 = vsel %vm1496_vm4, %v5419_v11, %v1624_v3  ;;  %v296_v11 = vld [vmem:[%s4947_s28 + $0x140] sm:$0xff]  ;;  %vm1497_vm13 = vcmp.le.f32.partialorder %v5387_v25, 0.0 }
  0xf2   : > { %v1056_v63 = vmul.f32 %v5183_v34, %v846_v17  ;;  %v410_v2 = vpop.permute.xlu0 %409  ;;  %4460 = vset.pattern.permute.xlu1 %v4890_v7  ;;  %4130 = vmatprep.mubr.f32.mxu0 %v5344_v50  ;;  %v1621_v1 = vsel %vm1173_vm10, %v1429_v62, %v5330_v21  ;;  %v1366_v56 = vmul.f32 0.25, %v4507_v42  ;;  %v4509_v38 = vpop.eup %4508  ;;  %v1245_v15 = vsel %vm1181_vm6, %v5435_v30, 1.0 }
  0xf3   : > { %v5461_v13 = vadd.f32 %v5286_v22, %v730_v43  ;;  %v663_v45 = vmul.f32 %v5178_v33, %v410_v2  ;;  %519 = vperm.xlu1 %4460, %v295_v36   ;;  %v1685_v47 = vsel %vm1493_vm5, %v1557_v40, %v1621_v1  ;;  %4514 = vrcp.f32 %v1245_v15 }
  0xf4   : > { %v5467_v5 = vadd.f32 %v1056_v63, %v732_v23  ;;  %v1430_v50 = vsub.f32 1.0, %v1366_v56  ;;  %v1247_v21 = vsel %vm1183_vm3, %v5423_v54, 1.0  ;;  %v1372_v57 = vmul.f32 0.25, %v4509_v38 }
  0xf5   : > { %v4511_v4 = vpop.eup %4510  ;;  %v733_v22 = vadd.f32 %v5190_v37, %v663_v45  ;;  %4131 = vmatmul.mubr.f32.gmra.mrb[4].mxu0 %v1685_v47  ;;  %v850_v8 = vpop.permute.xlu1 %849  ;;  %vm1182_vm8 = vcmp.gt.f32.partialorder %v5461_v13, 0.5  ;;  %vm1499_vm10 = vcmp.le.f32.partialorder %v5297_v16, 0.0  ;;  %v1435_v40 = vsub.f32 1.0, %v5449_v44 }
  0xf6   : > { %v1057_v52 = vmul.f32 %v5183_v34, %v850_v8  ;;  %v415_v49 = vpop.permute.xlu0 %414  ;;  %v1622_v18 = vsel %vm1174_vm14, %v1430_v50, %v5364_v6  ;;  %v1369_v27 = vmul.f32 0.25, %v4511_v4  ;;  %v1246_v29 = vsel %vm1182_vm8, %v5461_v13, 1.0 }
  0xf7   : > { %v664_v55 = vmul.f32 %v5178_v33, %v415_v49  ;;  %4461 = vset.pattern.permute.xlu1 %v4889_v0  ;;  %v1686_v51 = vsel %vm1494_vm7, %v1558_v59, %v1622_v18  ;;  %4516 = vrcp.f32 %v1246_v29  ;;  %v1561_v6 = vmul.f32 0.01, %v5387_v25 }
  0xf8   : > { %v5489_v32 = vadd.f32 %v1057_v52, %v733_v22  ;;  %937 = vperm.xlu1 %4461, %v295_v36   ;;  %4133 = vmatprep.mubr.f32.mxu0 %v1686_v51  ;;  %v1433_v35 = vsub.f32 1.0, %v1369_v27  ;;  %4518 = vrcp.f32 %v1247_v21  ;;  %vm1184_vm12 = vcmp.gt.f32.partialorder %v5467_v5, 0.5 }
  0xf9   : > { %v734_v62 = vadd.f32 %v5190_v37, %v664_v55  ;;  %4134 = vmatmul.mubr.f32.gmra.mrb[6].mxu0 %v5416_v24  ;;  %v4513_v36 = vpop.eup %4512  ;;  %v1248_v24 = vsel %vm1184_vm12, %v5467_v5, 1.0  ;;  %v1436_v23 = vsub.f32 1.0, %v1372_v57  ;;  %v1563_v2 = vmul.f32 0.01, %v5297_v16 }
  0xfa   : > { %v5500_v42 = vpop.permute.xlu0 %429  ;;  %4136 = vmatprep.mubr.f32.mxu0 %v1688_v31  ;;  %v420_v12 = vpop.permute.xlu1 %419  ;;  %v1625_v3 = vsel %vm1177_vm0, %v1433_v35, %v5387_v25  ;;  %vm1185_vm14 = vcmp.gt.f32.partialorder %v5489_v32, 0.5  ;;  %v1370_v63 = vmul.f32 0.25, %v4513_v36  ;;  %4520 = vrcp.f32 %v1248_v24 }
  0xfb   : > { %v5512_v43 = vadd.f32 %v5290_v60, %v734_v62  ;;  %v665_v17 = vmul.f32 %v5178_v33, %v420_v12  ;;  %v1689_v44 = vsel %vm1497_vm13, %v1561_v6, %v1625_v3  ;;  %v1249_v25 = vsel %vm1185_vm14, %v5489_v32, 1.0 }
  0xfc   : > { %4462 = vset.pattern.permute.xlu1 %v4890_v7  ;;  %v1562_v1 = vmul.f32 0.01, %v5407_v61  ;;  %vm1500_vm15 = vcmp.le.f32.partialorder %v5323_v39, 0.0  ;;  %v1564_v60 = vmul.f32 0.01, %v5323_v39  ;;  %4522 = vrcp.f32 %v1249_v25 }
  0xfd   : > { %524 = vperm.xlu1 %4462, %v296_v11   ;;  %4137 = vmatmul.mubr.f32.gmra.mrb[8].mxu0 %v1689_v44  ;;  %v1434_v38 = vsub.f32 1.0, %v1370_v63  ;;  %vm1498_vm0 = vcmp.le.f32.partialorder %v5407_v61, 0.0  ;;  %v1627_v45 = vsel %vm1179_vm9, %v1435_v40, %v5297_v16  ;;  %vm1186_vm1 = vcmp.gt.f32.partialorder %v5512_v43, 0.5  ;;  %v4515_v47 = vpop.eup %4514 }
  0xfe   : > { %v435_v56 = vpop.permute.xlu0 %434  ;;  %v735_v59 = vadd.f32 %v5190_v37, %v665_v17  ;;  %v1628_v4 = vsel %vm1180_vm11, %v1436_v23, %v5323_v39  ;;  %v1250_v22 = vsel %vm1186_vm1, %v5512_v43, 1.0  ;;  %v1373_v52 = vmul.f32 0.25, %v4515_v47 }
  0xff   : > { %v668_v50 = vmul.f32 %v5178_v33, %v435_v56  ;;  %v858_v15 = vpop.permute.xlu1 %857  ;;  %v1626_v21 = vsel %vm1178_vm2, %v1434_v38, %v5407_v61  ;;  %4524 = vrcp.f32 %v1250_v22  ;;  %v1691_v29 = vsel %vm1499_vm10, %v1563_v2, %v1627_v45  ;;  %v299_v2 = vld [vmem:[%s4947_s28 + $0x158] sm:$0xff] }
 0x100   : > { %v1059_v8 = vmul.f32 %v5183_v34, %v858_v15  ;;  %v1690_v27 = vsel %vm1498_vm0, %v1562_v1, %v1626_v21  ;;  %vm1501_vm9 = vcmp.le.f32.partialorder %v5435_v30, 0.0  ;;  %v1437_v57 = vsub.f32 1.0, %v1373_v52 }
 0x101   : > { %v4517_v49 = vpop.eup %4516  ;;  %v738_v18 = vadd.f32 %v5190_v37, %v668_v50  ;;  %4463 = vset.pattern.permute.xlu1 %v4889_v0  ;;  %4139 = vmatprep.mubr.f32.mxu0 %v1690_v27  ;;  %v1565_v61 = vmul.f32 0.01, %v5435_v30  ;;  %v1692_v62 = vsel %vm1500_vm15, %v1564_v60, %v1628_v4  ;;  %v1566_v16 = vmul.f32 0.01, %v5461_v13 }
 0x102   : > { %v4519_v55 = vpop.eup %4518  ;;  %v5545_v51 = vadd.f32 %v1059_v8, %v735_v59  ;;  %941 = vperm.xlu1 %4463, %v296_v11   ;;  %v1374_v31 = vmul.f32 0.25, %v4517_v49  ;;  %4140 = vmatmul.mubr.f32.gmra.mrb[10].mxu0 %v1691_v29  ;;  %v1629_v36 = vsel %vm1181_vm6, %v1437_v57, %v5435_v30  ;;  %vm1502_vm11 = vcmp.le.f32.partialorder %v5461_v13, 0.0  ;;  %v5585_v45 = vpop.permute.xlu0 %449 }
 0x103   : > { %v5549_v35 = vadd.f32 %v5336_v48, %v738_v18  ;;  %v1375_v6 = vmul.f32 0.25, %v4519_v55  ;;  %4142 = vmatprep.mubr.f32.mxu0 %v1692_v62  ;;  %v1693_v39 = vsel %vm1501_vm9, %v1565_v61, %v1629_v36  ;;  %vm1503_vm4 = vcmp.le.f32.partialorder %v5423_v54, 0.0  ;;  %v300_v36 = vld [vmem:[%s4947_s28 + $0x160] sm:$0xff] }
 0x104   : > { %v425_v40 = vpop.permute.xlu1 %424  ;;  %v1438_v12 = vsub.f32 1.0, %v1374_v31  ;;  %vm1187_vm2 = vcmp.gt.f32.partialorder %v5545_v51, 0.5  ;;  %v4521_v3 = vpop.eup %4520  ;;  %v667_v30 = vmul.f32 %v5178_v33, %v5500_v42  ;;  %vm1504_vm6 = vcmp.le.f32.partialorder %v5467_v5, 0.0 }
 0x105   : > { %v666_v48 = vmul.f32 %v5178_v33, %v425_v40  ;;  %v1439_v11 = vsub.f32 1.0, %v1375_v6  ;;  %v1251_v17 = vsel %vm1187_vm2, %v5545_v51, 1.0  ;;  %vm1190_vm5 = vcmp.gt.f32.partialorder %v5549_v35, 0.5 }
 0x106   : > { %945 = vperm.xlu1 %4463, %v5148_v10   ;;  %v1630_v24 = vsel %vm1182_vm8, %v1438_v12, %v5461_v13  ;;  %v4523_v44 = vpop.eup %4522  ;;  %4143 = vmatmul.mubr.f32.gmra.mrb[12].mxu0 %v1693_v39  ;;  %v1567_v10 = vmul.f32 0.01, %v5423_v54  ;;  %v1376_v63 = vmul.f32 0.25, %v4521_v3  ;;  %4526 = vrcp.f32 %v1251_v17  ;;  %v455_v61 = vpop.permute.xlu0 %454 }
 0x107   : > { %v1694_v23 = vsel %vm1502_vm11, %v1566_v16, %v1630_v24  ;;  %v1631_v13 = vsel %vm1183_vm3, %v1439_v11, %v5423_v54  ;;  %v1377_v25 = vmul.f32 0.25, %v4523_v44  ;;  %v736_v1 = vadd.f32 %v5190_v37, %v666_v48 }
 0x108   : > { %4145 = vmatprep.mubr.f32.mxu0 %v1694_v23  ;;  %v1568_v42 = vmul.f32 0.01, %v5467_v5  ;;  %vm1505_vm7 = vcmp.le.f32.partialorder %v5489_v32, 0.0  ;;  %v1254_v56 = vsel %vm1190_vm5, %v5549_v35, 1.0  ;;  %v1695_v47 = vsel %vm1503_vm4, %v1567_v10, %v1631_v13 }
 0x109   : > { %v862_v60 = vpop.permute.xlu1 %861  ;;  %v4525_v38 = vpop.eup %4524  ;;  %v1440_v50 = vsub.f32 1.0, %v1376_v63  ;;  %v1441_v15 = vsub.f32 1.0, %v1377_v25  ;;  %v737_v4 = vadd.f32 %v5190_v37, %v667_v30  ;;  %v1569_v22 = vmul.f32 0.01, %v5489_v32 }
 0x10a   : > { %v1060_v59 = vmul.f32 %v5183_v34, %v862_v60  ;;  %4464 = vset.pattern.permute.xlu1 %v4890_v7  ;;  %4146 = vmatmul.mubr.f32.gmra.mrb[14].mxu0 %v1695_v47  ;;  %v1378_v8 = vmul.f32 0.25, %v4525_v38  ;;  %v1570_v21 = vmul.f32 0.01, %v5512_v43  ;;  %4528 = vrcp.f32 %v1254_v56 }
 0x10b   : > { %539 = vperm.xlu1 %4464, %v299_v2   ;;  %v1632_v54 = vsel %vm1184_vm12, %v1440_v50, %v5467_v5  ;;  %v1633_v49 = vsel %vm1185_vm14, %v1441_v15, %v5489_v32  ;;  %vm1506_vm3 = vcmp.le.f32.partialorder %v5512_v43, 0.0  ;;  %v672_v16 = vmul.f32 %v5178_v33, %v455_v61 }
 0x10c   : > { %v5594_v52 = vadd.f32 %v1060_v59, %v736_v1  ;;  %v1696_v18 = vsel %vm1504_vm6, %v1568_v42, %v1632_v54  ;;  %v1697_v27 = vsel %vm1505_vm7, %v1569_v22, %v1633_v49  ;;  %v1442_v55 = vsub.f32 1.0, %v1378_v8  ;;  %v303_v22 = vld [vmem:[%s4947_s28 + $0x178] sm:$0xff] }
 0x10d   : > { %v866_v29 = vpop.permute.xlu1 %865  ;;  %4148 = vmatprep.mubr.f32.mxu0 %v1696_v18  ;;  %v1066_v39 = vmul.f32 %v5183_v34, %v5161_v19  ;;  %v742_v11 = vadd.f32 %v5190_v37, %v672_v16  ;;  %v1571_v17 = vmul.f32 0.01, %v5545_v51  ;;  %vm1507_vm12 = vcmp.le.f32.partialorder %v5545_v51, 0.0 }
 0x10e   : > { %v1061_v57 = vmul.f32 %v5183_v34, %v866_v29  ;;  %vm1188_vm8 = vcmp.gt.f32.partialorder %v5594_v52, 0.5  ;;  %4149 = vmatmul.mubr.f32.gmra.mrb[16].mxu0 %v1697_v27  ;;  %v1634_v5 = vsel %vm1186_vm1, %v1442_v55, %v5512_v43  ;;  %v1572_v47 = vmul.f32 0.01, %v5594_v52 }
 0x10f   : > { %4465 = vset.pattern.permute.xlu1 %v4889_v0  ;;  %v1252_v32 = vsel %vm1188_vm8, %v5594_v52, 1.0  ;;  %v1698_v62 = vsel %vm1506_vm3, %v1570_v21, %v1634_v5  ;;  %v5636_v13 = vadd.f32 %v1066_v39, %v742_v11  ;;  %v671_v50 = vmul.f32 %v5178_v33, %v5585_v45  ;;  %v470_v5 = vpop.permute.xlu0 %469 }
 0x110   : > { %v5616_v31 = vadd.f32 %v1061_v57, %v737_v4  ;;  %953 = vperm.xlu1 %4465, %v299_v2   ;;  %4530 = vrcp.f32 %v1252_v32  ;;  %4151 = vmatprep.mubr.f32.mxu0 %v1698_v62  ;;  %v4527_v6 = vpop.eup %4526  ;;  %vm1508_vm15 = vcmp.le.f32.partialorder %v5594_v52, 0.0  ;;  %v1574_v21 = vmul.f32 0.01, %v5549_v35 }
 0x111   : > { %v1379_v12 = vmul.f32 0.25, %v4527_v6  ;;  %vm1194_vm14 = vcmp.gt.f32.partialorder %v5636_v13, 0.5  ;;  %vm1510_vm0 = vcmp.le.f32.partialorder %v5549_v35, 0.0  ;;  %v741_v27 = vadd.f32 %v5190_v37, %v671_v50 }
 0x112   : > { %v440_v40 = vpop.permute.xlu1 %439  ;;  %vm1189_vm10 = vcmp.gt.f32.partialorder %v5616_v31, 0.5  ;;  %v1573_v29 = vmul.f32 0.01, %v5616_v31  ;;  %vm1509_vm1 = vcmp.le.f32.partialorder %v5616_v31, 0.0  ;;  %vm1514_vm7 = vcmp.le.f32.partialorder %v5636_v13, 0.0 }
 0x113   : > { %v669_v43 = vmul.f32 %v5178_v33, %v440_v40  ;;  %v1253_v48 = vsel %vm1189_vm10, %v5616_v31, 1.0  ;;  %v1443_v3 = vsub.f32 1.0, %v1379_v12  ;;  %v304_v12 = vld [vmem:[%s4947_s28 + $0x180] sm:$0xff] }
 0x114   : > { %4466 = vset.pattern.permute.xlu1 %v4890_v7  ;;  %4532 = vrcp.f32 %v1253_v48  ;;  %v4529_v24 = vpop.eup %4528 }
 0x115   : > { %544 = vperm.xlu1 %4466, %v300_v36   ;;  %v1635_v44 = vsel %vm1187_vm2, %v1443_v3, %v5545_v51  ;;  %v739_v23 = vadd.f32 %v5190_v37, %v669_v43  ;;  %v1382_v63 = vmul.f32 0.25, %v4529_v24  ;;  %v475_v43 = vpop.permute.xlu0 %474 }
 0x116   : > { %v1699_v10 = vsel %vm1507_vm12, %v1571_v17, %v1635_v44  ;;  %v676_v39 = vmul.f32 %v5178_v33, %v475_v43  ;;  %v3914_v43 = vld [vmem:[%s7870_s4 + $0x90] sm:$0xff] }
 0x117   : > { %v874_v30 = vpop.permute.xlu1 %873  ;;  %4152 = vmatmul.mubr.f32.gmra.mrb[18].mxu0 %v1699_v10  ;;  %v1446_v42 = vsub.f32 1.0, %v1382_v63  ;;  %v1070_v10 = vmul.f32 %v5183_v34, %v5167_v26 }
 0x118   : > { %v1063_v19 = vmul.f32 %v5183_v34, %v874_v30 }
 0x119   : > { %4467 = vset.pattern.permute.xlu1 %v4889_v0  ;;  %v1638_v45 = vsel %vm1190_vm5, %v1446_v42, %v5549_v35 }
 0x11a   : > { %v4531_v2 = vpop.eup %4530  ;;  %v5639_v25 = vadd.f32 %v1063_v19, %v739_v23  ;;  %957 = vperm.xlu1 %4467, %v300_v36   ;;  %v1702_v57 = vsel %vm1510_vm0, %v1574_v21, %v1638_v45  ;;  %v746_v19 = vadd.f32 %v5190_v37, %v676_v39  ;;  %v3912_v45 = vld [vmem:[%s7870_s4 + $0x80] sm:$0xff] }
 0x11b   : > { %v1380_v1 = vmul.f32 0.25, %v4531_v2 }
 0x11c   : > { %v445_v60 = vpop.permute.xlu1 %444  ;;  %vm1191_vm13 = vcmp.gt.f32.partialorder %v5639_v25, 0.5  ;;  %v1575_v3 = vmul.f32 0.01, %v5639_v25  ;;  %vm1511_vm2 = vcmp.le.f32.partialorder %v5639_v25, 0.0  ;;  %v5704_v42 = vadd.f32 %v1070_v10, %v746_v19  ;;  %v308_v19 = vld [vmem:[%s4947_s28 + $0x1a0] sm:$0xff] }
 0x11d   : > { %v1444_v51 = vsub.f32 1.0, %v1380_v1  ;;  %v1255_v56 = vsel %vm1191_vm13, %v5639_v25, 1.0  ;;  %v670_v38 = vmul.f32 %v5178_v33, %v445_v60 }
 0x11e   : > { %961 = vperm.xlu1 %4467, %v5158_v14   ;;  %4534 = vrcp.f32 %v1255_v56  ;;  %v4533_v59 = vpop.eup %4532  ;;  %v1258_v14 = vsel %vm1194_vm14, %v5636_v13, 1.0  ;;  %vm1198_vm6 = vcmp.gt.f32.partialorder %v5704_v42, 0.5  ;;  %vm1518_vm0 = vcmp.le.f32.partialorder %v5704_v42, 0.0 }
 0x11f   : > { %v1636_v15 = vsel %vm1188_vm8, %v1444_v51, %v5594_v52  ;;  %v1381_v8 = vmul.f32 0.25, %v4533_v59  ;;  %v740_v49 = vadd.f32 %v5190_v37, %v670_v38  ;;  %4536 = vrcp.f32 %v1258_v14  ;;  %v4872_v59 = vld [vmem:[%s4947_s28 + $0x188] sm:$0xff] }
 0x120   : > { %v1700_v4 = vsel %vm1508_vm15, %v1572_v47, %v1636_v15 }
 0x121   : > { %4154 = vmatprep.mubr.f32.mxu0 %v1700_v4  ;;  %v878_v54 = vpop.permute.xlu1 %877  ;;  %v1445_v18 = vsub.f32 1.0, %v1381_v8  ;;  %v675_v4 = vmul.f32 %v5178_v33, %v470_v5  ;;  %v307_v8 = vld [vmem:[%s4947_s28 + $0x198] sm:$0xff] }
 0x122   : > { %v1064_v52 = vmul.f32 %v5183_v34, %v878_v54  ;;  %4468 = vset.pattern.permute.xlu1 %v4890_v7  ;;  %v1578_v54 = vmul.f32 0.01, %v5636_v13 }
 0x123   : > { %559 = vperm.xlu1 %4468, %v303_v22   ;;  %v1637_v35 = vsel %vm1189_vm10, %v1445_v18, %v5616_v31 }
 0x124   : > { %v5669_v55 = vadd.f32 %v1064_v52, %v740_v49  ;;  %v1701_v32 = vsel %vm1509_vm1, %v1573_v29, %v1637_v35  ;;  %v3913_v49 = vld [vmem:[%s7870_s4 + $0x88] sm:$0xff]  ;;  %v5734_v29 = vld [vmem:[%s7869_s3] ss:$0 sm:$0xff] }
 0x125   : > { %v882_v61 = vpop.permute.xlu1 %881  ;;  %4155 = vmatmul.mubr.f32.gmra.mrb[20].mxu0 %v1701_v32  ;;  %v745_v5 = vadd.f32 %v5734_v29, %v675_v4  ;;  %v3920_v4 = vld [vmem:[%s7870_s4 + $0xc0] sm:$0xff] }
 0x126   : > { %v1065_v62 = vmul.f32 %v5183_v34, %v882_v61  ;;  %vm1192_vm9 = vcmp.gt.f32.partialorder %v5669_v55, 0.5  ;;  %4157 = vmatprep.mubr.f32.mxu0 %v1702_v57  ;;  %v1576_v50 = vmul.f32 0.01, %v5669_v55  ;;  %vm1512_vm5 = vcmp.le.f32.partialorder %v5669_v55, 0.0 }
 0x127   : > { %4469 = vset.pattern.permute.xlu1 %v4889_v0  ;;  %v1256_v16 = vsel %vm1192_vm9, %v5669_v55, 1.0  ;;  %v1262_v61 = vsel %vm1198_vm6, %v5704_v42, 1.0 }
 0x128   : > { %v4535_v6 = vpop.eup %4534  ;;  %v5681_v40 = vadd.f32 %v1065_v62, %v741_v27  ;;  %969 = vperm.xlu1 %4469, %v303_v22   ;;  %4538 = vrcp.f32 %v1256_v16  ;;  %v4380_v27 = vpack.c.bf16 %v3913_v49, %v3912_v45  ;;  %v5744_v62 = vpop.permute.xlu0 %489 }
 0x129   : > { %v1383_v31 = vmul.f32 0.25, %v4535_v6  ;;  %v4537_v17 = vpop.eup %4536 }
 0x12a   : > { %v460_v36 = vpop.permute.xlu1 %459  ;;  %vm1193_vm11 = vcmp.gt.f32.partialorder %v5681_v40, 0.5  ;;  %v1386_v1 = vmul.f32 0.25, %v4537_v17  ;;  %v1577_v32 = vmul.f32 0.01, %v5681_v40  ;;  %4381 = vmatprep.subr.bf16.mxu1 %v4380_v27  ;;  %vm1513_vm3 = vcmp.le.f32.partialorder %v5681_v40, 0.0  ;;  %v3917_v17 = vld [vmem:[%s7870_s4 + $0xa8] sm:$0xff] }
 0x12b   : > { %v1447_v48 = vsub.f32 1.0, %v1383_v31  ;;  %v673_v11 = vmul.f32 %v5178_v33, %v460_v36  ;;  %v1257_v24 = vsel %vm1193_vm11, %v5681_v40, 1.0  ;;  %4383 = vmatpush3.bf16.msra.mxu1 %v4380_v27  ;;  %v3922_v27 = vld [vmem:[%s7870_s4 + $0xd0] sm:$0xff] }
 0x12c   : > { %4470 = vset.pattern.permute.xlu1 %v4890_v7  ;;  %4540 = vrcp.f32 %v1257_v24  ;;  %v1450_v38 = vsub.f32 1.0, %v1386_v1  ;;  %v3916_v24 = vld [vmem:[%s7870_s4 + $0xa0] sm:$0xff] }
 0x12d   : > { %564 = vperm.xlu1 %4470, %v304_v12   ;;  %v1639_v44 = vsel %vm1191_vm13, %v1447_v48, %v5639_v25  ;;  %v743_v63 = vadd.f32 %v5190_v37, %v673_v11  ;;  %v3915_v48 = vld [vmem:[%s7870_s4 + $0x98] sm:$0xff] }
 0x12e   : > { %v1703_v30 = vsel %vm1511_vm2, %v1575_v3, %v1639_v44  ;;  %v1642_v18 = vsel %vm1194_vm14, %v1450_v38, %v5636_v13 }
 0x12f   : > { %4158 = vmatmul.mubr.f32.gmra.mrb[22].mxu0 %v1703_v30  ;;  %v890_v23 = vpop.permute.xlu1 %889  ;;  %v1706_v31 = vsel %vm1514_vm7, %v1578_v54, %v1642_v18  ;;  %v4388_v30 = vpack.c.bf16 %v3917_v17, %v3916_v24  ;;  %v1582_v17 = vmul.f32 0.01, %v5704_v42 }
 0x130   : > { %v1067_v2 = vmul.f32 %v5183_v34, %v890_v23  ;;  %v495_v23 = vpop.permute.xlu0 %494 }
 0x131   : > { %4471 = vset.pattern.permute.xlu1 %v4889_v0  ;;  %v680_v1 = vmul.f32 %v5178_v33, %v495_v23 }
 0x132   : > { %v4539_v60 = vpop.eup %4538  ;;  %v5702_v51 = vadd.f32 %v1067_v2, %v743_v63  ;;  %973 = vperm.xlu1 %4471, %v304_v12   ;;  %v3918_v63 = vld [vmem:[%s7870_s4 + $0xb0] sm:$0xff]  ;;  %v3919_v2 = vld [vmem:[%s7870_s4 + $0xb8] sm:$0xff] }
 0x133   : > { %v1384_v25 = vmul.f32 0.25, %v4539_v60  ;;  %v4392_v38 = vpack.c.bf16 %v3919_v2, %v3918_v63 }
 0x134   : > { %v465_v56 = vpop.permute.xlu1 %464  ;;  %vm1195_vm4 = vcmp.gt.f32.partialorder %v5702_v51, 0.5  ;;  %vm1515_vm12 = vcmp.le.f32.partialorder %v5702_v51, 0.0 }
 0x135   : > { %v1448_v26 = vsub.f32 1.0, %v1384_v25  ;;  %v1259_v37 = vsel %vm1195_vm4, %v5702_v51, 1.0  ;;  %v674_v47 = vmul.f32 %v5178_v33, %v465_v56  ;;  %v1579_v56 = vmul.f32 0.01, %v5702_v51 }
 0x136   : > { %977 = vperm.xlu1 %4471, %v4872_v59   ;;  %4542 = vrcp.f32 %v1259_v37  ;;  %v4541_v15 = vpop.eup %4540  ;;  %v1074_v59 = vmul.f32 %v5183_v34, %v5172_v28 }
 0x137   : > { %v1640_v22 = vsel %vm1192_vm9, %v1448_v26, %v5669_v55  ;;  %v1385_v14 = vmul.f32 0.25, %v4541_v15  ;;  %v744_v55 = vadd.f32 %v5734_v29, %v674_v47  ;;  %4544 = vrcp.f32 %v1262_v61 }
 0x138   : > { %v1704_v21 = vsel %vm1512_vm5, %v1576_v50, %v1640_v22  ;;  %v750_v50 = vadd.f32 %v5734_v29, %v680_v1  ;;  %v3921_v22 = vld [vmem:[%s7870_s4 + $0xc8] sm:$0xff] }
 0x139   : > { %4160 = vmatprep.mubr.f32.mxu0 %v1704_v21  ;;  %v894_v52 = vpop.permute.xlu1 %893  ;;  %v1449_v57 = vsub.f32 1.0, %v1385_v14  ;;  %v4396_v14 = vpack.c.bf16 %v3921_v22, %v3920_v4 }
 0x13a   : > { %v1068_v35 = vmul.f32 %v5183_v34, %v894_v52  ;;  %4472 = vset.pattern.permute.xlu1 %v4890_v7  ;;  %v5807_v45 = vadd.f32 %v1074_v59, %v750_v50 }
 0x13b   : > { %579 = vperm.xlu1 %4472, %v307_v8   ;;  %v1641_v6 = vsel %vm1193_vm11, %v1449_v57, %v5681_v40  ;;  %v4384_v40 = vpack.c.bf16 %v3915_v48, %v3914_v43  ;;  %v679_v43 = vmul.f32 %v5178_v33, %v5744_v62  ;;  %v5829_v48 = vpop.permute.xlu0 %509 }
 0x13c   : > { %v5746_v16 = vadd.f32 %v1068_v35, %v744_v55  ;;  %v1705_v36 = vsel %vm1513_vm3, %v1577_v32, %v1641_v6  ;;  %v3923_v55 = vld [vmem:[%s7870_s4 + $0xd8] sm:$0xff]  ;;  %v4874_v32 = vld [vmem:[%s4947_s28 + $0x1a8] sm:$0xff]  ;;  %vm1202_vm15 = vcmp.gt.f32.partialorder %v5807_v45, 0.5  ;;  %vm1522_vm7 = vcmp.le.f32.partialorder %v5807_v45, 0.0 }
 0x13d   : > { %v898_v12 = vpop.permute.xlu1 %897  ;;  %4161 = vmatmul.mubr.f32.gmra.mrb[24].mxu0 %v1705_v36  ;;  %4385 = vmatprep.subr.bf16.mxu1 %v4384_v40  ;;  %v4400_v6 = vpack.c.bf16 %v3923_v55, %v3922_v27  ;;  %v749_v2 = vadd.f32 %v5734_v29, %v679_v43 }
 0x13e   : > { %v1069_v39 = vmul.f32 %v5183_v34, %v898_v12  ;;  %vm1196_vm8 = vcmp.gt.f32.partialorder %v5746_v16, 0.5  ;;  %4163 = vmatprep.mubr.f32.mxu0 %v1706_v31  ;;  %4387 = vmatpush3.bf16.msra.mxu1 %v4384_v40  ;;  %v1580_v61 = vmul.f32 0.01, %v5746_v16  ;;  %vm1516_vm14 = vcmp.le.f32.partialorder %v5746_v16, 0.0 }
 0x13f   : > { %4473 = vset.pattern.permute.xlu1 %v4889_v0  ;;  %v1260_v13 = vsel %vm1196_vm8, %v5746_v16, 1.0  ;;  %4389 = vmatprep.subr.bf16.mxu1 %v4388_v30 }
 0x140   : > { %v4543_v11 = vpop.eup %4542  ;;  %v5766_v3 = vadd.f32 %v1069_v39, %v745_v5  ;;  %985 = vperm.xlu1 %4473, %v307_v8   ;;  %4546 = vrcp.f32 %v1260_v13  ;;  %v311_v13 = vld [vmem:[%s4947_s28 + $0x1b8] sm:$0xff] }
 0x141   : > { %v1387_v44 = vmul.f32 0.25, %v4543_v11  ;;  %v3924_v11 = vld [vmem:[%s7870_s4 + $0xe0] sm:$0xff] }
 0x142   : > { %v480_v10 = vpop.permute.xlu1 %479  ;;  %vm1197_vm10 = vcmp.gt.f32.partialorder %v5766_v3, 0.5  ;;  %4391 = vmatpush3.bf16.msra.mxu1 %v4388_v30  ;;  %vm1517_vm1 = vcmp.le.f32.partialorder %v5766_v3, 0.0 }
 0x143   : > { %v1451_v60 = vsub.f32 1.0, %v1387_v44  ;;  %v677_v25 = vmul.f32 %v5178_v33, %v480_v10  ;;  %v1261_v26 = vsel %vm1197_vm10, %v5766_v3, 1.0  ;;  %4393 = vmatprep.subr.bf16.mxu1 %v4392_v38  ;;  %v1266_v10 = vsel %vm1202_vm15, %v5807_v45, 1.0 }
 0x144   : > { %4474 = vset.pattern.permute.xlu1 %v4890_v7  ;;  %4548 = vrcp.f32 %v1261_v26  ;;  %v3926_v26 = vld [vmem:[%s7870_s4 + $0xf0] sm:$0xff] }
 0x145   : > { %584 = vperm.xlu1 %4474, %v308_v19   ;;  %v1643_v37 = vsel %vm1195_vm4, %v1451_v60, %v5702_v51  ;;  %v4545_v51 = vpop.eup %4544  ;;  %v747_v8 = vadd.f32 %v5734_v29, %v677_v25 }
 0x146   : > { %v1707_v47 = vsel %vm1515_vm12, %v1579_v56, %v1643_v37  ;;  %4395 = vmatpush3.bf16.msra.mxu1 %v4392_v38  ;;  %v1390_v52 = vmul.f32 0.25, %v4545_v51  ;;  %v515_v38 = vpop.permute.xlu0 %514 }
 0x147   : > { %4164 = vmatmul.mubr.f32.gmra.mrb[26].mxu0 %v1707_v47  ;;  %v906_v15 = vpop.permute.xlu1 %905  ;;  %4397 = vmatprep.subr.bf16.mxu1 %v4396_v14  ;;  %v684_v4 = vmul.f32 %v5178_v33, %v515_v38 }
 0x148   : > { %v1071_v21 = vmul.f32 %v5183_v34, %v906_v15  ;;  %v1454_v12 = vsub.f32 1.0, %v1390_v52 }
 0x149   : > { %4475 = vset.pattern.permute.xlu1 %v4889_v0  ;;  %v754_v27 = vadd.f32 %v5734_v29, %v684_v4 }
 0x14a   : > { %v4547_v28 = vpop.eup %4546  ;;  %v5805_v54 = vadd.f32 %v1071_v21, %v747_v8  ;;  %989 = vperm.xlu1 %4475, %v308_v19   ;;  %4399 = vmatpush3.bf16.msra.mxu1 %v4396_v14  ;;  %v1581_v19 = vmul.f32 0.01, %v5766_v3  ;;  %v1646_v63 = vsel %vm1198_vm6, %v1454_v12, %v5704_v42  ;;  %v3927_v42 = vld [vmem:[%s7870_s4 + $0xf8] sm:$0xff]  ;;  %v312_v8 = vld [vmem:[%s4947_s28 + $0x1c0] sm:$0xff] }
 0x14b   : > { %v1388_v49 = vmul.f32 0.25, %v4547_v28  ;;  %4401 = vmatprep.subr.bf16.mxu1 %v4400_v6  ;;  %v1710_v47 = vsel %vm1518_vm0, %v1582_v17, %v1646_v63  ;;  %v4408_v59 = vpack.c.bf16 %v3927_v42, %v3926_v26  ;;  %v5877_v28 = vpop.permute.xlu0 %529 }
 0x14c   : > { %v485_v18 = vpop.permute.xlu1 %484  ;;  %vm1199_vm13 = vcmp.gt.f32.partialorder %v5805_v54, 0.5  ;;  %v1583_v52 = vmul.f32 0.01, %v5805_v54  ;;  %vm1519_vm2 = vcmp.le.f32.partialorder %v5805_v54, 0.0 }
 0x14d   : > { %v1452_v35 = vsub.f32 1.0, %v1388_v49  ;;  %v1263_v57 = vsel %vm1199_vm13, %v5805_v54, 1.0  ;;  %v678_v5 = vmul.f32 %v5178_v33, %v485_v18  ;;  %v1078_v18 = vmul.f32 %v5183_v34, %v5181_v20 }
 0x14e   : > { %993 = vperm.xlu1 %4475, %v4874_v32   ;;  %4550 = vrcp.f32 %v1263_v57  ;;  %v4549_v31 = vpop.eup %4548  ;;  %4403 = vmatpush3.bf16.msra.mxu1 %v4400_v6 }
 0x14f   : > { %v1644_v36 = vsel %vm1196_vm8, %v1452_v35, %v5746_v16  ;;  %v1389_v40 = vmul.f32 0.25, %v4549_v31  ;;  %v3925_v16 = vld [vmem:[%s7870_s4 + $0xe8] sm:$0xff]  ;;  %v748_v62 = vadd.f32 %v5734_v29, %v678_v5  ;;  %4552 = vrcp.f32 %v1266_v10  ;;  %v535_v31 = vpop.permute.xlu0 %534 }
 0x150   : > { %v1708_v39 = vsel %vm1516_vm14, %v1580_v61, %v1644_v36  ;;  %v4404_v44 = vpack.c.bf16 %v3925_v16, %v3924_v11  ;;  %v5891_v6 = vadd.f32 %v1078_v18, %v754_v27  ;;  %v4875_v16 = vld [vmem:[%s4947_s28 + $0x1c8] sm:$0xff] }
 0x151   : > { %4166 = vmatprep.mubr.f32.mxu0 %v1708_v39  ;;  %v910_v24 = vpop.permute.xlu1 %909  ;;  %v1453_v23 = vsub.f32 1.0, %v1389_v40 }
 0x152   : > { %v1072_v30 = vmul.f32 %v5183_v34, %v910_v24  ;;  %4476 = vset.pattern.permute.xlu1 %v4890_v7  ;;  %4405 = vmatprep.subr.bf16.mxu1 %v4404_v44  ;;  %vm1206_vm5 = vcmp.gt.f32.partialorder %v5891_v6, 0.5  ;;  %vm1526_vm0 = vcmp.le.f32.partialorder %v5891_v6, 0.0 }
 0x153   : > { %599 = vperm.xlu1 %4476, %v311_v13   ;;  %v1645_v60 = vsel %vm1197_vm10, %v1453_v23, %v5766_v3  ;;  %4407 = vmatpush3.bf16.msra.mxu1 %v4404_v44  ;;  %v5910_v23 = vpop.permute.xlu0 %549 }
 0x154   : > { %v5851_v1 = vadd.f32 %v1072_v30, %v748_v62  ;;  %v1709_v25 = vsel %vm1517_vm1, %v1581_v19, %v1645_v60  ;;  %4409 = vmatprep.subr.bf16.mxu1 %v4408_v59  ;;  %v683_v30 = vmul.f32 %v5178_v33, %v5829_v48  ;;  %v315_v19 = vld [vmem:[%s4947_s28 + $0x1d8] sm:$0xff]  ;;  %v1586_v60 = vmul.f32 0.01, %v5807_v45 }
 0x155   : > { %v914_v56 = vpop.permute.xlu1 %913  ;;  %4167 = vmatmul.mubr.f32.gmra.mrb[28].mxu0 %v1709_v25  ;;  %v1270_v25 = vsel %vm1206_vm5, %v5891_v6, 1.0 }
 0x156   : > { %v1073_v37 = vmul.f32 %v5183_v34, %v914_v56  ;;  %vm1200_vm9 = vcmp.gt.f32.partialorder %v5851_v1, 0.5  ;;  %4169 = vmatprep.mubr.f32.mxu0 %v1710_v47  ;;  %v1584_v24 = vmul.f32 0.01, %v5851_v1  ;;  %vm1520_vm6 = vcmp.le.f32.partialorder %v5851_v1, 0.0 }
 0x157   : > { %4477 = vset.pattern.permute.xlu1 %v4889_v0  ;;  %v1264_v3 = vsel %vm1200_vm9, %v5851_v1, 1.0  ;;  %4411 = vmatpush3.bf16.msra.mxu1 %v4408_v59  ;;  %v753_v38 = vadd.f32 %v5734_v29, %v683_v30 }
 0x158   : > { %v4551_v50 = vpop.eup %4550  ;;  %v5869_v15 = vadd.f32 %v1073_v37, %v749_v2  ;;  %1001 = vperm.xlu1 %4477, %v311_v13   ;;  %4554 = vrcp.f32 %v1264_v3 }
 0x159   : > { %v1391_v22 = vmul.f32 0.25, %v4551_v50  ;;  %v4553_v57 = vpop.eup %4552  ;;  %v5934_v50 = vpop.permute.xlu0 %554 }
 0x15a   : > { %v500_v51 = vpop.permute.xlu1 %499  ;;  %vm1201_vm11 = vcmp.gt.f32.partialorder %v5869_v15, 0.5  ;;  %v1394_v12 = vmul.f32 0.25, %v4553_v57  ;;  %v1585_v48 = vmul.f32 0.01, %v5869_v15  ;;  %vm1521_vm3 = vcmp.le.f32.partialorder %v5869_v15, 0.0 }
 0x15b   : > { %v1455_v21 = vsub.f32 1.0, %v1391_v22  ;;  %v1265_v14 = vsel %vm1201_vm11, %v5869_v15, 1.0  ;;  %v681_v49 = vmul.f32 %v5178_v33, %v500_v51 }
 0x15c   : > { %4478 = vset.pattern.permute.xlu1 %v4890_v7  ;;  %4556 = vrcp.f32 %v1265_v14  ;;  %v1458_v17 = vsub.f32 1.0, %v1394_v12  ;;  %v316_v14 = vld [vmem:[%s4947_s28 + $0x1e0] sm:$0xff] }
 0x15d   : > { %604 = vperm.xlu1 %4478, %v312_v8   ;;  %v1647_v55 = vsel %vm1199_vm13, %v1455_v21, %v5805_v54  ;;  %v751_v32 = vadd.f32 %v5734_v29, %v681_v49  ;;  %v5950_v18 = vpop.permute.xlu0 %569 }
 0x15e   : > { %v1711_v35 = vsel %vm1519_vm2, %v1583_v52, %v1647_v55  ;;  %v1650_v26 = vsel %vm1202_vm15, %v1458_v17, %v5807_v45  ;;  %v688_v45 = vmul.f32 %v5178_v33, %v535_v31 }
 0x15f   : > { %4170 = vmatmul.mubr.f32.gmra.mrb[30].mxu0 %v1711_v35  ;;  %v922_v5 = vpop.permute.xlu1 %921  ;;  %v1714_v59 = vsel %vm1522_vm7, %v1586_v60, %v1650_v26  ;;  %v1082_v35 = vmul.f32 %v5183_v34, %v5196_v41 }
 0x160   : > { %v1075_v61 = vmul.f32 %v5183_v34, %v922_v5  ;;  %v758_v57 = vadd.f32 %v5734_v29, %v688_v45 }
 0x161   : > { %4479 = vset.pattern.permute.xlu1 %v4889_v0 }
 0x162   : > { %v4555_v20 = vpop.eup %4554  ;;  %v5894_v36 = vadd.f32 %v1075_v61, %v751_v32  ;;  %1005 = vperm.xlu1 %4479, %v312_v8  }
 0x163   : > { %v1392_v54 = vmul.f32 0.25, %v4555_v20 }
 0x164   : > { %v505_v43 = vpop.permute.xlu1 %504  ;;  %vm1203_vm4 = vcmp.gt.f32.partialorder %v5894_v36, 0.5  ;;  %v1587_v55 = vmul.f32 0.01, %v5894_v36  ;;  %vm1523_vm12 = vcmp.le.f32.partialorder %v5894_v36, 0.0 }
 0x165   : > { %v1456_v39 = vsub.f32 1.0, %v1392_v54  ;;  %v1267_v13 = vsel %vm1203_vm4, %v5894_v36, 1.0  ;;  %v682_v11 = vmul.f32 %v5178_v33, %v505_v43  ;;  %v5964_v54 = vadd.f32 %v1082_v35, %v758_v57  ;;  %v5967_v43 = vpop.permute.xlu0 %574 }
 0x166   : > { %v4557_v40 = vpop.eup %4556  ;;  %1009 = vperm.xlu1 %4479, %v4875_v16   ;;  %4558 = vrcp.f32 %v1267_v13  ;;  %v1086_v57 = vmul.f32 %v5183_v34, %v5203_v46 }
 0x167   : > { %v1648_v44 = vsel %vm1200_vm9, %v1456_v39, %v5851_v1  ;;  %v1393_v62 = vmul.f32 0.25, %v4557_v40  ;;  %v752_v1 = vadd.f32 %v5734_v29, %v682_v11  ;;  %4560 = vrcp.f32 %v1270_v25  ;;  %v319_v25 = vld [vmem:[%s4947_s28 + $0x1f8] sm:$0xff] }
 0x168   : > { %v1712_v10 = vsel %vm1520_vm6, %v1584_v24, %v1648_v44  ;;  %vm1210_vm14 = vcmp.gt.f32.partialorder %v5964_v54, 0.5  ;;  %v4876_v44 = vld [vmem:[%s4947_s28 + $0x1e8] sm:$0xff]  ;;  %vm1530_vm7 = vcmp.le.f32.partialorder %v5964_v54, 0.0 }
 0x169   : > { %4172 = vmatprep.mubr.f32.mxu0 %v1712_v10  ;;  %v926_v63 = vpop.permute.xlu1 %925  ;;  %v1457_v2 = vsub.f32 1.0, %v1393_v62  ;;  %v1274_v26 = vsel %vm1210_vm14, %v5964_v54, 1.0 }
 0x16a   : > { %v1076_v56 = vmul.f32 %v5183_v34, %v926_v63  ;;  %4480 = vset.pattern.permute.xlu1 %v4890_v7  ;;  %v687_v63 = vmul.f32 %v5178_v33, %v5877_v28 }
 0x16b   : > { %619 = vperm.xlu1 %4480, %v315_v19   ;;  %v1649_v42 = vsel %vm1201_vm11, %v1457_v2, %v5869_v15  ;;  %v5985_v2 = vpop.permute.xlu0 %589 }
 0x16c   : > { %v5930_v37 = vadd.f32 %v1076_v56, %v752_v1  ;;  %v1713_v47 = vsel %vm1521_vm3, %v1585_v48, %v1649_v42  ;;  %v1590_v48 = vmul.f32 0.01, %v5891_v6 }
 0x16d   : > { %4173 = vmatmul.mubr.f32.gmra.mrb[32].mxu0 %v1713_v47  ;;  %v930_v3 = vpop.permute.xlu1 %929 }
 0x16e   : > { %v1077_v4 = vmul.f32 %v5183_v34, %v930_v3  ;;  %4175 = vmatprep.mubr.f32.mxu0 %v1714_v59  ;;  %vm1204_vm8 = vcmp.gt.f32.partialorder %v5930_v37, 0.5  ;;  %v1588_v62 = vmul.f32 0.01, %v5930_v37  ;;  %vm1524_vm15 = vcmp.le.f32.partialorder %v5930_v37, 0.0 }
 0x16f   : > { %4482 = vset.pattern.permute.xlu1 %v4889_v0  ;;  %v1268_v15 = vsel %vm1204_vm8, %v5930_v37, 1.0 }
 0x170   : > { %v4559_v22 = vpop.eup %4558  ;;  %v5942_v51 = vadd.f32 %v1077_v4, %v753_v38  ;;  %1017 = vperm.xlu1 %4482, %v315_v19   ;;  %4562 = vrcp.f32 %v1268_v15 }
 0x171   : > { %v1395_v8 = vmul.f32 0.25, %v4559_v22  ;;  %v4561_v61 = vpop.eup %4560  ;;  %v595_v22 = vpop.permute.xlu0 %594 }
 0x172   : > { %v520_v21 = vpop.permute.xlu1 %519  ;;  %vm1205_vm10 = vcmp.gt.f32.partialorder %v5942_v51, 0.5  ;;  %v1589_v28 = vmul.f32 0.01, %v5942_v51  ;;  %vm1525_vm1 = vcmp.le.f32.partialorder %v5942_v51, 0.0 }
 0x173   : > { %v1459_v49 = vsub.f32 1.0, %v1395_v8  ;;  %v1269_v52 = vsel %vm1205_vm10, %v5942_v51, 1.0  ;;  %v685_v27 = vmul.f32 %v5178_v33, %v520_v21 }
 0x174   : > { %4483 = vset.pattern.permute.xlu1 %v4890_v7  ;;  %4564 = vrcp.f32 %v1269_v52 }
 0x175   : > { %624 = vperm.xlu1 %4483, %v316_v14   ;;  %v1651_v5 = vsel %vm1203_vm4, %v1459_v49, %v5894_v36  ;;  %v755_v31 = vadd.f32 %v5734_v29, %v685_v27  ;;  %v1398_v36 = vmul.f32 0.25, %v4561_v61 }
 0x176   : > { %v1715_v32 = vsel %vm1523_vm12, %v1587_v55, %v1651_v5 }
 0x177   : > { %4176 = vmatmul.mubr.f32.gmra.mrb[34].mxu0 %v1715_v32  ;;  %v938_v20 = vpop.permute.xlu1 %937  ;;  %v1462_v30 = vsub.f32 1.0, %v1398_v36 }
 0x178   : > { %v1079_v12 = vmul.f32 %v5183_v34, %v938_v20 }
 0x179   : > { %4484 = vset.pattern.permute.xlu1 %v4889_v0 }
 0x17a   : > { %v4563_v41 = vpop.eup %4562  ;;  %v5969_v39 = vadd.f32 %v1079_v12, %v755_v31  ;;  %1021 = vperm.xlu1 %4484, %v316_v14  }
 0x17b   : > { %v1396_v13 = vmul.f32 0.25, %v4563_v41 }
 0x17c   : > { %v525_v40 = vpop.permute.xlu1 %524  ;;  %vm1207_vm13 = vcmp.gt.f32.partialorder %v5969_v39, 0.5  ;;  %v1591_v35 = vmul.f32 0.01, %v5969_v39  ;;  %vm1527_vm2 = vcmp.le.f32.partialorder %v5969_v39, 0.0 }
 0x17d   : > { %v1460_v11 = vsub.f32 1.0, %v1396_v13  ;;  %v1271_v16 = vsel %vm1207_vm13, %v5969_v39, 1.0  ;;  %v686_v17 = vmul.f32 %v5178_v33, %v525_v40 }
 0x17e   : > { %v4565_v24 = vpop.eup %4564  ;;  %1025 = vperm.xlu1 %4484, %v4876_v44   ;;  %4566 = vrcp.f32 %v1271_v16 }
 0x17f   : > { %v1652_v10 = vsel %vm1204_vm8, %v1460_v11, %v5930_v37  ;;  %v1397_v19 = vmul.f32 0.25, %v4565_v24  ;;  %v756_v42 = vadd.f32 %v5734_v29, %v686_v17  ;;  %v1654_v37 = vsel %vm1206_vm5, %v1462_v30, %v5891_v6 }
 0x180   : > { %v1716_v60 = vsel %vm1524_vm15, %v1588_v62, %v1652_v10  ;;  %v1718_v15 = vsel %vm1526_vm0, %v1590_v48, %v1654_v37  ;;  %4568 = vrcp.f32 %v1274_v26 }
 0x181   : > { %4178 = vmatprep.mubr.f32.mxu0 %v1716_v60  ;;  %v942_v1 = vpop.permute.xlu1 %941  ;;  %v1461_v56 = vsub.f32 1.0, %v1397_v19  ;;  %v691_v60 = vmul.f32 %v5178_v33, %v5910_v23 }
 0x182   : > { %v1080_v38 = vmul.f32 %v5183_v34, %v942_v1  ;;  %4485 = vset.pattern.permute.xlu1 %v4890_v7  ;;  %v757_v7 = vadd.f32 %v5734_v29, %v687_v63 }
 0x183   : > { %639 = vperm.xlu1 %4485, %v319_v25   ;;  %v1653_v47 = vsel %vm1205_vm10, %v1461_v56, %v5942_v51  ;;  %v692_v51 = vmul.f32 %v5178_v33, %v5934_v50  ;;  %v700_v56 = vmul.f32 %v5178_v33, %v595_v22 }
 0x184   : > { %v1144_v3 = vadd.f32 %v1080_v38, %v756_v42  ;;  %v1717_v59 = vsel %vm1525_vm1, %v1589_v28, %v1653_v47  ;;  %v1594_v42 = vmul.f32 0.01, %v5964_v54 }
 0x185   : > { %4179 = vmatmul.mubr.f32.gmra.mrb[36].mxu0 %v1717_v59  ;;  %v946_v4 = vpop.permute.xlu1 %945  ;;  %v762_v50 = vadd.f32 %v5734_v29, %v692_v51  ;;  %v1090_v59 = vmul.f32 %v5183_v34, %v5213_v53  ;;  %v770_v51 = vadd.f32 %v5734_v29, %v700_v56 }
 0x186   : > { %v1081_v45 = vmul.f32 %v5183_v34, %v946_v4  ;;  %4181 = vmatprep.mubr.f32.mxu0 %v1718_v15  ;;  %vm1208_vm9 = vcmp.gt.f32.partialorder %v1144_v3, 0.5  ;;  %v1592_v30 = vmul.f32 0.01, %v1144_v3  ;;  %vm1528_vm6 = vcmp.le.f32.partialorder %v1144_v3, 0.0 }
 0x187   : > { %4487 = vset.pattern.permute.xlu1 %v4889_v0  ;;  %v1272_v6 = vsel %vm1208_vm9, %v1144_v3, 1.0  ;;  %v6016_v0 = vpop.permute.xlu0 %609  ;;  %v6029_v41 = vadd.f32 %v1086_v57, %v762_v50 }
 0x188   : > { %v4567_v8 = vpop.eup %4566  ;;  %v6008_v21 = vadd.f32 %v1081_v45, %v757_v7  ;;  %1033 = vperm.xlu1 %4487, %v319_v25   ;;  %4570 = vrcp.f32 %v1272_v6  ;;  %v696_v25 = vmul.f32 %v5178_v33, %v5967_v43  ;;  %v1094_v45 = vmul.f32 %v5183_v34, %v5227_v58 }
 0x189   : > { %v1399_v14 = vmul.f32 0.25, %v4567_v8  ;;  %vm1214_vm5 = vcmp.gt.f32.partialorder %v6029_v41, 0.5 }
 0x18a   : > { %v540_v49 = vpop.permute.xlu1 %539  ;;  %vm1209_vm11 = vcmp.gt.f32.partialorder %v6008_v21, 0.5  ;;  %v4569_v61 = vpop.eup %4568  ;;  %v1278_v38 = vsel %vm1214_vm5, %v6029_v41, 1.0  ;;  %v1593_v43 = vmul.f32 0.01, %v6008_v21  ;;  %vm1529_vm3 = vcmp.le.f32.partialorder %v6008_v21, 0.0 }
 0x18b   : > { %v1463_v52 = vsub.f32 1.0, %v1399_v14  ;;  %v1273_v27 = vsel %vm1209_vm11, %v6008_v21, 1.0  ;;  %v689_v55 = vmul.f32 %v5178_v33, %v540_v49  ;;  %v615_v46 = vpop.permute.xlu0 %614  ;;  %v1402_v40 = vmul.f32 0.25, %v4569_v61 }
 0x18c   : > { %4572 = vrcp.f32 %v1273_v27  ;;  %v704_v47 = vmul.f32 %v5178_v33, %v615_v46  ;;  %v766_v4 = vadd.f32 %v5734_v29, %v696_v25  ;;  %v1098_v27 = vmul.f32 %v5183_v34, %v5238_v9 }
 0x18d   : > { %v1655_v5 = vsel %vm1207_vm13, %v1463_v52, %v5969_v39  ;;  %v759_v31 = vadd.f32 %v5734_v29, %v689_v55  ;;  %v1466_v10 = vsub.f32 1.0, %v1402_v40  ;;  %v6087_v57 = vadd.f32 %v1094_v45, %v770_v51 }
 0x18e   : > { %v1719_v32 = vsel %vm1527_vm2, %v1591_v35, %v1655_v5  ;;  %v774_v14 = vadd.f32 %v5734_v29, %v704_v47  ;;  %v6080_v52 = vadd.f32 %v1090_v59, %v766_v4  ;;  %v695_v47 = vmul.f32 %v5178_v33, %v5950_v18 }
 0x18f   : > { %4182 = vmatmul.mubr.f32.gmra.mrb[38].mxu0 %v1719_v32  ;;  %v954_v20 = vpop.permute.xlu1 %953  ;;  %v6038_v44 = vpop.permute.xlu0 %629  ;;  %v1658_v37 = vsel %vm1210_vm14, %v1466_v10, %v5964_v54  ;;  %vm1222_vm14 = vcmp.gt.f32.partialorder %v6087_v57, 0.5  ;;  %v1598_v4 = vmul.f32 0.01, %v6029_v41 }
 0x190   : > { %v1083_v12 = vmul.f32 %v5183_v34, %v954_v20  ;;  %v1722_v8 = vsel %vm1530_vm7, %v1594_v42, %v1658_v37  ;;  %v6090_v32 = vadd.f32 %v1098_v27, %v774_v14  ;;  %vm1218_vm12 = vcmp.gt.f32.partialorder %v6080_v52, 0.5 }
 0x191   : > { %vm1538_vm7 = vcmp.le.f32.partialorder %v6080_v52, 0.0 }
 0x192   : > { %v4571_v36 = vpop.eup %4570  ;;  %v6031_v13 = vadd.f32 %v1083_v12, %v759_v31  ;;  %vm1226_vm15 = vcmp.gt.f32.partialorder %v6090_v32, 0.5 }
 0x193   : > { %v1400_v11 = vmul.f32 0.25, %v4571_v36  ;;  %v635_v15 = vpop.permute.xlu0 %634 }
 0x194   : > { %v545_v16 = vpop.permute.xlu1 %544  ;;  %vm1211_vm4 = vcmp.gt.f32.partialorder %v6031_v13, 0.5  ;;  %v708_v55 = vmul.f32 %v5178_v33, %v635_v15  ;;  %v1595_v9 = vmul.f32 0.01, %v6031_v13  ;;  %vm1531_vm13 = vcmp.le.f32.partialorder %v6031_v13, 0.0 }
 0x195   : > { %v1464_v39 = vsub.f32 1.0, %v1400_v11  ;;  %v1275_v24 = vsel %vm1211_vm4, %v6031_v13, 1.0  ;;  %v690_v62 = vmul.f32 %v5178_v33, %v545_v16 }
 0x196   : > { %v4573_v17 = vpop.eup %4572  ;;  %4574 = vrcp.f32 %v1275_v24  ;;  %v778_v12 = vadd.f32 %v5734_v29, %v708_v55 }
 0x197   : > { %v1656_v19 = vsel %vm1208_vm9, %v1464_v39, %v1144_v3  ;;  %v1401_v63 = vmul.f32 0.25, %v4573_v17  ;;  %v760_v28 = vadd.f32 %v5734_v29, %v690_v62  ;;  %4576 = vrcp.f32 %v1278_v38  ;;  %v1030_v50 = vpop.permute.xlu0 %1029 }
 0x198   : > { %v1720_v1 = vsel %vm1528_vm6, %v1592_v30, %v1656_v19  ;;  %v1102_v36 = vmul.f32 %v5183_v34, %v1030_v50  ;;  %v1282_v17 = vsel %vm1218_vm12, %v6080_v52, 1.0  ;;  %v699_v50 = vmul.f32 %v5178_v33, %v5985_v2 }
 0x199   : > { %4184 = vmatprep.mubr.f32.mxu0 %v1720_v1  ;;  %v958_v48 = vpop.permute.xlu1 %957  ;;  %v1465_v26 = vsub.f32 1.0, %v1401_v63  ;;  %v1290_v63 = vsel %vm1226_vm15, %v6090_v32, 1.0  ;;  %v703_v2 = vmul.f32 %v5178_v33, %v6016_v0 }
 0x19a   : > { %v1084_v23 = vmul.f32 %v5183_v34, %v958_v48  ;;  %v6111_v62 = vadd.f32 %v1102_v36, %v778_v12 }
 0x19b   : > { %v1657_v3 = vsel %vm1209_vm11, %v1465_v26, %v6008_v21  ;;  %v761_v21 = vadd.f32 %v5734_v29, %v691_v60  ;;  %vm1534_vm11 = vcmp.le.f32.partialorder %v6029_v41, 0.0 }
 0x19c   : > { %v6066_v7 = vadd.f32 %v1084_v23, %v760_v28  ;;  %v1721_v22 = vsel %vm1529_vm3, %v1593_v43, %v1657_v3  ;;  %vm1230_vm1 = vcmp.gt.f32.partialorder %v6111_v62, 0.5 }
 0x19d   : > { %4185 = vmatmul.mubr.f32.gmra.mrb[40].mxu0 %v1721_v22  ;;  %v962_v6 = vpop.permute.xlu1 %961  ;;  %v1294_v37 = vsel %vm1230_vm1, %v6111_v62, 1.0 }
 0x19e   : > { %v1085_v53 = vmul.f32 %v5183_v34, %v962_v6  ;;  %4187 = vmatprep.mubr.f32.mxu0 %v1722_v8  ;;  %vm1212_vm8 = vcmp.gt.f32.partialorder %v6066_v7, 0.5  ;;  %v1596_v42 = vmul.f32 0.01, %v6066_v7  ;;  %vm1532_vm9 = vcmp.le.f32.partialorder %v6066_v7, 0.0 }
 0x19f   : > { %v1276_v58 = vsel %vm1212_vm8, %v6066_v7, 1.0 }
 0x1a0   : > { %v4575_v49 = vpop.eup %4574  ;;  %v6082_v54 = vadd.f32 %v1085_v53, %v761_v21  ;;  %4578 = vrcp.f32 %v1276_v58  ;;  %v765_v58 = vadd.f32 %v5734_v29, %v695_v47 }
 0x1a1   : > { %v1403_v35 = vmul.f32 0.25, %v4575_v49  ;;  %v4577_v11 = vpop.eup %4576 }
 0x1a2   : > { %v560_v5 = vpop.permute.xlu1 %559  ;;  %vm1213_vm10 = vcmp.gt.f32.partialorder %v6082_v54, 0.5  ;;  %v1406_v19 = vmul.f32 0.25, %v4577_v11  ;;  %v1597_v22 = vmul.f32 0.01, %v6082_v54  ;;  %vm1533_vm2 = vcmp.le.f32.partialorder %v6082_v54, 0.0 }
 0x1a3   : > { %v1467_v61 = vsub.f32 1.0, %v1403_v35  ;;  %v1277_v20 = vsel %vm1213_vm10, %v6082_v54, 1.0  ;;  %v693_v31 = vmul.f32 %v5178_v33, %v560_v5  ;;  %v6172_v11 = vld [vmem:[%s7871_s5] ss:$0 sm:$0xff] }
 0x1a4   : > { %4580 = vrcp.f32 %v1277_v20  ;;  %v1470_v38 = vsub.f32 1.0, %v1406_v19 }
 0x1a5   : > { %v1659_v46 = vsel %vm1211_vm4, %v1467_v61, %v6031_v13  ;;  %v763_v39 = vadd.f32 %v5734_v29, %v693_v31  ;;  %v1286_v13 = vsel %vm1222_vm14, %v6087_v57, 1.0  ;;  %4582 = vrcp.f32 %v1282_v17 }
 0x1a6   : > { %v1723_v40 = vsel %vm1531_vm13, %v1595_v9, %v1659_v46  ;;  %4584 = vrcp.f32 %v1286_v13  ;;  %v1662_v45 = vsel %vm1214_vm5, %v1470_v38, %v6029_v41  ;;  %v6181_v13 = vadd.f32 %v5734_v29, %v699_v50  ;;  %v6248_v50 = vld [vmem:[%s7869_s3] ss:$0 sm:$0xff] }
 0x1a7   : > { %4188 = vmatmul.mubr.f32.gmra.mrb[42].mxu0 %v1723_v40  ;;  %v970_v16 = vpop.permute.xlu1 %969  ;;  %4586 = vrcp.f32 %v1290_v63  ;;  %v1726_v53 = vsel %vm1534_vm11, %v1598_v4, %v1662_v45  ;;  %vm1546_vm13 = vcmp.le.f32.partialorder %v6090_v32, 0.0 }
 0x1a8   : > { %v1087_v24 = vmul.f32 %v5183_v34, %v970_v16 }
 0x1aa   : > { %v4579_v30 = vpop.eup %4578  ;;  %v6116_v10 = vadd.f32 %v1087_v24, %v763_v39  ;;  %v707_v39 = vmul.f32 %v5178_v33, %v6038_v44  ;;  %v6191_v44 = vadd.f32 %v5734_v29, %v703_v2 }
 0x1ab   : > { %v1404_v60 = vmul.f32 0.25, %v4579_v30 }
 0x1ac   : > { %v565_v25 = vpop.permute.xlu1 %564  ;;  %vm1215_vm0 = vcmp.gt.f32.partialorder %v6116_v10, 0.5  ;;  %v1599_v46 = vmul.f32 0.01, %v6116_v10  ;;  %vm1535_vm6 = vcmp.le.f32.partialorder %v6116_v10, 0.0 }
 0x1ad   : > { %v1468_v1 = vsub.f32 1.0, %v1404_v60  ;;  %v1279_v56 = vsel %vm1215_vm0, %v6116_v10, 1.0  ;;  %v694_v26 = vmul.f32 %v5178_v33, %v565_v25 }
 0x1ae   : > { %v4581_v48 = vpop.eup %4580  ;;  %4588 = vrcp.f32 %v1279_v56 }
 0x1af   : > { %v1660_v28 = vsel %vm1212_vm8, %v1468_v1, %v6066_v7  ;;  %v1405_v23 = vmul.f32 0.25, %v4581_v48  ;;  %v764_v15 = vadd.f32 %v5734_v29, %v694_v26  ;;  %4590 = vrcp.f32 %v1294_v37  ;;  %v4583_v21 = vpop.eup %4582 }
 0x1b0   : > { %v1724_v43 = vsel %vm1532_vm9, %v1596_v42, %v1660_v28  ;;  %v4585_v14 = vpop.eup %4584  ;;  %v1410_v61 = vmul.f32 0.25, %v4583_v21  ;;  %v1602_v26 = vmul.f32 0.01, %v6080_v52  ;;  %v6198_v42 = vmul.f32 0.01, %v6087_v57 }
 0x1b1   : > { %4190 = vmatprep.mubr.f32.mxu0 %v1724_v43  ;;  %v974_v3 = vpop.permute.xlu1 %973  ;;  %v1469_v59 = vsub.f32 1.0, %v1405_v23  ;;  %v4587_v41 = vpop.eup %4586  ;;  %v1414_v9 = vmul.f32 0.25, %v4585_v14  ;;  %v6201_v28 = vadd.f32 %v5734_v29, %v707_v39  ;;  %v1610_v37 = vmul.f32 0.01, %v6090_v32 }
 0x1b2   : > { %v1088_v7 = vmul.f32 %v5183_v34, %v974_v3  ;;  %v1418_v12 = vmul.f32 0.25, %v4587_v41  ;;  %v1474_v17 = vsub.f32 1.0, %v1410_v61 }
 0x1b3   : > { %v1661_v18 = vsel %vm1213_vm10, %v1469_v59, %v6082_v54  ;;  %v1478_v19 = vsub.f32 1.0, %v1414_v9 }
 0x1b4   : > { %v6149_v6 = vadd.f32 %v1088_v7, %v764_v15  ;;  %v1725_v8 = vsel %vm1533_vm2, %v1597_v22, %v1661_v18  ;;  %v1482_v63 = vsub.f32 1.0, %v1418_v12  ;;  %v1666_v43 = vsel %vm1218_vm12, %v1474_v17, %v6080_v52 }
 0x1b5   : > { %4191 = vmatmul.mubr.f32.gmra.mrb[44].mxu0 %v1725_v8  ;;  %v978_v51 = vpop.permute.xlu1 %977  ;;  %vm1542_vm12 = vcmp.le.f32.partialorder %v6087_v57, 0.0 }
 0x1b6   : > { %v1089_v49 = vmul.f32 %v5183_v34, %v978_v51  ;;  %4193 = vmatprep.mubr.f32.mxu0 %v1726_v53  ;;  %vm1216_vm4 = vcmp.gt.f32.partialorder %v6149_v6, 0.5  ;;  %v1674_v15 = vsel %vm1226_vm15, %v1482_v63, %v6090_v32  ;;  %v1600_v8 = vmul.f32 0.01, %v6149_v6 }
 0x1b7   : > { %v1280_v54 = vsel %vm1216_vm4, %v6149_v6, 1.0 }
 0x1b8   : > { %v4589_v27 = vpop.eup %4588  ;;  %v6157_v55 = vadd.f32 %v1089_v49, %v765_v58  ;;  %4592 = vrcp.f32 %v1280_v54 }
 0x1b9   : > { %v1407_v35 = vmul.f32 0.25, %v4589_v27  ;;  %v4591_v40 = vpop.eup %4590 }
 0x1ba   : > { %v580_v5 = vpop.permute.xlu1 %579  ;;  %vm1217_vm5 = vcmp.gt.f32.partialorder %v6157_v55, 0.5  ;;  %v6188_v56 = vmul.f32 0.25, %v4591_v40  ;;  %vm1537_vm9 = vcmp.le.f32.partialorder %v6157_v55, 0.0  ;;  %v1730_v40 = vsel %vm1538_vm7, %v1602_v26, %v1666_v43 }
 0x1bb   : > { %v1471_v20 = vsub.f32 1.0, %v1407_v35  ;;  %v1281_v31 = vsel %vm1217_vm5, %v6157_v55, 1.0  ;;  %v697_v36 = vmul.f32 %v5178_v33, %v580_v5  ;;  %v1601_v35 = vmul.f32 0.01, %v6157_v55 }
 0x1bc   : > { %4594 = vrcp.f32 %v1281_v31  ;;  %v1486_v7 = vsub.f32 1.0, %v6188_v56 }
 0x1bd   : > { %v1663_v16 = vsel %vm1215_vm0, %v1471_v20, %v6116_v10  ;;  %v767_v60 = vadd.f32 %v5734_v29, %v697_v36  ;;  %v1670_v29 = vsel %vm1222_vm14, %v1478_v19, %v6087_v57  ;;  %vm1536_vm14 = vcmp.le.f32.partialorder %v6149_v6, 0.0 }
 0x1be   : > { %v1727_v24 = vsel %vm1535_vm6, %v1599_v46, %v1663_v16  ;;  %v6280_v52 = vsel %vm1542_vm12, %v6198_v42, %v1670_v29  ;;  %v6287_v19 = vmul.f32 0.01, %v6111_v62  ;;  %v6296_v57 = vsel %vm1230_vm1, %v1486_v7, %v6111_v62 }
 0x1bf   : > { %v4126_v0 = vpop.f32.mrb[0].mxu0  ;;  %4194 = vmatmul.mubr.f32.gmra.mrb[46].mxu0 %v1727_v24  ;;  %v986_v30 = vpop.permute.xlu1 %985 }
 0x1c0   : > { %v6185_v25 = vadd.f32 %v4126_v0, %v6172_v11  ;;  %v1091_v10 = vmul.f32 %v5183_v34, %v986_v30  ;;  %v1833_v1 = vpop.f32.mrb[1].mxu0  ;;  %v6284_v30 = vsel %vm1546_vm13, %v1610_v37, %v1674_v15 }
 0x1c1   : > { %v6194_v48 = vadd.f32 %v6172_v11, %v1833_v1 }
 0x1c2   : > { %v4593_v38 = vpop.eup %4592  ;;  %v6203_v23 = vadd.f32 %v1091_v10, %v767_v60  ;;  %vm2153_vm8 = vcmp.gt.f32.partialorder %v6185_v25, 0.5  ;;  %v2537_v32 = vmul.f32 0.01, %v6185_v25 }
 0x1c3   : > { %v1408_v47 = vmul.f32 0.25, %v4593_v38  ;;  %vm2152_vm3 = vcmp.gt.f32.partialorder %v6194_v48, 0.5  ;;  %v2217_v58 = vsel %vm2153_vm8, %v6185_v25, 1.0  ;;  %vm2472_vm6 = vcmp.le.f32.partialorder %v6194_v48, 0.0 }
 0x1c4   : > { %v4129_v3 = vpop.f32.mrb[2].mxu0  ;;  %v585_v59 = vpop.permute.xlu1 %584  ;;  %v2216_v4 = vsel %vm2152_vm3, %v6194_v48, 1.0  ;;  %vm1219_vm10 = vcmp.gt.f32.partialorder %v6203_v23, 0.5  ;;  %v2536_v37 = vmul.f32 0.01, %v6194_v48  ;;  %vm1539_vm1 = vcmp.le.f32.partialorder %v6203_v23, 0.0 }
 0x1c5   : > { %v698_v22 = vmul.f32 %v5178_v33, %v585_v59  ;;  %v1843_v45 = vpop.f32.mrb[3].mxu0  ;;  %v1472_v18 = vsub.f32 1.0, %v1408_v47  ;;  %4596 = vrcp.f32 %v2216_v4  ;;  %v6228_v51 = vadd.f32 %v4129_v3, %v6172_v11 }
 0x1c6   : > { %v4595_v21 = vpop.eup %4594  ;;  %v6231_v53 = vadd.f32 %v6172_v11, %v1843_v45  ;;  %v1283_v14 = vsel %vm1219_vm10, %v6203_v23, 1.0  ;;  %v1603_v15 = vmul.f32 0.01, %v6203_v23 }
 0x1c7   : > { %v1664_v49 = vsel %vm1216_vm4, %v1472_v18, %v6149_v6  ;;  %v1409_v41 = vmul.f32 0.25, %v4595_v21  ;;  %4598 = vrcp.f32 %v1283_v14  ;;  %v768_v5 = vadd.f32 %v6248_v50, %v698_v22 }
 0x1c8   : > { %v4132_v54 = vpop.f32.mrb[4].mxu0  ;;  %v1728_v27 = vsel %vm1536_vm14, %v1600_v8, %v1664_v49  ;;  %4600 = vrcp.f32 %v2217_v58  ;;  %vm2154_vm15 = vcmp.gt.f32.partialorder %v6231_v53, 0.5  ;;  %vm2155_vm0 = vcmp.gt.f32.partialorder %v6228_v51, 0.5 }
 0x1c9   : > { %v6252_v61 = vadd.f32 %v4132_v54, %v6172_v11  ;;  %v1853_v6 = vpop.f32.mrb[5].mxu0  ;;  %4196 = vmatprep.mubr.f32.mxu0 %v1728_v27  ;;  %v990_v20 = vpop.permute.xlu1 %989  ;;  %v1473_v31 = vsub.f32 1.0, %v1409_v41  ;;  %v2218_v9 = vsel %vm2154_vm15, %v6231_v53, 1.0  ;;  %v2219_v2 = vsel %vm2155_vm0, %v6228_v51, 1.0 }
 0x1ca   : > { %v6258_v12 = vadd.f32 %v6172_v11, %v1853_v6  ;;  %v1092_v36 = vmul.f32 %v5183_v34, %v990_v20  ;;  %4602 = vrcp.f32 %v2218_v9  ;;  %vm2473_vm4 = vcmp.le.f32.partialorder %v6185_v25, 0.0 }
 0x1cb   : > { %v1665_v46 = vsel %vm1217_vm5, %v1473_v31, %v6157_v55  ;;  %4604 = vrcp.f32 %v2219_v2  ;;  %vm2157_vm2 = vcmp.gt.f32.partialorder %v6252_v61, 0.5  ;;  %vm2474_vm12 = vcmp.le.f32.partialorder %v6231_v53, 0.0 }
 0x1cc   : > { %v6271_v16 = vadd.f32 %v1092_v36, %v768_v5  ;;  %v4135_v39 = vpop.f32.mrb[6].mxu0  ;;  %v1729_v24 = vsel %vm1537_vm9, %v1601_v35, %v1665_v46  ;;  %vm2156_vm11 = vcmp.gt.f32.partialorder %v6258_v12, 0.5  ;;  %v2221_v10 = vsel %vm2157_vm2, %v6252_v61, 1.0 }
 0x1cd   : > { %v1863_v17 = vpop.f32.mrb[7].mxu0  ;;  %4197 = vmatmul.mubr.f32.gmra.mrb[48].mxu0 %v1729_v24  ;;  %v994_v0 = vpop.permute.xlu1 %993  ;;  %v2220_v55 = vsel %vm2156_vm11, %v6258_v12, 1.0  ;;  %v6312_v29 = vadd.f32 %v4135_v39, %v6172_v11  ;;  %v2538_v21 = vmul.f32 0.01, %v6231_v53  ;;  %v2539_v5 = vmul.f32 0.01, %v6228_v51 }
 0x1ce   : > { %v6290_v63 = vadd.f32 %v6172_v11, %v1863_v17  ;;  %4199 = vmatprep.mubr.f32.mxu0 %v1730_v40  ;;  %4606 = vrcp.f32 %v2220_v55  ;;  %vm1220_vm5 = vcmp.gt.f32.partialorder %v6271_v16, 0.5  ;;  %v1093_v38 = vmul.f32 %v5183_v34, %v994_v0 }
 0x1cf   : > { %v4597_v60 = vpop.eup %4596  ;;  %4608 = vrcp.f32 %v2221_v10  ;;  %v1284_v26 = vsel %vm1220_vm5, %v6271_v16, 1.0  ;;  %vm2159_vm13 = vcmp.gt.f32.partialorder %v6312_v29, 0.5  ;;  %vm2476_vm14 = vcmp.le.f32.partialorder %v6258_v12, 0.0 }
 0x1d0   : > { %v4138_v1 = vpop.f32.mrb[8].mxu0  ;;  %v2344_v56 = vmul.f32 0.25, %v4597_v60  ;;  %4610 = vrcp.f32 %v1284_v26  ;;  %vm2158_vm7 = vcmp.gt.f32.partialorder %v6290_v63, 0.5  ;;  %v6327_v14 = vadd.f32 %v1093_v38, %v6181_v13 }
 0x1d1   : > { %v4599_v42 = vpop.eup %4598  ;;  %v1873_v43 = vpop.f32.mrb[9].mxu0  ;;  %v2222_v22 = vsel %vm2158_vm7, %v6290_v63, 1.0  ;;  %v2540_v40 = vmul.f32 0.01, %v6258_v12  ;;  %v2223_v39 = vsel %vm2159_vm13, %v6312_v29, 1.0 }
 0x1d2   : > { %v4601_v47 = vpop.eup %4600  ;;  %v6314_v3 = vpop.permute.xlu1 %599  ;;  %v2408_v59 = vsub.f32 1.0, %v2344_v56  ;;  %v1411_v4 = vmul.f32 0.25, %v4599_v42  ;;  %4612 = vrcp.f32 %v2222_v22  ;;  %v2541_v55 = vmul.f32 0.01, %v6252_v61 }
 0x1d3   : > { %v2345_v7 = vmul.f32 0.25, %v4601_v47  ;;  %4614 = vrcp.f32 %v2223_v39  ;;  %v6366_v38 = vadd.f32 %v6172_v11, %v1873_v43  ;;  %v701_v43 = vmul.f32 %v5178_v33, %v6314_v3 }
 0x1d4   : > { %v4603_v45 = vpop.eup %4602  ;;  %v2600_v18 = vsel %vm2152_vm3, %v2408_v59, %v6194_v48  ;;  %v1475_v8 = vsub.f32 1.0, %v1411_v4  ;;  %vm2475_vm3 = vcmp.le.f32.partialorder %v6228_v51, 0.0 }
 0x1d5   : > { %v2664_v58 = vsel %vm2472_vm6, %v2536_v37, %v2600_v18  ;;  %v2409_v49 = vsub.f32 1.0, %v2345_v7  ;;  %v2346_v41 = vmul.f32 0.25, %v4603_v45  ;;  %v4605_v54 = vpop.eup %4604  ;;  %v6331_v27 = vpop.f32.mrb[10].mxu0  ;;  %vm2160_vm9 = vcmp.gt.f32.partialorder %v6366_v38, 0.5 }
 0x1d6   : > { %4252 = vmatprep.mubr.f32.mxu1 %v2664_v58  ;;  %v1667_v35 = vsel %vm1219_vm10, %v1475_v8, %v6203_v23  ;;  %v1883_v13 = vpop.f32.mrb[11].mxu0  ;;  %v2347_v46 = vmul.f32 0.25, %v4605_v54  ;;  %vm2477_vm10 = vcmp.le.f32.partialorder %v6252_v61, 0.0  ;;  %v2542_v58 = vmul.f32 0.01, %v6290_v63 }
 0x1d7   : > { %v1731_v48 = vsel %vm1539_vm1, %v1603_v15, %v1667_v35  ;;  %v2601_v6 = vsel %vm2153_vm8, %v2409_v49, %v6185_v25  ;;  %v1002_v20 = vpop.permute.xlu1 %1001  ;;  %v2410_v31 = vsub.f32 1.0, %v2346_v41  ;;  %vm1221_vm8 = vcmp.gt.f32.partialorder %v6327_v14, 0.5 }
 0x1d8   : > { %v4607_v9 = vpop.eup %4606  ;;  %4200 = vmatmul.mubr.f32.gmra.mrb[50].mxu0 %v1731_v48  ;;  %v2665_v36 = vsel %vm2473_vm4, %v2537_v32, %v2601_v6  ;;  %v2411_v0 = vsub.f32 1.0, %v2347_v46  ;;  %v6360_v32 = vadd.f32 %v4138_v1, %v6172_v11  ;;  %v1285_v42 = vsel %vm1221_vm8, %v6327_v14, 1.0 }
 0x1d9   : > { %4253 = vmatmul.mubr.f32.vlgmr.msra.gmra.mrb[0].mxu1 %v2665_v36  ;;  %v2602_v23 = vsel %vm2154_vm15, %v2410_v31, %v6231_v53  ;;  %v2348_v2 = vmul.f32 0.25, %v4607_v9  ;;  %v4609_v24 = vpop.eup %4608  ;;  %v4144_v25 = vpop.f32.mrb[12].mxu0  ;;  %4616 = vrcp.f32 %v1285_v42  ;;  %vm1540_vm15 = vcmp.le.f32.partialorder %v6271_v16, 0.0 }
 0x1da   : > { %v2666_v17 = vsel %vm2474_vm12, %v2538_v21, %v2602_v23  ;;  %v4611_v60 = vpop.eup %4610  ;;  %v1893_v10 = vpop.f32.mrb[13].mxu0  ;;  %v2349_v26 = vmul.f32 0.25, %v4609_v24  ;;  %v2603_v53 = vsel %vm2155_vm0, %v2411_v0, %v6228_v51  ;;  %v1604_v51 = vmul.f32 0.01, %v6271_v16 }
 0x1db   : > { %4255 = vmatprep.mubr.f32.mxu1 %v2666_v17  ;;  %v2412_v56 = vsub.f32 1.0, %v2348_v2  ;;  %v1412_v47 = vmul.f32 0.25, %v4611_v60  ;;  %v2667_v1 = vsel %vm2475_vm3, %v2539_v5, %v2603_v53  ;;  %vm2478_vm0 = vcmp.le.f32.partialorder %v6290_v63, 0.0 }
 0x1dc   : > { %v605_v37 = vpop.permute.xlu1 %604  ;;  %v2413_v4 = vsub.f32 1.0, %v2349_v26  ;;  %v4613_v15 = vpop.eup %4612  ;;  %v6388_v3 = vadd.f32 %v6172_v11, %v1883_v13  ;;  %v2224_v13 = vsel %vm2160_vm9, %v6366_v38, 1.0  ;;  %v771_v48 = vadd.f32 %v6248_v50, %v701_v43 }
 0x1dd   : > { %v2604_v59 = vsel %vm2156_vm11, %v2412_v56, %v6258_v12  ;;  %v4147_v7 = vpop.f32.mrb[14].mxu0  ;;  %4256 = vmatmul.mubr.f32.gmra.mrb[2].mxu1 %v2667_v1  ;;  %v1476_v45 = vsub.f32 1.0, %v1412_v47  ;;  %v2350_v21 = vmul.f32 0.25, %v4613_v15  ;;  %v1095_v12 = vmul.f32 %v5183_v34, %v1002_v20  ;;  %v4615_v9 = vpop.eup %4614 }
 0x1de   : > { %v2668_v22 = vsel %vm2476_vm14, %v2540_v40, %v2604_v59  ;;  %v1903_v18 = vpop.f32.mrb[15].mxu0  ;;  %v2605_v8 = vsel %vm2157_vm2, %v2413_v4, %v6252_v61  ;;  %v6405_v6 = vadd.f32 %v6331_v27, %v6172_v11  ;;  %4618 = vrcp.f32 %v2224_v13 }
 0x1df   : > { %4258 = vmatprep.mubr.f32.mxu1 %v2668_v22  ;;  %v1668_v49 = vsel %vm1220_vm5, %v1476_v45, %v6271_v16  ;;  %v2669_v41 = vsel %vm2477_vm10, %v2541_v55, %v2605_v8  ;;  %v2414_v5 = vsub.f32 1.0, %v2350_v21  ;;  %vm2161_vm11 = vcmp.gt.f32.partialorder %v6360_v32, 0.5 }
 0x1e0   : > { %v1732_v54 = vsel %vm1540_vm15, %v1604_v51, %v1668_v49  ;;  %vm2479_vm2 = vcmp.le.f32.partialorder %v6312_v29, 0.0  ;;  %v2543_v31 = vmul.f32 0.01, %v6312_v29  ;;  %v2225_v27 = vsel %vm2161_vm11, %v6360_v32, 1.0 }
 0x1e1   : > { %v1006_v35 = vpop.permute.xlu1 %1005  ;;  %v4150_v20 = vpop.f32.mrb[16].mxu0  ;;  %4259 = vmatmul.mubr.f32.gmra.mrb[4].mxu1 %v2669_v41  ;;  %4202 = vmatprep.mubr.f32.mxu0 %v1732_v54  ;;  %v2606_v16 = vsel %vm2158_vm7, %v2414_v5, %v6290_v63  ;;  %v6416_v36 = vadd.f32 %v1095_v12, %v771_v48  ;;  %v702_v46 = vmul.f32 %v5178_v33, %v605_v37  ;;  %4620 = vrcp.f32 %v2225_v27 }
 0x1e2   : > { %v1913_v61 = vpop.f32.mrb[17].mxu0  ;;  %v2670_v40 = vsel %vm2478_vm0, %v2542_v58, %v2606_v16  ;;  %v6422_v23 = vadd.f32 %v4144_v25, %v6172_v11  ;;  %v6425_v2 = vadd.f32 %v6172_v11, %v1893_v10  ;;  %v2351_v39 = vmul.f32 0.25, %v4615_v9 }
 0x1e3   : > { %4261 = vmatprep.mubr.f32.mxu1 %v2670_v40  ;;  %vm2162_vm4 = vcmp.gt.f32.partialorder %v6388_v3, 0.5  ;;  %v4617_v17 = vpop.eup %4616  ;;  %vm1541_vm5 = vcmp.le.f32.partialorder %v6327_v14, 0.0  ;;  %v1605_v0 = vmul.f32 0.01, %v6327_v14  ;;  %vm2163_vm6 = vcmp.gt.f32.partialorder %v6405_v6, 0.5 }
 0x1e4   : > { %v2226_v63 = vsel %vm2162_vm4, %v6388_v3, 1.0  ;;  %v2415_v25 = vsub.f32 1.0, %v2351_v39  ;;  %v1413_v55 = vmul.f32 0.25, %v4617_v17  ;;  %v2227_v60 = vsel %vm2163_vm6, %v6405_v6, 1.0 }
 0x1e5   : > { %v1010_v24 = vpop.permute.xlu1 %1009  ;;  %4622 = vrcp.f32 %v2226_v63  ;;  %v6438_v10 = vadd.f32 %v4147_v7, %v6172_v11  ;;  %v772_v56 = vadd.f32 %v6248_v50, %v702_v46  ;;  %v6442_v26 = vadd.f32 %v6172_v11, %v1903_v18 }
 0x1e6   : > { %4624 = vrcp.f32 %v2227_v60  ;;  %v1096_v42 = vmul.f32 %v5183_v34, %v1006_v35  ;;  %v2607_v53 = vsel %vm2159_vm13, %v2415_v25, %v6312_v29  ;;  %v1477_v37 = vsub.f32 1.0, %v1413_v55 }
 0x1e7   : > { %vm2480_vm1 = vcmp.le.f32.partialorder %v6366_v38, 0.0  ;;  %vm1223_vm7 = vcmp.gt.f32.partialorder %v6416_v36, 0.5  ;;  %v2671_v47 = vsel %vm2479_vm2, %v2543_v31, %v2607_v53  ;;  %v2544_v1 = vmul.f32 0.01, %v6366_v38 }
 0x1e8   : > { %v1287_v4 = vsel %vm1223_vm7, %v6416_v36, 1.0  ;;  %vm2164_vm12 = vcmp.gt.f32.partialorder %v6425_v2, 0.5  ;;  %v6458_v15 = vadd.f32 %v4150_v20, %v6172_v11  ;;  %4262 = vmatmul.mubr.f32.gmra.mrb[6].mxu1 %v2671_v47  ;;  %v1669_v43 = vsel %vm1221_vm8, %v1477_v37, %v6327_v14  ;;  %v4619_v7 = vpop.eup %4618 }
 0x1e9   : > { %4626 = vrcp.f32 %v1287_v4  ;;  %v2228_v29 = vsel %vm2164_vm12, %v6425_v2, 1.0  ;;  %v1733_v22 = vsel %vm1541_vm5, %v1605_v0, %v1669_v43  ;;  %v1097_v45 = vmul.f32 %v5183_v34, %v1010_v24 }
 0x1ea   : > { %v620_v59 = vpop.permute.xlu1 %619  ;;  %vm2481_vm3 = vcmp.le.f32.partialorder %v6360_v32, 0.0  ;;  %v4153_v51 = vpop.f32.mrb[18].mxu0  ;;  %4628 = vrcp.f32 %v2228_v29  ;;  %v6471_v18 = vadd.f32 %v6172_v11, %v1913_v61  ;;  %v6473_v8 = vadd.f32 %v1096_v42, %v772_v56  ;;  %4203 = vmatmul.mubr.f32.gmra.mrb[52].mxu0 %v1733_v22 }
 0x1eb   : > { %v2352_v21 = vmul.f32 0.25, %v4619_v7  ;;  %v1923_v58 = vpop.f32.mrb[19].mxu0  ;;  %vm2165_vm13 = vcmp.gt.f32.partialorder %v6422_v23, 0.5  ;;  %v4621_v12 = vpop.eup %4620  ;;  %4205 = vmatprep.mubr.f32.mxu0 %v6280_v52  ;;  %v2545_v14 = vmul.f32 0.01, %v6360_v32  ;;  %vm2482_vm14 = vcmp.le.f32.partialorder %v6388_v3, 0.0 }
 0x1ec   : > { %v2546_v49 = vmul.f32 0.01, %v6388_v3  ;;  %v2229_v41 = vsel %vm2165_vm13, %v6422_v23, 1.0  ;;  %v2353_v35 = vmul.f32 0.25, %v4621_v12  ;;  %vm2166_vm10 = vcmp.gt.f32.partialorder %v6442_v26, 0.5 }
 0x1ed   : > { %v2416_v54 = vsub.f32 1.0, %v2352_v21  ;;  %4630 = vrcp.f32 %v2229_v41  ;;  %v6485_v13 = vadd.f32 %v1097_v45, %v6191_v44  ;;  %vm2483_vm8 = vcmp.le.f32.partialorder %v6405_v6, 0.0 }
 0x1ee   : > { %v2547_v52 = vmul.f32 0.01, %v6405_v6  ;;  %v2230_v48 = vsel %vm2166_vm10, %v6442_v26, 1.0  ;;  %v2417_v16 = vsub.f32 1.0, %v2353_v35  ;;  %vm2167_vm15 = vcmp.gt.f32.partialorder %v6438_v10, 0.5 }
 0x1ef   : > { %v1018_v5 = vpop.permute.xlu1 %1017  ;;  %v4623_v20 = vpop.eup %4622  ;;  %v2608_v61 = vsel %vm2160_vm9, %v2416_v54, %v6366_v38  ;;  %4632 = vrcp.f32 %v2230_v48  ;;  %v705_v27 = vmul.f32 %v5178_v33, %v620_v59  ;;  %vm1543_vm0 = vcmp.le.f32.partialorder %v6416_v36, 0.0 }
 0x1f0   : > { %v4625_v31 = vpop.eup %4624  ;;  %v2672_v44 = vsel %vm2480_vm1, %v2544_v1, %v2608_v61  ;;  %v2354_v9 = vmul.f32 0.25, %v4623_v20  ;;  %v2231_v46 = vsel %vm2167_vm15, %v6438_v10, 1.0  ;;  %v2609_v40 = vsel %vm2161_vm11, %v2417_v16, %v6360_v32 }
 0x1f1   : > { %4264 = vmatprep.mubr.f32.mxu1 %v2672_v44  ;;  %v2355_v39 = vmul.f32 0.25, %v4625_v31  ;;  %v1607_v24 = vmul.f32 0.01, %v6416_v36  ;;  %4634 = vrcp.f32 %v2231_v46  ;;  %v2673_v38 = vsel %vm2481_vm3, %v2545_v14, %v2609_v40 }
 0x1f2   : > { %v2418_v17 = vsub.f32 1.0, %v2354_v9  ;;  %vm2484_vm9 = vcmp.le.f32.partialorder %v6425_v2, 0.0  ;;  %vm2168_vm2 = vcmp.gt.f32.partialorder %v6471_v18, 0.5  ;;  %4265 = vmatmul.mubr.f32.gmra.mrb[8].mxu1 %v2673_v38  ;;  %v6512_v25 = vadd.f32 %v4153_v51, %v6172_v11 }
 0x1f3   : > { %v4627_v63 = vpop.eup %4626  ;;  %v2419_v55 = vsub.f32 1.0, %v2355_v39  ;;  %v2548_v60 = vmul.f32 0.01, %v6425_v2  ;;  %v2232_v56 = vsel %vm2168_vm2, %v6471_v18, 1.0  ;;  %v775_v42 = vadd.f32 %v6248_v50, %v705_v27 }
 0x1f4   : > { %v625_v0 = vpop.permute.xlu1 %624  ;;  %v4629_v32 = vpop.eup %4628  ;;  %v2610_v53 = vsel %vm2162_vm4, %v2418_v17, %v6388_v3  ;;  %v1415_v37 = vmul.f32 0.25, %v4627_v63  ;;  %4636 = vrcp.f32 %v2232_v56  ;;  %v6523_v47 = vadd.f32 %v6172_v11, %v1923_v58 }
 0x1f5   : > { %v2674_v1 = vsel %vm2482_vm14, %v2546_v49, %v2610_v53  ;;  %v2611_v59 = vsel %vm2163_vm6, %v2419_v55, %v6405_v6  ;;  %v2356_v4 = vmul.f32 0.25, %v4629_v32  ;;  %vm2485_vm11 = vcmp.le.f32.partialorder %v6422_v23, 0.0 }
 0x1f6   : > { %4267 = vmatprep.mubr.f32.mxu1 %v2674_v1  ;;  %v2675_v43 = vsel %vm2483_vm8, %v2547_v52, %v2611_v59  ;;  %v1479_v29 = vsub.f32 1.0, %v1415_v37  ;;  %vm2169_vm4 = vcmp.gt.f32.partialorder %v6458_v15, 0.5  ;;  %v1099_v3 = vmul.f32 %v5183_v34, %v1018_v5 }
 0x1f7   : > { %v4631_v7 = vpop.eup %4630  ;;  %4268 = vmatmul.mubr.f32.gmra.mrb[10].mxu1 %v2675_v43  ;;  %v2420_v22 = vsub.f32 1.0, %v2356_v4  ;;  %v2233_v51 = vsel %vm2169_vm4, %v6458_v15, 1.0  ;;  %vm1224_vm5 = vcmp.gt.f32.partialorder %v6473_v8, 0.5  ;;  %v2549_v12 = vmul.f32 0.01, %v6422_v23 }
 0x1f8   : > { %v4156_v45 = vpop.f32.mrb[20].mxu0  ;;  %v1671_v6 = vsel %vm1223_vm7, %v1479_v29, %v6416_v36  ;;  %v2357_v58 = vmul.f32 0.25, %v4631_v7  ;;  %4638 = vrcp.f32 %v2233_v51  ;;  %vm2486_vm6 = vcmp.le.f32.partialorder %v6442_v26, 0.0 }
 0x1f9   : > { %v1022_v21 = vpop.permute.xlu1 %1021  ;;  %v1933_v14 = vpop.f32.mrb[21].mxu0  ;;  %v1735_v41 = vsel %vm1543_vm0, %v1607_v24, %v1671_v6  ;;  %v2612_v54 = vsel %vm2164_vm12, %v2420_v22, %v6425_v2  ;;  %v1288_v35 = vsel %vm1224_vm5, %v6473_v8, 1.0  ;;  %v6554_v36 = vadd.f32 %v1099_v3, %v775_v42 }
 0x1fa   : > { %v4633_v49 = vpop.eup %4632  ;;  %4206 = vmatmul.mubr.f32.gmra.mrb[54].mxu0 %v1735_v41  ;;  %v2676_v5 = vsel %vm2484_vm9, %v2548_v60, %v2612_v54  ;;  %v2421_v52 = vsub.f32 1.0, %v2357_v58  ;;  %4640 = vrcp.f32 %v1288_v35  ;;  %v2550_v61 = vmul.f32 0.01, %v6442_v26 }
 0x1fb   : > { %v2358_v48 = vmul.f32 0.25, %v4633_v49  ;;  %v4635_v20 = vpop.eup %4634  ;;  %4270 = vmatprep.mubr.f32.mxu1 %v2676_v5  ;;  %v706_v16 = vmul.f32 %v5178_v33, %v625_v0  ;;  %vm1225_vm1 = vcmp.gt.f32.partialorder %v6485_v13, 0.5  ;;  %vm2487_vm7 = vcmp.le.f32.partialorder %v6438_v10, 0.0 }
 0x1fc   : > { %v2613_v44 = vsel %vm2165_vm13, %v2421_v52, %v6422_v23  ;;  %v2359_v27 = vmul.f32 0.25, %v4635_v20  ;;  %v1289_v9 = vsel %vm1225_vm1, %v6485_v13, 1.0  ;;  %v2551_v40 = vmul.f32 0.01, %v6438_v10 }
 0x1fd   : > { %v1026_v31 = vpop.permute.xlu1 %1025  ;;  %v2422_v2 = vsub.f32 1.0, %v2358_v48  ;;  %v2677_v46 = vsel %vm2485_vm11, %v2549_v12, %v2613_v44  ;;  %4642 = vrcp.f32 %v1289_v9  ;;  %vm2488_vm12 = vcmp.le.f32.partialorder %v6471_v18, 0.0 }
 0x1fe   : > { %v4637_v39 = vpop.eup %4636  ;;  %4271 = vmatmul.mubr.f32.gmra.mrb[12].mxu1 %v2677_v46  ;;  %v2423_v38 = vsub.f32 1.0, %v2359_v27  ;;  %v2552_v17 = vmul.f32 0.01, %v6471_v18  ;;  %v776_v0 = vadd.f32 %v6248_v50, %v706_v16  ;;  %vm2170_vm3 = vcmp.gt.f32.partialorder %v6523_v47, 0.5 }
 0x1ff   : > { %v2614_v24 = vsel %vm2166_vm10, %v2422_v2, %v6442_v26  ;;  %v2360_v63 = vmul.f32 0.25, %v4637_v39  ;;  %vm2489_vm13 = vcmp.le.f32.partialorder %v6458_v15, 0.0  ;;  %v2553_v60 = vmul.f32 0.01, %v6458_v15 }
 0x200   : > { %v2678_v23 = vsel %vm2486_vm6, %v2550_v61, %v2614_v24  ;;  %v2615_v55 = vsel %vm2167_vm15, %v2423_v38, %v6438_v10  ;;  %v2234_v56 = vsel %vm2170_vm3, %v6523_v47, 1.0  ;;  %v1100_v53 = vmul.f32 %v5183_v34, %v1022_v21 }
 0x201   : > { %4273 = vmatprep.mubr.f32.mxu1 %v2678_v23  ;;  %v2679_v32 = vsel %vm2487_vm7, %v2551_v40, %v2615_v55  ;;  %v2424_v42 = vsub.f32 1.0, %v2360_v63  ;;  %4644 = vrcp.f32 %v2234_v56  ;;  %v6590_v4 = vadd.f32 %v4156_v45, %v6172_v11 }
 0x202   : > { %v4159_v26 = vpop.f32.mrb[22].mxu0  ;;  %v640_v37 = vpop.permute.xlu1 %639  ;;  %4274 = vmatmul.mubr.f32.gmra.mrb[14].mxu1 %v2679_v32  ;;  %v6593_v43 = vadd.f32 %v6172_v11, %v1933_v14  ;;  %vm1544_vm14 = vcmp.le.f32.partialorder %v6473_v8, 0.0  ;;  %vm2171_vm10 = vcmp.gt.f32.partialorder %v6512_v25, 0.5  ;;  %v1608_v7 = vmul.f32 0.01, %v6473_v8 }
 0x203   : > { %v1943_v1 = vpop.f32.mrb[23].mxu0  ;;  %v4639_v59 = vpop.eup %4638  ;;  %v2616_v10 = vsel %vm2168_vm2, %v2424_v42, %v6471_v18  ;;  %v2235_v22 = vsel %vm2171_vm10, %v6512_v25, 1.0  ;;  %v1101_v51 = vmul.f32 %v5183_v34, %v1026_v31  ;;  %vm1227_vm8 = vcmp.gt.f32.partialorder %v6554_v36, 0.5 }
 0x204   : > { %v2361_v29 = vmul.f32 0.25, %v4639_v59  ;;  %v4641_v3 = vpop.eup %4640  ;;  %v2680_v45 = vsel %vm2488_vm12, %v2552_v17, %v2616_v10  ;;  %4646 = vrcp.f32 %v2235_v22  ;;  %v6608_v58 = vadd.f32 %v1100_v53, %v776_v0 }
 0x205   : > { %4276 = vmatprep.mubr.f32.mxu1 %v2680_v45  ;;  %v1416_v6 = vmul.f32 0.25, %v4641_v3  ;;  %v1291_v12 = vsel %vm1227_vm8, %v6554_v36, 1.0  ;;  %vm1545_vm15 = vcmp.le.f32.partialorder %v6485_v13, 0.0  ;;  %v1609_v14 = vmul.f32 0.01, %v6485_v13 }
 0x206   : > { %v2425_v21 = vsub.f32 1.0, %v2361_v29  ;;  %4648 = vrcp.f32 %v1291_v12  ;;  %vm2172_vm0 = vcmp.gt.f32.partialorder %v6593_v43, 0.5  ;;  %v709_v54 = vmul.f32 %v5178_v33, %v640_v37 }
 0x207   : > { %v4643_v18 = vpop.eup %4642  ;;  %v1480_v41 = vsub.f32 1.0, %v1416_v6  ;;  %v1034_v35 = vpop.permute.xlu1 %1033  ;;  %v2236_v5 = vsel %vm2172_vm0, %v6593_v43, 1.0  ;;  %v6626_v20 = vadd.f32 %v1101_v51, %v6201_v28  ;;  %vm2490_vm9 = vcmp.le.f32.partialorder %v6523_v47, 0.0 }
 0x208   : > { %v2617_v49 = vsel %vm2169_vm4, %v2425_v21, %v6458_v15  ;;  %v1417_v48 = vmul.f32 0.25, %v4643_v18  ;;  %4650 = vrcp.f32 %v2236_v5  ;;  %v2554_v61 = vmul.f32 0.01, %v6523_v47 }
 0x209   : > { %v2681_v52 = vsel %vm2489_vm13, %v2553_v60, %v2617_v49  ;;  %v1672_v33 = vsel %vm1224_vm5, %v1480_v41, %v6473_v8  ;;  %v6634_v16 = vadd.f32 %v6172_v11, %v1943_v1  ;;  %vm2173_vm2 = vcmp.gt.f32.partialorder %v6590_v4, 0.5 }
 0x20a   : > { %4277 = vmatmul.mubr.f32.gmra.mrb[16].mxu1 %v2681_v52  ;;  %v1736_v15 = vsel %vm1544_vm14, %v1608_v7, %v1672_v33  ;;  %v1481_v28 = vsub.f32 1.0, %v1417_v48  ;;  %v1103_v31 = vmul.f32 %v5183_v34, %v1034_v35  ;;  %v2237_v44 = vsel %vm2173_vm2, %v6590_v4, 1.0 }
 0x20b   : > { %v4645_v2 = vpop.eup %4644  ;;  %4208 = vmatprep.mubr.f32.mxu0 %v1736_v15  ;;  %v6644_v27 = vadd.f32 %v4159_v26, %v6172_v11  ;;  %v779_v9 = vadd.f32 %v6248_v50, %v709_v54  ;;  %4652 = vrcp.f32 %v2237_v44  ;;  %vm1228_vm11 = vcmp.gt.f32.partialorder %v6608_v58, 0.5 }
 0x20c   : > { %v1673_v8 = vsel %vm1225_vm1, %v1481_v28, %v6485_v13  ;;  %v2362_v46 = vmul.f32 0.25, %v4645_v2  ;;  %v1292_v34 = vsel %vm1228_vm11, %v6608_v58, 1.0  ;;  %vm1229_vm4 = vcmp.gt.f32.partialorder %v6626_v20, 0.5 }
 0x20d   : > { %v1737_v40 = vsel %vm1545_vm15, %v1609_v14, %v1673_v8  ;;  %vm2491_vm5 = vcmp.le.f32.partialorder %v6512_v25, 0.0  ;;  %4654 = vrcp.f32 %v1292_v34  ;;  %v1293_v50 = vsel %vm1229_vm4, %v6626_v20, 1.0 }
 0x20e   : > { %v4647_v39 = vpop.eup %4646  ;;  %4209 = vmatmul.mubr.f32.gmra.mrb[56].mxu0 %v1737_v40  ;;  %v2426_v24 = vsub.f32 1.0, %v2362_v46  ;;  %v6661_v38 = vadd.f32 %v1103_v31, %v779_v9  ;;  %4656 = vrcp.f32 %v1293_v50  ;;  %vm2174_vm6 = vcmp.gt.f32.partialorder %v6634_v16, 0.5 }
 0x20f   : > { %4211 = vmatprep.mubr.f32.mxu0 %v6284_v30  ;;  %v2363_v17 = vmul.f32 0.25, %v4647_v39  ;;  %v2555_v13 = vmul.f32 0.01, %v6512_v25  ;;  %vm1547_vm1 = vcmp.le.f32.partialorder %v6554_v36, 0.0  ;;  %v2238_v0 = vsel %vm2174_vm6, %v6634_v16, 1.0 }
 0x210   : > { %v4162_v23 = vpop.f32.mrb[24].mxu0  ;;  %v4649_v63 = vpop.eup %4648  ;;  %v2618_v55 = vsel %vm2170_vm3, %v2426_v24, %v6523_v47  ;;  %v1611_v60 = vmul.f32 0.01, %v6554_v36  ;;  %4658 = vrcp.f32 %v2238_v0  ;;  %vm2175_vm7 = vcmp.gt.f32.partialorder %v6644_v27, 0.5 }
 0x211   : > { %v1953_v56 = vpop.f32.mrb[25].mxu0  ;;  %v2682_v30 = vsel %vm2490_vm9, %v2554_v61, %v2618_v55  ;;  %v2427_v26 = vsub.f32 1.0, %v2363_v17  ;;  %v1419_v32 = vmul.f32 0.25, %v4649_v63  ;;  %vm2492_vm12 = vcmp.le.f32.partialorder %v6593_v43, 0.0 }
 0x212   : > { %v6678_v42 = vadd.f32 %v6172_v11, %v1953_v56  ;;  %v4651_v53 = vpop.eup %4650  ;;  %4279 = vmatprep.mubr.f32.mxu1 %v2682_v30  ;;  %v6682_v37 = vadd.f32 %v4162_v23, %v6172_v11  ;;  %v2239_v1 = vsel %vm2175_vm7, %v6644_v27, 1.0  ;;  %vm1231_vm3 = vcmp.gt.f32.partialorder %v6661_v38, 0.5 }
 0x213   : > { %v2619_v47 = vsel %vm2171_vm10, %v2427_v26, %v6512_v25  ;;  %v1483_v59 = vsub.f32 1.0, %v1419_v32  ;;  %v2364_v10 = vmul.f32 0.25, %v4651_v53  ;;  %4660 = vrcp.f32 %v2239_v1 }
 0x214   : > { %v2683_v29 = vsel %vm2491_vm5, %v2555_v13, %v2619_v47  ;;  %v2556_v7 = vmul.f32 0.01, %v6593_v43  ;;  %vm2493_vm13 = vcmp.le.f32.partialorder %v6590_v4, 0.0  ;;  %vm1550_vm14 = vcmp.le.f32.partialorder %v6111_v62, 0.0 }
 0x215   : > { %v1295_v22 = vsel %vm1231_vm3, %v6661_v38, 1.0  ;;  %v4653_v3 = vpop.eup %4652  ;;  %4280 = vmatmul.mubr.f32.gmra.mrb[18].mxu1 %v2683_v29  ;;  %v1675_v45 = vsel %vm1227_vm8, %v1483_v59, %v6554_v36  ;;  %v2428_v51 = vsub.f32 1.0, %v2364_v10  ;;  %vm2176_vm10 = vcmp.gt.f32.partialorder %v6678_v42, 0.5 }
 0x216   : > { %4662 = vrcp.f32 %v1295_v22  ;;  %v1739_v25 = vsel %vm1547_vm1, %v1611_v60, %v1675_v45  ;;  %v2365_v21 = vmul.f32 0.25, %v4653_v3  ;;  %v2557_v6 = vmul.f32 0.01, %v6590_v4 }
 0x217   : > { %v2240_v12 = vsel %vm2176_vm10, %v6678_v42, 1.0  ;;  %v4655_v14 = vpop.eup %4654  ;;  %4212 = vmatmul.mubr.f32.gmra.mrb[58].mxu0 %v1739_v25  ;;  %v2620_v18 = vsel %vm2172_vm0, %v2428_v51, %v6593_v43  ;;  %vm1548_vm8 = vcmp.le.f32.partialorder %v6608_v58, 0.0  ;;  %vm2177_vm15 = vcmp.gt.f32.partialorder %v6682_v37, 0.5 }
 0x218   : > { %4664 = vrcp.f32 %v2240_v12  ;;  %v4657_v36 = vpop.eup %4656  ;;  %v2684_v49 = vsel %vm2492_vm12, %v2556_v7, %v2620_v18  ;;  %v2429_v41 = vsub.f32 1.0, %v2365_v21  ;;  %v1420_v54 = vmul.f32 0.25, %v4655_v14 }
 0x219   : > { %v2241_v5 = vsel %vm2177_vm15, %v6682_v37, 1.0  ;;  %4282 = vmatprep.mubr.f32.mxu1 %v2684_v49  ;;  %v1612_v52 = vmul.f32 0.01, %v6608_v58  ;;  %v1421_v48 = vmul.f32 0.25, %v4657_v36  ;;  %vm1549_vm0 = vcmp.le.f32.partialorder %v6626_v20, 0.0 }
 0x21a   : > { %v4165_v35 = vpop.f32.mrb[26].mxu0  ;;  %4666 = vrcp.f32 %v2241_v5  ;;  %v4659_v15 = vpop.eup %4658  ;;  %v2621_v43 = vsel %vm2173_vm2, %v2429_v41, %v6590_v4  ;;  %v1484_v28 = vsub.f32 1.0, %v1420_v54  ;;  %v1613_v46 = vmul.f32 0.01, %v6626_v20 }
 0x21b   : > { %v6721_v33 = vadd.f32 %v4165_v35, %v6172_v11  ;;  %v1963_v61 = vpop.f32.mrb[27].mxu0  ;;  %v2685_v44 = vsel %vm2493_vm13, %v2557_v6, %v2621_v43  ;;  %v1485_v2 = vsub.f32 1.0, %v1421_v48  ;;  %v2366_v9 = vmul.f32 0.25, %v4659_v15 }
 0x21c   : > { %v6728_v31 = vadd.f32 %v6172_v11, %v1963_v61  ;;  %4283 = vmatmul.mubr.f32.gmra.mrb[20].mxu1 %v2685_v44  ;;  %v1676_v8 = vsel %vm1228_vm11, %v1484_v28, %v6608_v58  ;;  %v2558_v34 = vmul.f32 0.01, %v6634_v16  ;;  %v1742_v23 = vsel %vm1550_vm14, %v6287_v19, %v6296_v57 }
 0x21d   : > { %vm2179_vm9 = vcmp.gt.f32.partialorder %v6721_v33, 0.5  ;;  %v4661_v11 = vpop.eup %4660  ;;  %v1740_v4 = vsel %vm1548_vm8, %v1612_v52, %v1676_v8  ;;  %v1677_v40 = vsel %vm1229_vm4, %v1485_v2, %v6626_v20  ;;  %v2430_v50 = vsub.f32 1.0, %v2366_v9 }
 0x21e   : > { %vm2178_vm2 = vcmp.gt.f32.partialorder %v6728_v31, 0.5  ;;  %4214 = vmatprep.mubr.f32.mxu0 %v1740_v4  ;;  %v1741_v24 = vsel %vm1549_vm0, %v1613_v46, %v1677_v40  ;;  %v2367_v17 = vmul.f32 0.25, %v4661_v11  ;;  %v2243_v58 = vsel %vm2179_vm9, %v6721_v33, 1.0 }
 0x21f   : > { %v2242_v39 = vsel %vm2178_vm2, %v6728_v31, 1.0  ;;  %4215 = vmatmul.mubr.f32.gmra.mrb[60].mxu0 %v1741_v24  ;;  %vm2494_vm11 = vcmp.le.f32.partialorder %v6634_v16, 0.0  ;;  %v2622_v20 = vsel %vm2174_vm6, %v2430_v50, %v6634_v16  ;;  %v2559_v56 = vmul.f32 0.01, %v6644_v27 }
 0x220   : > { %4668 = vrcp.f32 %v2242_v39  ;;  %v4663_v13 = vpop.eup %4662  ;;  %4217 = vmatprep.mubr.f32.mxu0 %v1742_v23  ;;  %v2686_v0 = vsel %vm2494_vm11, %v2558_v34, %v2622_v20  ;;  %v2431_v63 = vsub.f32 1.0, %v2367_v17  ;;  %vm2495_vm4 = vcmp.le.f32.partialorder %v6644_v27, 0.0 }
 0x221   : > { %4670 = vrcp.f32 %v2243_v58  ;;  %v1423_v55 = vmul.f32 0.25, %v4663_v13  ;;  %4285 = vmatprep.mubr.f32.mxu1 %v2686_v0  ;;  %v1615_v16 = vmul.f32 0.01, %v6661_v38  ;;  %vm1551_vm5 = vcmp.le.f32.partialorder %v6661_v38, 0.0 }
 0x222   : > { %v4665_v60 = vpop.eup %4664  ;;  %v2623_v62 = vsel %vm2175_vm7, %v2431_v63, %v6644_v27  ;;  %v2560_v59 = vmul.f32 0.01, %v6678_v42  ;;  %vm2496_vm6 = vcmp.le.f32.partialorder %v6678_v42, 0.0  ;;  %v2561_v22 = vmul.f32 0.01, %v6682_v37 }
 0x223   : > { %v1487_v19 = vsub.f32 1.0, %v1423_v55  ;;  %v2368_v57 = vmul.f32 0.25, %v4665_v60  ;;  %v2687_v26 = vsel %vm2495_vm4, %v2559_v56, %v2623_v62  ;;  %vm2497_vm1 = vcmp.le.f32.partialorder %v6682_v37, 0.0 }
 0x224   : > { %v4667_v30 = vpop.eup %4666  ;;  %4286 = vmatmul.mubr.f32.gmra.mrb[22].mxu1 %v2687_v26  ;;  %v2562_v36 = vmul.f32 0.01, %v6728_v31  ;;  %v2563_v35 = vmul.f32 0.01, %v6721_v33  ;;  %vm2499_vm13 = vcmp.le.f32.partialorder %v6721_v33, 0.0 }
 0x225   : > { %v1679_v32 = vsel %vm1231_vm3, %v1487_v19, %v6661_v38  ;;  %v2432_v53 = vsub.f32 1.0, %v2368_v57  ;;  %v2369_v1 = vmul.f32 0.25, %v4667_v30  ;;  %v6779_v38 = vld [vmem:[%s7871_s5] ss:$0 sm:$0xff]  ;;  %vm2498_vm3 = vcmp.le.f32.partialorder %v6728_v31, 0.0 }
 0x226   : > { %v1743_v47 = vsel %vm1551_vm5, %v1615_v16, %v1679_v32 }
 0x227   : > { %4218 = vmatmul.mubr.f32.gmra.mrb[62].mxu0 %v1743_v47  ;;  %v2624_v27 = vsel %vm2176_vm10, %v2432_v53, %v6678_v42  ;;  %v2433_v10 = vsub.f32 1.0, %v2369_v1 }
 0x228   : > { %v2688_v29 = vsel %vm2496_vm6, %v2560_v59, %v2624_v27  ;;  %v4168_v7 = vpop.f32.mrb[28].mxu0 }
 0x229   : > { %4288 = vmatprep.mubr.f32.mxu1 %v2688_v29  ;;  %v1979_v45 = vadd.f32 %v6779_v38, %v4168_v7  ;;  %v2625_v42 = vsel %vm2177_vm15, %v2433_v10, %v6682_v37  ;;  %v1973_v51 = vpop.f32.mrb[29].mxu0 }
 0x22a   : > { %v4669_v3 = vpop.eup %4668  ;;  %v2689_v21 = vsel %vm2497_vm1, %v2561_v22, %v2625_v42  ;;  %v1974_v6 = vadd.f32 %v6779_v38, %v1973_v51 }
 0x22b   : > { %v4671_v25 = vpop.eup %4670  ;;  %v2370_v12 = vmul.f32 0.25, %v4669_v3  ;;  %4289 = vmatmul.mubr.f32.gmra.mrb[24].mxu1 %v2689_v21  ;;  %vm2181_vm7 = vcmp.gt.f32.partialorder %v1979_v45, 0.5  ;;  %v2565_v40 = vmul.f32 0.01, %v1979_v45  ;;  %vm2501_vm15 = vcmp.le.f32.partialorder %v1979_v45, 0.0 }
 0x22c   : > { %v2371_v14 = vmul.f32 0.25, %v4671_v25  ;;  %vm2180_vm12 = vcmp.gt.f32.partialorder %v1974_v6, 0.5  ;;  %v2245_v54 = vsel %vm2181_vm7, %v1979_v45, 1.0  ;;  %v2564_v34 = vmul.f32 0.01, %v1974_v6 }
 0x22d   : > { %v2434_v18 = vsub.f32 1.0, %v2370_v12  ;;  %v2244_v41 = vsel %vm2180_vm12, %v1974_v6, 1.0  ;;  %vm2500_vm8 = vcmp.le.f32.partialorder %v1974_v6, 0.0 }
 0x22e   : > { %v2435_v49 = vsub.f32 1.0, %v2371_v14  ;;  %4672 = vrcp.f32 %v2244_v41 }
 0x22f   : > { %v2626_v37 = vsel %vm2178_vm2, %v2434_v18, %v6728_v31  ;;  %4674 = vrcp.f32 %v2245_v54 }
 0x230   : > { %v2690_v5 = vsel %vm2498_vm3, %v2562_v36, %v2626_v37  ;;  %v2627_v52 = vsel %vm2179_vm9, %v2435_v49, %v6721_v33 }
 0x231   : > { %4291 = vmatprep.mubr.f32.mxu1 %v2690_v5  ;;  %v2691_v48 = vsel %vm2499_vm13, %v2563_v35, %v2627_v52 }
 0x232   : > { %v4171_v61 = vpop.f32.mrb[30].mxu0  ;;  %4292 = vmatmul.mubr.f32.gmra.mrb[26].mxu1 %v2691_v48 }
 0x233   : > { %v1989_v15 = vadd.f32 %v6779_v38, %v4171_v61  ;;  %v1983_v43 = vpop.f32.mrb[31].mxu0 }
 0x234   : > { %v1984_v28 = vadd.f32 %v6779_v38, %v1983_v43 }
 0x235   : > { %vm2183_vm14 = vcmp.gt.f32.partialorder %v1989_v15, 0.5  ;;  %v2567_v16 = vmul.f32 0.01, %v1989_v15  ;;  %vm2503_vm11 = vcmp.le.f32.partialorder %v1989_v15, 0.0 }
 0x236   : > { %vm2182_vm10 = vcmp.gt.f32.partialorder %v1984_v28, 0.5  ;;  %v2247_v31 = vsel %vm2183_vm14, %v1989_v15, 1.0  ;;  %v2566_v57 = vmul.f32 0.01, %v1984_v28  ;;  %vm2502_vm2 = vcmp.le.f32.partialorder %v1984_v28, 0.0 }
 0x237   : > { %v2246_v44 = vsel %vm2182_vm10, %v1984_v28, 1.0  ;;  %4676 = vrcp.f32 %v2247_v31 }
 0x238   : > { %4678 = vrcp.f32 %v2246_v44  ;;  %v4673_v2 = vpop.eup %4672 }
 0x239   : > { %v4675_v33 = vpop.eup %4674  ;;  %v2372_v9 = vmul.f32 0.25, %v4673_v2 }
 0x23a   : > { %v2373_v8 = vmul.f32 0.25, %v4675_v33 }
 0x23b   : > { %v2436_v46 = vsub.f32 1.0, %v2372_v9 }
 0x23c   : > { %v2437_v11 = vsub.f32 1.0, %v2373_v8 }
 0x23d   : > { %v2628_v4 = vsel %vm2180_vm12, %v2436_v46, %v1974_v6 }
 0x23e   : > { %v2692_v50 = vsel %vm2500_vm8, %v2564_v34, %v2628_v4  ;;  %v2629_v39 = vsel %vm2181_vm7, %v2437_v11, %v1979_v45 }
 0x23f   : > { %4294 = vmatprep.mubr.f32.mxu1 %v2692_v50  ;;  %v2693_v17 = vsel %vm2501_vm15, %v2565_v40, %v2629_v39 }
 0x240   : > { %v4174_v24 = vpop.f32.mrb[32].mxu0  ;;  %4295 = vmatmul.mubr.f32.gmra.mrb[28].mxu1 %v2693_v17 }
 0x241   : > { %v4677_v58 = vpop.eup %4676  ;;  %v1999_v13 = vadd.f32 %v6779_v38, %v4174_v24  ;;  %v1993_v23 = vpop.f32.mrb[33].mxu0 }
 0x242   : > { %v4679_v20 = vpop.eup %4678  ;;  %v1994_v0 = vadd.f32 %v6779_v38, %v1993_v23  ;;  %v2375_v63 = vmul.f32 0.25, %v4677_v58 }
 0x243   : > { %v2374_v55 = vmul.f32 0.25, %v4679_v20  ;;  %vm2185_vm0 = vcmp.gt.f32.partialorder %v1999_v13, 0.5  ;;  %v2569_v6 = vmul.f32 0.01, %v1999_v13  ;;  %vm2505_vm1 = vcmp.le.f32.partialorder %v1999_v13, 0.0 }
 0x244   : > { %v2439_v60 = vsub.f32 1.0, %v2375_v63  ;;  %vm2184_vm9 = vcmp.gt.f32.partialorder %v1994_v0, 0.5  ;;  %v2249_v19 = vsel %vm2185_vm0, %v1999_v13, 1.0  ;;  %v2568_v51 = vmul.f32 0.01, %v1994_v0 }
 0x245   : > { %v2438_v56 = vsub.f32 1.0, %v2374_v55  ;;  %v2248_v62 = vsel %vm2184_vm9, %v1994_v0, 1.0  ;;  %vm2504_vm6 = vcmp.le.f32.partialorder %v1994_v0, 0.0 }
 0x246   : > { %v2631_v30 = vsel %vm2183_vm14, %v2439_v60, %v1989_v15  ;;  %4680 = vrcp.f32 %v2248_v62 }
 0x247   : > { %v2630_v26 = vsel %vm2182_vm10, %v2438_v56, %v1984_v28  ;;  %4682 = vrcp.f32 %v2249_v19  ;;  %v2695_v53 = vsel %vm2503_vm11, %v2567_v16, %v2631_v30 }
 0x248   : > { %v2694_v32 = vsel %vm2502_vm2, %v2566_v57, %v2630_v26 }
 0x249   : > { %4297 = vmatprep.mubr.f32.mxu1 %v2694_v32 }
 0x24a   : > { %v4177_v1 = vpop.f32.mrb[34].mxu0  ;;  %4298 = vmatmul.mubr.f32.gmra.mrb[30].mxu1 %v2695_v53 }
 0x24b   : > { %v2009_v47 = vadd.f32 %v6779_v38, %v4177_v1  ;;  %v2003_v59 = vpop.f32.mrb[35].mxu0 }
 0x24c   : > { %v2004_v27 = vadd.f32 %v6779_v38, %v2003_v59 }
 0x24d   : > { %vm2187_vm4 = vcmp.gt.f32.partialorder %v2009_v47, 0.5  ;;  %v2571_v2 = vmul.f32 0.01, %v2009_v47  ;;  %vm2507_vm13 = vcmp.le.f32.partialorder %v2009_v47, 0.0 }
 0x24e   : > { %vm2186_vm5 = vcmp.gt.f32.partialorder %v2004_v27, 0.5  ;;  %v2251_v10 = vsel %vm2187_vm4, %v2009_v47, 1.0  ;;  %v2570_v28 = vmul.f32 0.01, %v2004_v27  ;;  %vm2506_vm3 = vcmp.le.f32.partialorder %v2004_v27, 0.0 }
 0x24f   : > { %v2250_v29 = vsel %vm2186_vm5, %v2004_v27, 1.0  ;;  %4684 = vrcp.f32 %v2251_v10 }
 0x250   : > { %v4681_v7 = vpop.eup %4680  ;;  %4686 = vrcp.f32 %v2250_v29 }
 0x251   : > { %v4683_v22 = vpop.eup %4682  ;;  %v2376_v3 = vmul.f32 0.25, %v4681_v7 }
 0x252   : > { %v2377_v45 = vmul.f32 0.25, %v4683_v22 }
 0x253   : > { %v2440_v42 = vsub.f32 1.0, %v2376_v3 }
 0x254   : > { %v2441_v25 = vsub.f32 1.0, %v2377_v45 }
 0x255   : > { %v2632_v21 = vsel %vm2184_vm9, %v2440_v42, %v1994_v0 }
 0x256   : > { %v2696_v12 = vsel %vm2504_vm6, %v2568_v51, %v2632_v21  ;;  %v2633_v14 = vsel %vm2185_vm0, %v2441_v25, %v1999_v13 }
 0x257   : > { %4300 = vmatprep.mubr.f32.mxu1 %v2696_v12  ;;  %v2697_v18 = vsel %vm2505_vm1, %v2569_v6, %v2633_v14 }
 0x258   : > { %v4180_v36 = vpop.f32.mrb[36].mxu0  ;;  %4301 = vmatmul.mubr.f32.gmra.mrb[32].mxu1 %v2697_v18 }
 0x259   : > { %v4685_v49 = vpop.eup %4684  ;;  %v2019_v41 = vadd.f32 %v6779_v38, %v4180_v36  ;;  %v2013_v54 = vpop.f32.mrb[37].mxu0 }
 0x25a   : > { %v4687_v37 = vpop.eup %4686  ;;  %v2014_v35 = vadd.f32 %v6779_v38, %v2013_v54  ;;  %v2379_v5 = vmul.f32 0.25, %v4685_v49 }
 0x25b   : > { %v2378_v52 = vmul.f32 0.25, %v4687_v37  ;;  %vm2189_vm7 = vcmp.gt.f32.partialorder %v2019_v41, 0.5  ;;  %v2573_v0 = vmul.f32 0.01, %v2019_v41  ;;  %vm2509_vm15 = vcmp.le.f32.partialorder %v2019_v41, 0.0 }
 0x25c   : > { %v2443_v48 = vsub.f32 1.0, %v2379_v5  ;;  %vm2188_vm12 = vcmp.gt.f32.partialorder %v2014_v35, 0.5  ;;  %v2253_v43 = vsel %vm2189_vm7, %v2019_v41, 1.0  ;;  %v2572_v13 = vmul.f32 0.01, %v2014_v35 }
 0x25d   : > { %v2442_v61 = vsub.f32 1.0, %v2378_v52  ;;  %v2252_v15 = vsel %vm2188_vm12, %v2014_v35, 1.0  ;;  %vm2508_vm8 = vcmp.le.f32.partialorder %v2014_v35, 0.0 }
 0x25e   : > { %v2635_v31 = vsel %vm2187_vm4, %v2443_v48, %v2009_v47  ;;  %4688 = vrcp.f32 %v2252_v15 }
 0x25f   : > { %v2634_v44 = vsel %vm2186_vm5, %v2442_v61, %v2004_v27  ;;  %4690 = vrcp.f32 %v2253_v43  ;;  %v2699_v9 = vsel %vm2507_vm13, %v2571_v2, %v2635_v31 }
 0x260   : > { %v2698_v33 = vsel %vm2506_vm3, %v2570_v28, %v2634_v44 }
 0x261   : > { %4303 = vmatprep.mubr.f32.mxu1 %v2698_v33 }
 0x262   : > { %v4183_v8 = vpop.f32.mrb[38].mxu0  ;;  %4304 = vmatmul.mubr.f32.gmra.mrb[34].mxu1 %v2699_v9 }
 0x263   : > { %v2029_v46 = vadd.f32 %v6779_v38, %v4183_v8  ;;  %v2023_v34 = vpop.f32.mrb[39].mxu0 }
 0x264   : > { %v2024_v11 = vadd.f32 %v6779_v38, %v2023_v34 }
 0x265   : > { %vm2191_vm14 = vcmp.gt.f32.partialorder %v2029_v46, 0.5  ;;  %v2575_v7 = vmul.f32 0.01, %v2029_v46  ;;  %vm2511_vm11 = vcmp.le.f32.partialorder %v2029_v46, 0.0 }
 0x266   : > { %vm2190_vm10 = vcmp.gt.f32.partialorder %v2024_v11, 0.5  ;;  %v2255_v4 = vsel %vm2191_vm14, %v2029_v46, 1.0  ;;  %v2574_v27 = vmul.f32 0.01, %v2024_v11  ;;  %vm2510_vm2 = vcmp.le.f32.partialorder %v2024_v11, 0.0 }
 0x267   : > { %v2254_v40 = vsel %vm2190_vm10, %v2024_v11, 1.0  ;;  %4692 = vrcp.f32 %v2255_v4 }
 0x268   : > { %v4689_v50 = vpop.eup %4688  ;;  %4694 = vrcp.f32 %v2254_v40 }
 0x269   : > { %v4691_v39 = vpop.eup %4690  ;;  %v2380_v24 = vmul.f32 0.25, %v4689_v50 }
 0x26a   : > { %v2381_v17 = vmul.f32 0.25, %v4691_v39 }
 0x26b   : > { %v2444_v58 = vsub.f32 1.0, %v2380_v24 }
 0x26c   : > { %v2445_v23 = vsub.f32 1.0, %v2381_v17 }
 0x26d   : > { %v2636_v20 = vsel %vm2188_vm12, %v2444_v58, %v2014_v35 }
 0x26e   : > { %v2700_v63 = vsel %vm2508_vm8, %v2572_v13, %v2636_v20  ;;  %v2637_v55 = vsel %vm2189_vm7, %v2445_v23, %v2019_v41 }
 0x26f   : > { %4306 = vmatprep.mubr.f32.mxu1 %v2700_v63  ;;  %v2701_v60 = vsel %vm2509_vm15, %v2573_v0, %v2637_v55 }
 0x270   : > { %v4186_v56 = vpop.f32.mrb[40].mxu0  ;;  %4307 = vmatmul.mubr.f32.gmra.mrb[36].mxu1 %v2701_v60 }
 0x271   : > { %v4693_v62 = vpop.eup %4692  ;;  %v2039_v19 = vadd.f32 %v6779_v38, %v4186_v56  ;;  %v2033_v57 = vpop.f32.mrb[41].mxu0 }
 0x272   : > { %v4695_v30 = vpop.eup %4694  ;;  %v2034_v26 = vadd.f32 %v6779_v38, %v2033_v57  ;;  %v2383_v16 = vmul.f32 0.25, %v4693_v62 }
 0x273   : > { %v2382_v32 = vmul.f32 0.25, %v4695_v30  ;;  %vm2193_vm0 = vcmp.gt.f32.partialorder %v2039_v19, 0.5  ;;  %v2577_v35 = vmul.f32 0.01, %v2039_v19  ;;  %vm2513_vm1 = vcmp.le.f32.partialorder %v2039_v19, 0.0 }
 0x274   : > { %v2447_v53 = vsub.f32 1.0, %v2383_v16  ;;  %vm2192_vm9 = vcmp.gt.f32.partialorder %v2034_v26, 0.5  ;;  %v2257_v59 = vsel %vm2193_vm0, %v2039_v19, 1.0  ;;  %v2576_v41 = vmul.f32 0.01, %v2034_v26 }
 0x275   : > { %v2446_v1 = vsub.f32 1.0, %v2382_v32  ;;  %v2256_v47 = vsel %vm2192_vm9, %v2034_v26, 1.0  ;;  %vm2512_vm6 = vcmp.le.f32.partialorder %v2034_v26, 0.0 }
 0x276   : > { %v2639_v10 = vsel %vm2191_vm14, %v2447_v53, %v2029_v46  ;;  %4696 = vrcp.f32 %v2256_v47 }
 0x277   : > { %v2638_v29 = vsel %vm2190_vm10, %v2446_v1, %v2024_v11  ;;  %4698 = vrcp.f32 %v2257_v59  ;;  %v2703_v3 = vsel %vm2511_vm11, %v2575_v7, %v2639_v10 }
 0x278   : > { %v2702_v22 = vsel %vm2510_vm2, %v2574_v27, %v2638_v29 }
 0x279   : > { %4309 = vmatprep.mubr.f32.mxu1 %v2702_v22 }
 0x27a   : > { %v4189_v45 = vpop.f32.mrb[42].mxu0  ;;  %4310 = vmatmul.mubr.f32.gmra.mrb[38].mxu1 %v2703_v3 }
 0x27b   : > { %v2049_v42 = vadd.f32 %v6779_v38, %v4189_v45  ;;  %v2043_v51 = vpop.f32.mrb[43].mxu0 }
 0x27c   : > { %v2044_v25 = vadd.f32 %v6779_v38, %v2043_v51 }
 0x27d   : > { %vm2195_vm4 = vcmp.gt.f32.partialorder %v2049_v42, 0.5  ;;  %v2579_v50 = vmul.f32 0.01, %v2049_v42  ;;  %vm2515_vm13 = vcmp.le.f32.partialorder %v2049_v42, 0.0 }
 0x27e   : > { %vm2194_vm5 = vcmp.gt.f32.partialorder %v2044_v25, 0.5  ;;  %v2259_v21 = vsel %vm2195_vm4, %v2049_v42, 1.0  ;;  %v2578_v11 = vmul.f32 0.01, %v2044_v25  ;;  %vm2514_vm3 = vcmp.le.f32.partialorder %v2044_v25, 0.0 }
 0x27f   : > { %v2258_v6 = vsel %vm2194_vm5, %v2044_v25, 1.0  ;;  %4700 = vrcp.f32 %v2259_v21 }
 0x280   : > { %v4697_v12 = vpop.eup %4696  ;;  %4702 = vrcp.f32 %v2258_v6 }
 0x281   : > { %v4699_v14 = vpop.eup %4698  ;;  %v2384_v18 = vmul.f32 0.25, %v4697_v12 }
 0x282   : > { %v2385_v36 = vmul.f32 0.25, %v4699_v14 }
 0x283   : > { %v2448_v49 = vsub.f32 1.0, %v2384_v18 }
 0x284   : > { %v2449_v54 = vsub.f32 1.0, %v2385_v36  ;;  %v6872_v36 = vld [vmem:[%s7871_s5 + $0x1] ss:$0 sm:$0xff] }
 0x285   : > { %v2640_v37 = vsel %vm2192_vm9, %v2448_v49, %v2034_v26 }
 0x286   : > { %v2704_v5 = vsel %vm2512_vm6, %v2576_v41, %v2640_v37  ;;  %v2641_v52 = vsel %vm2193_vm0, %v2449_v54, %v2039_v19 }
 0x287   : > { %4312 = vmatprep.mubr.f32.mxu1 %v2704_v5  ;;  %v2705_v48 = vsel %vm2513_vm1, %v2577_v35, %v2641_v52 }
 0x288   : > { %v4192_v61 = vpop.f32.mrb[44].mxu0  ;;  %4313 = vmatmul.mubr.f32.gmra.mrb[40].mxu1 %v2705_v48 }
 0x289   : > { %v4701_v15 = vpop.eup %4700  ;;  %v2059_v43 = vadd.f32 %v6779_v38, %v4192_v61  ;;  %v2053_v28 = vpop.f32.mrb[45].mxu0 }
 0x28a   : > { %v4703_v31 = vpop.eup %4702  ;;  %v2054_v44 = vadd.f32 %v6779_v38, %v2053_v28  ;;  %v2387_v2 = vmul.f32 0.25, %v4701_v15 }
 0x28b   : > { %v2386_v33 = vmul.f32 0.25, %v4703_v31  ;;  %vm2197_vm7 = vcmp.gt.f32.partialorder %v2059_v43, 0.5  ;;  %v2581_v26 = vmul.f32 0.01, %v2059_v43  ;;  %vm2517_vm15 = vcmp.le.f32.partialorder %v2059_v43, 0.0 }
 0x28c   : > { %v2451_v9 = vsub.f32 1.0, %v2387_v2  ;;  %vm2196_vm12 = vcmp.gt.f32.partialorder %v2054_v44, 0.5  ;;  %v2261_v34 = vsel %vm2197_vm7, %v2059_v43, 1.0  ;;  %v2580_v19 = vmul.f32 0.01, %v2054_v44 }
 0x28d   : > { %v2450_v8 = vsub.f32 1.0, %v2386_v33  ;;  %v2260_v46 = vsel %vm2196_vm12, %v2054_v44, 1.0  ;;  %vm2516_vm8 = vcmp.le.f32.partialorder %v2054_v44, 0.0 }
 0x28e   : > { %v2643_v4 = vsel %vm2195_vm4, %v2451_v9, %v2049_v42  ;;  %4704 = vrcp.f32 %v2260_v46 }
 0x28f   : > { %v2642_v40 = vsel %vm2194_vm5, %v2450_v8, %v2044_v25  ;;  %4706 = vrcp.f32 %v2261_v34  ;;  %v2707_v24 = vsel %vm2515_vm13, %v2579_v50, %v2643_v4 }
 0x290   : > { %v2706_v39 = vsel %vm2514_vm3, %v2578_v11, %v2642_v40 }
 0x291   : > { %4315 = vmatprep.mubr.f32.mxu1 %v2706_v39 }
 0x292   : > { %v4195_v17 = vpop.f32.mrb[46].mxu0  ;;  %4316 = vmatmul.mubr.f32.gmra.mrb[42].mxu1 %v2707_v24 }
 0x293   : > { %v2069_v58 = vadd.f32 %v6779_v38, %v4195_v17  ;;  %v2063_v13 = vpop.f32.mrb[47].mxu0 }
 0x294   : > { %v2064_v23 = vadd.f32 %v6779_v38, %v2063_v13 }
 0x295   : > { %vm2199_vm14 = vcmp.gt.f32.partialorder %v2069_v58, 0.5  ;;  %v2583_v12 = vmul.f32 0.01, %v2069_v58  ;;  %vm2519_vm11 = vcmp.le.f32.partialorder %v2069_v58, 0.0 }
 0x296   : > { %vm2198_vm10 = vcmp.gt.f32.partialorder %v2064_v23, 0.5  ;;  %v2263_v20 = vsel %vm2199_vm14, %v2069_v58, 1.0  ;;  %v2582_v25 = vmul.f32 0.01, %v2064_v23  ;;  %vm2518_vm2 = vcmp.le.f32.partialorder %v2064_v23, 0.0 }
 0x297   : > { %v2262_v0 = vsel %vm2198_vm10, %v2064_v23, 1.0  ;;  %4708 = vrcp.f32 %v2263_v20 }
 0x298   : > { %v4705_v63 = vpop.eup %4704  ;;  %4710 = vrcp.f32 %v2262_v0 }
 0x299   : > { %v4707_v55 = vpop.eup %4706  ;;  %v2388_v60 = vmul.f32 0.25, %v4705_v63 }
 0x29a   : > { %v2389_v56 = vmul.f32 0.25, %v4707_v55 }
 0x29b   : > { %v2452_v62 = vsub.f32 1.0, %v2388_v60 }
 0x29c   : > { %v2453_v57 = vsub.f32 1.0, %v2389_v56 }
 0x29d   : > { %v2644_v30 = vsel %vm2196_vm12, %v2452_v62, %v2054_v44 }
 0x29e   : > { %v2708_v16 = vsel %vm2516_vm8, %v2580_v19, %v2644_v30  ;;  %v2645_v32 = vsel %vm2197_vm7, %v2453_v57, %v2059_v43  ;;  %vm3780_vm8 = vcmask 7168  }
 0x29f   : > { %4318 = vmatprep.mubr.f32.mxu1 %v2708_v16  ;;  %v2709_v53 = vsel %vm2517_vm15, %v2581_v26, %v2645_v32  ;;  %v6946_v16 = vstv %s6898_s19 }
 0x2a0   : > { %v4198_v1 = vpop.f32.mrb[48].mxu0  ;;  %4319 = vmatmul.mubr.f32.gmra.mrb[44].mxu1 %v2709_v53 }
 0x2a1   : > { %v4709_v47 = vpop.eup %4708  ;;  %v6854_v59 = vadd.f32 %v6779_v38, %v4198_v1  ;;  %v2073_v27 = vpop.f32.mrb[49].mxu0 }
 0x2a2   : > { %v4711_v10 = vpop.eup %4710  ;;  %v6857_v29 = vadd.f32 %v6779_v38, %v2073_v27  ;;  %v2391_v7 = vmul.f32 0.25, %v4709_v47 }
 0x2a3   : > { %v2390_v22 = vmul.f32 0.25, %v4711_v10  ;;  %vm2201_vm0 = vcmp.gt.f32.partialorder %v6854_v59, 0.5  ;;  %vm2521_vm1 = vcmp.le.f32.partialorder %v6854_v59, 0.0  ;;  %v2585_v11 = vmul.f32 0.01, %v6854_v59 }
 0x2a4   : > { %v2455_v3 = vsub.f32 1.0, %v2391_v7  ;;  %vm2200_vm9 = vcmp.gt.f32.partialorder %v6857_v29, 0.5  ;;  %v2265_v51 = vsel %vm2201_vm0, %v6854_v59, 1.0  ;;  %vm2520_vm12 = vcmp.le.f32.partialorder %v6857_v29, 0.0 }
 0x2a5   : > { %v2454_v45 = vsub.f32 1.0, %v2390_v22  ;;  %v2264_v42 = vsel %vm2200_vm9, %v6857_v29, 1.0  ;;  %v2584_v39 = vmul.f32 0.01, %v6857_v29 }
 0x2a6   : > { %v2647_v21 = vsel %vm2199_vm14, %v2455_v3, %v2069_v58  ;;  %4712 = vrcp.f32 %v2264_v42 }
 0x2a7   : > { %v2646_v6 = vsel %vm2198_vm10, %v2454_v45, %v2064_v23  ;;  %4714 = vrcp.f32 %v2265_v51  ;;  %v2711_v18 = vsel %vm2519_vm11, %v2583_v12, %v2647_v21 }
 0x2a8   : > { %v2710_v14 = vsel %vm2518_vm2, %v2582_v25, %v2646_v6 }
 0x2a9   : > { %4321 = vmatprep.mubr.f32.mxu1 %v2710_v14 }
 0x2aa   : > { %4322 = vmatmul.mubr.f32.gmra.mrb[46].mxu1 %v2711_v18 }
 0x2ab   : > { %v4201_v49 = vpop.f32.mrb[50].mxu0 }
 0x2ac   : > { %v4254_v41 = vpop.f32.mrb[0].mxu1  ;;  %v2083_v54 = vpop.f32.mrb[51].mxu0  ;;  %v6908_v4 = vadd.f32 %v6779_v38, %v4201_v49 }
 0x2ad   : > { %v6875_v37 = vadd.f32 %v4254_v41, %v6872_v36  ;;  %v6878_v35 = vadd.f32 %v6779_v38, %v2083_v54  ;;  %v2819_v5 = vpop.f32.mrb[1].mxu1 }
 0x2ae   : > { %v6881_v52 = vadd.f32 %v6872_v36, %v2819_v5  ;;  %vm2203_vm10 = vcmp.gt.f32.partialorder %v6908_v4, 0.5 }
 0x2af   : > { %vm3139_vm4 = vcmp.gt.f32.partialorder %v6875_v37, 0.5  ;;  %vm2202_vm5 = vcmp.gt.f32.partialorder %v6878_v35, 0.5  ;;  %v2267_v57 = vsel %vm2203_vm10, %v6908_v4, 1.0  ;;  %v3523_v26 = vmul.f32 0.01, %v6875_v37 }
 0x2b0   : > { %v4713_v48 = vpop.eup %4712  ;;  %v3203_v61 = vsel %vm3139_vm4, %v6875_v37, 1.0  ;;  %vm3138_vm6 = vcmp.gt.f32.partialorder %v6881_v52, 0.5  ;;  %v4257_v28 = vpop.f32.mrb[2].mxu1  ;;  %v2266_v44 = vsel %vm2202_vm5, %v6878_v35, 1.0  ;;  %vm3459_vm15 = vcmp.le.f32.partialorder %v6875_v37, 0.0 }
 0x2b1   : > { %v4715_v15 = vpop.eup %4714  ;;  %4716 = vrcp.f32 %v3203_v61  ;;  %v3202_v43 = vsel %vm3138_vm6, %v6881_v52, 1.0  ;;  %v2392_v31 = vmul.f32 0.25, %v4713_v48  ;;  %v6896_v2 = vadd.f32 %v4257_v28, %v6872_v36  ;;  %v2829_v33 = vpop.f32.mrb[3].mxu1 }
 0x2b2   : > { %4718 = vrcp.f32 %v3202_v43  ;;  %v2393_v9 = vmul.f32 0.25, %v4715_v15  ;;  %v6901_v8 = vadd.f32 %v6872_v36, %v2829_v33  ;;  %v3522_v1 = vmul.f32 0.01, %v6881_v52 }
 0x2b3   : > { %v2456_v46 = vsub.f32 1.0, %v2392_v31  ;;  %4720 = vrcp.f32 %v2266_v44  ;;  %vm3141_vm7 = vcmp.gt.f32.partialorder %v6896_v2, 0.5  ;;  %vm2522_vm2 = vcmp.le.f32.partialorder %v6878_v35, 0.0 }
 0x2b4   : > { %v2457_v34 = vsub.f32 1.0, %v2393_v9  ;;  %v3205_v40 = vsel %vm3141_vm7, %v6896_v2, 1.0  ;;  %vm3140_vm3 = vcmp.gt.f32.partialorder %v6901_v8, 0.5  ;;  %v4260_v50 = vpop.f32.mrb[4].mxu1  ;;  %v3525_v5 = vmul.f32 0.01, %v6896_v2 }
 0x2b5   : > { %4722 = vrcp.f32 %v3205_v40  ;;  %v3204_v24 = vsel %vm3140_vm3, %v6901_v8, 1.0  ;;  %v6919_v17 = vadd.f32 %v4260_v50, %v6872_v36  ;;  %v2839_v58 = vpop.f32.mrb[5].mxu1  ;;  %v2648_v13 = vsel %vm2200_vm9, %v2456_v46, %v6857_v29 }
 0x2b6   : > { %4724 = vrcp.f32 %v3204_v24  ;;  %v6925_v23 = vadd.f32 %v6872_v36, %v2839_v58  ;;  %v2712_v20 = vsel %vm2520_vm12, %v2584_v39, %v2648_v13  ;;  %v2649_v0 = vsel %vm2201_vm0, %v2457_v34, %v6854_v59 }
 0x2b7   : > { %vm3143_vm13 = vcmp.gt.f32.partialorder %v6919_v17, 0.5  ;;  %4324 = vmatprep.mubr.f32.mxu1 %v2712_v20  ;;  %v2713_v63 = vsel %vm2521_vm1, %v2585_v11, %v2649_v0  ;;  %vm3458_vm0 = vcmp.le.f32.partialorder %v6881_v52, 0.0  ;;  %v2586_v29 = vmul.f32 0.01, %v6878_v35 }
 0x2b8   : > { %v3207_v55 = vsel %vm3143_vm13, %v6919_v17, 1.0  ;;  %vm3142_vm14 = vcmp.gt.f32.partialorder %v6925_v23, 0.5  ;;  %4325 = vmatmul.mubr.f32.gmra.mrb[48].mxu1 %v2713_v63  ;;  %vm3461_vm9 = vcmp.le.f32.partialorder %v6896_v2, 0.0  ;;  %v3524_v28 = vmul.f32 0.01, %v6901_v8 }
 0x2b9   : > { %4726 = vrcp.f32 %v3207_v55  ;;  %v3206_v60 = vsel %vm3142_vm14, %v6925_v23, 1.0  ;;  %vm3463_vm1 = vcmp.le.f32.partialorder %v6919_v17, 0.0  ;;  %v3527_v39 = vmul.f32 0.01, %v6919_v17 }
 0x2ba   : > { %4728 = vrcp.f32 %v3206_v60  ;;  %v3526_v20 = vmul.f32 0.01, %v6925_v23 }
 0x2bb   : > { %v4717_v56 = vpop.eup %4716  ;;  %v4263_v47 = vpop.f32.mrb[6].mxu1  ;;  %4730 = vrcp.f32 %v2267_v57 }
 0x2bc   : > { %v4719_v62 = vpop.eup %4718  ;;  %v3331_v19 = vmul.f32 0.25, %v4717_v56  ;;  %v6952_v27 = vadd.f32 %v4263_v47, %v6872_v36  ;;  %v2849_v10 = vpop.f32.mrb[7].mxu1 }
 0x2bd   : > { %v4721_v30 = vpop.eup %4720  ;;  %v3330_v32 = vmul.f32 0.25, %v4719_v62  ;;  %v6959_v3 = vpop.f32.mrb[52].mxu0  ;;  %v6962_v45 = vadd.f32 %v6872_v36, %v2849_v10 }
 0x2be   : > { %v3395_v53 = vsub.f32 1.0, %v3331_v19  ;;  %v2394_v42 = vmul.f32 0.25, %v4721_v30  ;;  %vm3145_vm11 = vcmp.gt.f32.partialorder %v6952_v27, 0.5  ;;  %v2093_v12 = vpop.f32.mrb[53].mxu0 }
 0x2bf   : > { %v3394_v59 = vsub.f32 1.0, %v3330_v32  ;;  %v4723_v7 = vpop.eup %4722  ;;  %v3209_v41 = vsel %vm3145_vm11, %v6952_v27, 1.0 }
 0x2c0   : > { %v3587_v22 = vsel %vm3139_vm4, %v3395_v53, %v6875_v37  ;;  %v4725_v51 = vpop.eup %4724  ;;  %v3333_v6 = vmul.f32 0.25, %v4723_v7  ;;  %4732 = vrcp.f32 %v3209_v41  ;;  %vm3460_vm4 = vcmp.le.f32.partialorder %v6901_v8, 0.0 }
 0x2c1   : > { %v3651_v25 = vsel %vm3459_vm15, %v3523_v26, %v3587_v22  ;;  %v3586_v21 = vsel %vm3138_vm6, %v3394_v59, %v6881_v52  ;;  %v3332_v49 = vmul.f32 0.25, %v4725_v51  ;;  %vm3144_vm6 = vcmp.gt.f32.partialorder %v6962_v45, 0.5 }
 0x2c2   : > { %v3717_v14 = vmul.f32 %v6946_v16, %v3651_v25  ;;  %v3650_v18 = vsel %vm3458_vm0, %v3522_v1, %v3586_v21  ;;  %v3397_v37 = vsub.f32 1.0, %v3333_v6  ;;  %v2458_v52 = vsub.f32 1.0, %v2394_v42 }
 0x2c3   : > { %v3716_v54 = vmul.f32 %v6946_v16, %v3650_v18  ;;  %v4727_v48 = vpop.eup %4726  ;;  %v3396_v61 = vsub.f32 1.0, %v3332_v49  ;;  %v3208_v44 = vsel %vm3144_vm6, %v6962_v45, 1.0  ;;  %v2587_v7 = vmul.f32 0.01, %v6908_v4 }
 0x2c4   : > { %3782 = vst.msk [vmem:[%s6970_s22 + $0x8] sm:$0xff] %vm3780_vm8, %v3717_v14  ;;  %v4729_v15 = vpop.eup %4728  ;;  %v3589_v43 = vsel %vm3141_vm7, %v3397_v37, %v6896_v2  ;;  %v3335_v31 = vmul.f32 0.25, %v4727_v48  ;;  %4734 = vrcp.f32 %v3208_v44  ;;  %v2650_v58 = vsel %vm2202_vm5, %v2458_v52, %v6878_v35 }
 0x2c5   : > { %3781 = vst.msk [vmem:[%s6970_s22] sm:$0xff] %vm3780_vm8, %v3716_v54  ;;  %v3653_v33 = vsel %vm3461_vm9, %v3525_v5, %v3589_v43  ;;  %v3588_v9 = vsel %vm3140_vm3, %v3396_v61, %v6901_v8  ;;  %v3334_v46 = vmul.f32 0.25, %v4729_v15  ;;  %v4266_v2 = vpop.f32.mrb[8].mxu1  ;;  %v4731_v8 = vpop.eup %4730  ;;  %v2714_v55 = vsel %vm2522_vm2, %v2586_v29, %v2650_v58 }
 0x2c6   : > { %v3719_v34 = vmul.f32 %v6946_v16, %v3653_v33  ;;  %v3652_v11 = vsel %vm3460_vm4, %v3524_v28, %v3588_v9  ;;  %v3399_v40 = vsub.f32 1.0, %v3335_v31  ;;  %v7018_v0 = vadd.f32 %v4266_v2, %v6872_v36  ;;  %v2859_v63 = vpop.f32.mrb[9].mxu1  ;;  %4327 = vmatprep.mubr.f32.mxu1 %v2714_v55 }
 0x2c7   : > { %v3718_v50 = vmul.f32 %v6946_v16, %v3652_v11  ;;  %v3398_v24 = vsub.f32 1.0, %v3334_v46  ;;  %vm3462_vm5 = vcmp.le.f32.partialorder %v6925_v23, 0.0  ;;  %v7033_v35 = vadd.f32 %v6779_v38, %v2093_v12 }
 0x2c8   : > { %3784 = vst.msk [vmem:[%s6970_s22 + $0x18] sm:$0xff] %vm3780_vm8, %v3719_v34  ;;  %v3591_v13 = vsel %vm3143_vm13, %v3399_v40, %v6919_v17  ;;  %v7029_v17 = vadd.f32 %v6872_v36, %v2859_v63  ;;  %vm3147_vm7 = vcmp.gt.f32.partialorder %v7018_v0, 0.5  ;;  %v2395_v26 = vmul.f32 0.25, %v4731_v8 }
 0x2c9   : > { %3783 = vst.msk [vmem:[%s6970_s22 + $0x10] sm:$0xff] %vm3780_vm8, %v3718_v50  ;;  %v3655_v60 = vsel %vm3463_vm1, %v3527_v39, %v3591_v13  ;;  %v3590_v56 = vsel %vm3142_vm14, %v3398_v24, %v6925_v23  ;;  %v3211_v30 = vsel %vm3147_vm7, %v7018_v0, 1.0  ;;  %vm2523_vm3 = vcmp.le.f32.partialorder %v6908_v4, 0.0 }
 0x2ca   : > { %v3721_v62 = vmul.f32 %v6946_v16, %v3655_v60  ;;  %v3654_v19 = vsel %vm3462_vm5, %v3526_v20, %v3590_v56  ;;  %vm3146_vm12 = vcmp.gt.f32.partialorder %v7029_v17, 0.5  ;;  %v4269_v23 = vpop.f32.mrb[10].mxu1  ;;  %v4733_v32 = vpop.eup %4732  ;;  %4736 = vrcp.f32 %v3211_v30 }
 0x2cb   : > { %v3720_v57 = vmul.f32 %v6946_v16, %v3654_v19  ;;  %v3210_v53 = vsel %vm3146_vm12, %v7029_v17, 1.0  ;;  %v2869_v1 = vpop.f32.mrb[11].mxu1  ;;  %v3337_v47 = vmul.f32 0.25, %v4733_v32  ;;  %v7049_v59 = vadd.f32 %v4269_v23, %v6872_v36 }
 0x2cc   : > { %3786 = vst.msk [vmem:[%s6970_s22 + $0x28] sm:$0xff] %vm3780_vm8, %v3721_v62  ;;  %4738 = vrcp.f32 %v3210_v53  ;;  %v7052_v10 = vadd.f32 %v6872_v36, %v2869_v1  ;;  %vm2204_vm13 = vcmp.gt.f32.partialorder %v7033_v35, 0.5  ;;  %vm3465_vm14 = vcmp.le.f32.partialorder %v6952_v27, 0.0 }
 0x2cd   : > { %3785 = vst.msk [vmem:[%s6970_s22 + $0x20] sm:$0xff] %vm3780_vm8, %v3720_v57  ;;  %v7054_v29 = vpop.f32.mrb[54].mxu0  ;;  %v3401_v42 = vsub.f32 1.0, %v3337_v47  ;;  %vm3149_vm15 = vcmp.gt.f32.partialorder %v7049_v59, 0.5  ;;  %v2459_v51 = vsub.f32 1.0, %v2395_v26  ;;  %v2268_v49 = vsel %vm2204_vm13, %v7033_v35, 1.0 }
 0x2ce   : > { %v4735_v22 = vpop.eup %4734  ;;  %v7061_v25 = vpop.f32.mrb[55].mxu0  ;;  %v3529_v21 = vmul.f32 0.01, %v6952_v27  ;;  %v3213_v12 = vsel %vm3149_vm15, %v7049_v59, 1.0  ;;  %vm3148_vm0 = vcmp.gt.f32.partialorder %v7052_v10, 0.5  ;;  %vm3464_vm9 = vcmp.le.f32.partialorder %v6962_v45, 0.0 }
 0x2cf   : > { %v3336_v6 = vmul.f32 0.25, %v4735_v22  ;;  %v3593_v14 = vsel %vm3145_vm11, %v3401_v42, %v6952_v27  ;;  %4740 = vrcp.f32 %v3213_v12  ;;  %v3212_v18 = vsel %vm3148_vm0, %v7052_v10, 1.0 }
 0x2d0   : > { %v3657_v41 = vsel %vm3465_vm14, %v3529_v21, %v3593_v14  ;;  %4742 = vrcp.f32 %v3212_v18  ;;  %v3528_v27 = vmul.f32 0.01, %v6962_v45  ;;  %v2651_v48 = vsel %vm2203_vm10, %v2459_v51, %v6908_v4 }
 0x2d1   : > { %v3400_v54 = vsub.f32 1.0, %v3336_v6  ;;  %v4272_v37 = vpop.f32.mrb[12].mxu1  ;;  %v3723_v5 = vmul.f32 %v6946_v16, %v3657_v41  ;;  %v2715_v43 = vsel %vm2523_vm3, %v2587_v7, %v2651_v48  ;;  %4744 = vrcp.f32 %v2268_v49  ;;  %v7151_v7 = vld [vmem:[%s7871_s5] ss:$0 sm:$0xff] }
 0x2d2   : > { %v7084_v61 = vadd.f32 %v4272_v37, %v6872_v36  ;;  %v2879_v52 = vpop.f32.mrb[13].mxu1  ;;  %v7098_v31 = vadd.f32 %v6779_v38, %v6959_v3  ;;  %vm3467_vm10 = vcmp.le.f32.partialorder %v7018_v0, 0.0  ;;  %4328 = vmatmul.mubr.f32.gmra.mrb[50].mxu1 %v2715_v43  ;;  %v3531_v33 = vmul.f32 0.01, %v7018_v0 }
 0x2d3   : > { %v3592_v15 = vsel %vm3144_vm6, %v3400_v54, %v6962_v45  ;;  %v7092_v28 = vadd.f32 %v6872_v36, %v2879_v52  ;;  %3788 = vst.msk [vmem:[%s6970_s22 + $0x38] sm:$0xff] %vm3780_vm8, %v3723_v5  ;;  %vm3466_vm4 = vcmp.le.f32.partialorder %v7029_v17, 0.0  ;;  %v3530_v2 = vmul.f32 0.01, %v7029_v17 }
 0x2d4   : > { %v3656_v44 = vsel %vm3464_vm9, %v3528_v27, %v3592_v15  ;;  %vm3151_vm2 = vcmp.gt.f32.partialorder %v7084_v61, 0.5  ;;  %v4737_v45 = vpop.eup %4736  ;;  %vm3469_vm6 = vcmp.le.f32.partialorder %v7049_v59, 0.0  ;;  %v7123_v58 = vmul.f32 0.01, %v7033_v35 }
 0x2d5   : > { %v3722_v4 = vmul.f32 %v6946_v16, %v3656_v44  ;;  %v3215_v9 = vsel %vm3151_vm2, %v7084_v61, 1.0  ;;  %vm3150_vm11 = vcmp.gt.f32.partialorder %v7092_v28, 0.5  ;;  %v4275_v38 = vpop.f32.mrb[14].mxu1  ;;  %v3339_v46 = vmul.f32 0.25, %v4737_v45 }
 0x2d6   : > { %v4739_v3 = vpop.eup %4738  ;;  %4746 = vrcp.f32 %v3215_v9  ;;  %v3214_v34 = vsel %vm3150_vm11, %v7092_v28, 1.0  ;;  %v2889_v11 = vpop.f32.mrb[15].mxu1  ;;  %v7115_v50 = vadd.f32 %v4275_v38, %v6872_v36  ;;  %v3533_v13 = vmul.f32 0.01, %v7049_v59 }
 0x2d7   : > { %3787 = vst.msk [vmem:[%s6970_s22 + $0x30] sm:$0xff] %vm3780_vm8, %v3722_v4  ;;  %v3338_v40 = vmul.f32 0.25, %v4739_v3  ;;  %4748 = vrcp.f32 %v3214_v34  ;;  %v7118_v39 = vadd.f32 %v6872_v36, %v2889_v11  ;;  %v3403_v24 = vsub.f32 1.0, %v3339_v46 }
 0x2d8   : > { %vm3468_vm1 = vcmp.le.f32.partialorder %v7052_v10, 0.0  ;;  %vm3153_vm5 = vcmp.gt.f32.partialorder %v7115_v50, 0.5  ;;  %v3532_v55 = vmul.f32 0.01, %v7052_v10  ;;  %v7161_v51 = vadd.f32 %v7151_v7, %v7061_v25 }
 0x2d9   : > { %v3402_v8 = vsub.f32 1.0, %v3338_v40  ;;  %v4741_v20 = vpop.eup %4740  ;;  %v3595_v63 = vsel %vm3147_vm7, %v3403_v24, %v7018_v0  ;;  %v3217_v60 = vsel %vm3153_vm5, %v7115_v50, 1.0  ;;  %vm3152_vm3 = vcmp.gt.f32.partialorder %v7118_v39, 0.5 }
 0x2da   : > { %v4743_v56 = vpop.eup %4742  ;;  %v3659_v62 = vsel %vm3467_vm10, %v3531_v33, %v3595_v63  ;;  %v3341_v57 = vmul.f32 0.25, %v4741_v20  ;;  %4750 = vrcp.f32 %v3217_v60  ;;  %v3216_v32 = vsel %vm3152_vm3, %v7118_v39, 1.0 }
 0x2db   : > { %v3594_v19 = vsel %vm3146_vm12, %v3402_v8, %v7029_v17  ;;  %v3725_v30 = vmul.f32 %v6946_v16, %v3659_v62  ;;  %v3340_v26 = vmul.f32 0.25, %v4743_v56  ;;  %v4745_v53 = vpop.eup %4744  ;;  %v7155_v17 = vadd.f32 %v7151_v7, %v7054_v29 }
 0x2dc   : > { %v3658_v23 = vsel %vm3466_vm4, %v3530_v2, %v3594_v19  ;;  %v3405_v47 = vsub.f32 1.0, %v3341_v57  ;;  %4752 = vrcp.f32 %v3216_v32  ;;  %vm3471_vm7 = vcmp.le.f32.partialorder %v7084_v61, 0.0 }
 0x2dd   : > { %v4278_v0 = vpop.f32.mrb[16].mxu1  ;;  %v3724_v1 = vmul.f32 %v6946_v16, %v3658_v23  ;;  %3790 = vst.msk [vmem:[%s6970_s22 + $0x48] sm:$0xff] %vm3780_vm8, %v3725_v30  ;;  %v3404_v42 = vsub.f32 1.0, %v3340_v26  ;;  %vm2524_vm12 = vcmp.le.f32.partialorder %v7033_v35, 0.0  ;;  %v3535_v6 = vmul.f32 0.01, %v7084_v61 }
 0x2de   : > { %v2899_v22 = vpop.f32.mrb[17].mxu1  ;;  %v7165_v21 = vadd.f32 %v4278_v0, %v6872_v36  ;;  %v3597_v29 = vsel %vm3149_vm15, %v3405_v47, %v7049_v59  ;;  %vm2205_vm14 = vcmp.gt.f32.partialorder %v7098_v31, 0.5  ;;  %v2396_v49 = vmul.f32 0.25, %v4745_v53 }
 0x2df   : > { %3789 = vst.msk [vmem:[%s6970_s22 + $0x40] sm:$0xff] %vm3780_vm8, %v3724_v1  ;;  %v7175_v12 = vadd.f32 %v6872_v36, %v2899_v22  ;;  %v3661_v14 = vsel %vm3469_vm6, %v3533_v13, %v3597_v29  ;;  %v3596_v18 = vsel %vm3148_vm0, %v3404_v42, %v7052_v10  ;;  %vm2206_vm15 = vcmp.gt.f32.partialorder %v7161_v51, 0.5 }
 0x2e0   : > { %v4747_v25 = vpop.eup %4746  ;;  %vm3155_vm9 = vcmp.gt.f32.partialorder %v7165_v21, 0.5  ;;  %v3727_v54 = vmul.f32 %v6946_v16, %v3661_v14  ;;  %v3660_v37 = vsel %vm3468_vm1, %v3532_v55, %v3596_v18  ;;  %vm3470_vm0 = vcmp.le.f32.partialorder %v7092_v28, 0.0 }
 0x2e1   : > { %v4749_v41 = vpop.eup %4748  ;;  %v3343_v5 = vmul.f32 0.25, %v4747_v25  ;;  %v3219_v59 = vsel %vm3155_vm9, %v7165_v21, 1.0  ;;  %v7190_v27 = vpop.f32.mrb[56].mxu0  ;;  %v3726_v48 = vmul.f32 %v6946_v16, %v3660_v37  ;;  %v3534_v10 = vmul.f32 0.01, %v7092_v28 }
 0x2e2   : > { %v3342_v52 = vmul.f32 0.25, %v4749_v41  ;;  %4754 = vrcp.f32 %v3219_v59  ;;  %v2113_v15 = vpop.f32.mrb[57].mxu0  ;;  %3792 = vst.msk [vmem:[%s6970_s22 + $0x58] sm:$0xff] %vm3780_vm8, %v3727_v54  ;;  %vm3154_vm10 = vcmp.gt.f32.partialorder %v7175_v12, 0.5  ;;  %v2460_v4 = vsub.f32 1.0, %v2396_v49 }
 0x2e3   : > { %v3407_v43 = vsub.f32 1.0, %v3343_v5  ;;  %3791 = vst.msk [vmem:[%s6970_s22 + $0x50] sm:$0xff] %vm3780_vm8, %v3726_v48  ;;  %v3218_v45 = vsel %vm3154_vm10, %v7175_v12, 1.0  ;;  %v2269_v33 = vsel %vm2205_vm14, %v7098_v31, 1.0  ;;  %vm3473_vm4 = vcmp.le.f32.partialorder %v7115_v50, 0.0 }
 0x2e4   : > { %v3406_v44 = vsub.f32 1.0, %v3342_v52  ;;  %v4751_v9 = vpop.eup %4750  ;;  %4756 = vrcp.f32 %v3218_v45  ;;  %v2270_v3 = vsel %vm2206_vm15, %v7161_v51, 1.0  ;;  %v2652_v40 = vsel %vm2204_vm13, %v2460_v4, %v7033_v35 }
 0x2e5   : > { %v3599_v38 = vsel %vm3151_vm2, %v3407_v43, %v7084_v61  ;;  %v3345_v11 = vmul.f32 0.25, %v4751_v9  ;;  %v2716_v61 = vsel %vm2524_vm12, %v7123_v58, %v2652_v40  ;;  %4758 = vrcp.f32 %v2269_v33 }
 0x2e6   : > { %v3663_v46 = vsel %vm3471_vm7, %v3535_v6, %v3599_v38  ;;  %v3598_v34 = vsel %vm3150_vm11, %v3406_v44, %v7092_v28  ;;  %v4753_v24 = vpop.eup %4752  ;;  %4330 = vmatprep.mubr.f32.mxu1 %v2716_v61  ;;  %4760 = vrcp.f32 %v2270_v3  ;;  %v3537_v60 = vmul.f32 0.01, %v7115_v50 }
 0x2e7   : > { %v3729_v2 = vmul.f32 %v6946_v16, %v3663_v46  ;;  %v3662_v8 = vsel %vm3470_vm0, %v3534_v10, %v3598_v34  ;;  %v3409_v20 = vsub.f32 1.0, %v3345_v11  ;;  %v3344_v63 = vmul.f32 0.25, %v4753_v24 }
 0x2e8   : > { %v3728_v13 = vmul.f32 %v6946_v16, %v3662_v8  ;;  %v4281_v55 = vpop.f32.mrb[18].mxu1  ;;  %vm3472_vm13 = vcmp.le.f32.partialorder %v7118_v39, 0.0  ;;  %vm2207_vm2 = vcmp.gt.f32.partialorder %v7155_v17, 0.5  ;;  %v3536_v62 = vmul.f32 0.01, %v7118_v39 }
 0x2e9   : > { %3794 = vst.msk [vmem:[%s6970_s22 + $0x68] sm:$0xff] %vm3780_vm8, %v3729_v2  ;;  %v7234_v28 = vadd.f32 %v4281_v55, %v6872_v36  ;;  %v2909_v56 = vpop.f32.mrb[19].mxu1  ;;  %v3601_v35 = vsel %vm3153_vm5, %v3409_v20, %v7115_v50  ;;  %v3408_v58 = vsub.f32 1.0, %v3344_v63  ;;  %v7251_v23 = vadd.f32 %v7151_v7, %v2113_v15 }
 0x2ea   : > { %3793 = vst.msk [vmem:[%s6970_s22 + $0x60] sm:$0xff] %vm3780_vm8, %v3728_v13  ;;  %v7244_v19 = vadd.f32 %v6872_v36, %v2909_v56  ;;  %v7246_v57 = vpop.f32.mrb[58].mxu0  ;;  %v3665_v30 = vsel %vm3473_vm4, %v3537_v60, %v3601_v35  ;;  %v2271_v26 = vsel %vm2207_vm2, %v7155_v17, 1.0  ;;  %vm2525_vm1 = vcmp.le.f32.partialorder %v7098_v31, 0.0 }
 0x2eb   : > { %vm3157_vm11 = vcmp.gt.f32.partialorder %v7234_v28, 0.5  ;;  %v7257_v32 = vpop.f32.mrb[59].mxu0  ;;  %v3731_v53 = vmul.f32 %v6946_v16, %v3665_v30  ;;  %v3600_v1 = vsel %vm3152_vm3, %v3408_v58, %v7118_v39  ;;  %v2589_v6 = vmul.f32 0.01, %v7098_v31 }
 0x2ec   : > { %v4755_v0 = vpop.eup %4754  ;;  %v3221_v50 = vsel %vm3157_vm11, %v7234_v28, 1.0  ;;  %vm3156_vm6 = vcmp.gt.f32.partialorder %v7244_v19, 0.5  ;;  %v3664_v47 = vsel %vm3472_vm13, %v3536_v62, %v3600_v1  ;;  %vm3475_vm5 = vcmp.le.f32.partialorder %v7165_v21, 0.0 }
 0x2ed   : > { %v3347_v22 = vmul.f32 0.25, %v4755_v0  ;;  %4762 = vrcp.f32 %v3221_v50  ;;  %v3220_v42 = vsel %vm3156_vm6, %v7244_v19, 1.0  ;;  %3796 = vst.msk [vmem:[%s6970_s22 + $0x78] sm:$0xff] %vm3780_vm8, %v3731_v53  ;;  %v3730_v29 = vmul.f32 %v6946_v16, %v3664_v47 }
 0x2ee   : > { %4764 = vrcp.f32 %v3220_v42  ;;  %v4757_v25 = vpop.eup %4756  ;;  %vm2526_vm3 = vcmp.le.f32.partialorder %v7161_v51, 0.0  ;;  %v3539_v18 = vmul.f32 0.01, %v7165_v21  ;;  %vm3474_vm7 = vcmp.le.f32.partialorder %v7175_v12, 0.0 }
 0x2ef   : > { %v3411_v14 = vsub.f32 1.0, %v3347_v22  ;;  %4766 = vrcp.f32 %v2271_v26  ;;  %v4284_v39 = vpop.f32.mrb[20].mxu1  ;;  %3795 = vst.msk [vmem:[%s6970_s22 + $0x70] sm:$0xff] %vm3780_vm8, %v3730_v29  ;;  %v3346_v49 = vmul.f32 0.25, %v4757_v25  ;;  %v4759_v37 = vpop.eup %4758  ;;  %v3538_v59 = vmul.f32 0.01, %v7175_v12 }
 0x2f0   : > { %v7284_v41 = vadd.f32 %v4284_v39, %v6872_v36  ;;  %v2919_v54 = vpop.f32.mrb[21].mxu1  ;;  %vm2208_vm12 = vcmp.gt.f32.partialorder %v7251_v23, 0.5  ;;  %v4761_v52 = vpop.eup %4760  ;;  %v2397_v10 = vmul.f32 0.25, %v4759_v37  ;;  %v7302_v4 = vadd.f32 %v7151_v7, %v7190_v27 }
 0x2f1   : > { %v3603_v5 = vsel %vm3155_vm9, %v3411_v14, %v7165_v21  ;;  %v7291_v48 = vadd.f32 %v6872_v36, %v2919_v54  ;;  %v3410_v43 = vsub.f32 1.0, %v3346_v49  ;;  %v2398_v33 = vmul.f32 0.25, %v4761_v52 }
 0x2f2   : > { %v3667_v15 = vsel %vm3475_vm5, %v3539_v18, %v3603_v5  ;;  %vm3159_vm0 = vcmp.gt.f32.partialorder %v7284_v41, 0.5  ;;  %v7297_v44 = vpop.f32.mrb[60].mxu0  ;;  %v2461_v3 = vsub.f32 1.0, %v2397_v10  ;;  %v2590_v46 = vmul.f32 0.01, %v7161_v51 }
 0x2f3   : > { %v3733_v45 = vmul.f32 %v6946_v16, %v3667_v15  ;;  %v3223_v9 = vsel %vm3159_vm0, %v7284_v41, 1.0  ;;  %v7307_v38 = vpop.f32.mrb[61].mxu0  ;;  %v3602_v21 = vsel %vm3154_vm10, %v3410_v43, %v7175_v12  ;;  %v2462_v34 = vsub.f32 1.0, %v2398_v33 }
 0x2f4   : > { %4768 = vrcp.f32 %v3223_v9  ;;  %v3666_v27 = vsel %vm3474_vm7, %v3538_v59, %v3602_v21  ;;  %vm3158_vm9 = vcmp.gt.f32.partialorder %v7291_v48, 0.5  ;;  %v2272_v11 = vsel %vm2208_vm12, %v7251_v23, 1.0 }
 0x2f5   : > { %3798 = vst.msk [vmem:[%s6970_s22 + $0x88] sm:$0xff] %vm3780_vm8, %v3733_v45  ;;  %v3732_v40 = vmul.f32 %v6946_v16, %v3666_v27  ;;  %v2653_v24 = vsel %vm2205_vm14, %v2461_v3, %v7098_v31  ;;  %vm2527_vm10 = vcmp.le.f32.partialorder %v7155_v17, 0.0  ;;  %v3222_v12 = vsel %vm3158_vm9, %v7291_v48, 1.0 }
 0x2f6   : > { %v2717_v8 = vsel %vm2525_vm1, %v2589_v6, %v2653_v24  ;;  %vm3477_vm4 = vcmp.le.f32.partialorder %v7234_v28, 0.0  ;;  %v2654_v61 = vsel %vm2206_vm15, %v2462_v34, %v7161_v51  ;;  %4770 = vrcp.f32 %v3222_v12 }
 0x2f7   : > { %v4763_v2 = vpop.eup %4762  ;;  %v4287_v13 = vpop.f32.mrb[22].mxu1  ;;  %3797 = vst.msk [vmem:[%s6970_s22 + $0x80] sm:$0xff] %vm3780_vm8, %v3732_v40  ;;  %4331 = vmatmul.mubr.f32.gmra.mrb[52].mxu1 %v2717_v8  ;;  %v3541_v55 = vmul.f32 0.01, %v7234_v28  ;;  %v2718_v60 = vsel %vm2526_vm3, %v2590_v46, %v2654_v61  ;;  %4772 = vrcp.f32 %v2272_v11  ;;  %vm3476_vm14 = vcmp.le.f32.partialorder %v7244_v19, 0.0 }
 0x2f8   : > { %v4765_v20 = vpop.eup %4764  ;;  %v3349_v63 = vmul.f32 0.25, %v4763_v2  ;;  %v2929_v31 = vpop.f32.mrb[23].mxu1  ;;  %4333 = vmatprep.mubr.f32.mxu1 %v2718_v60  ;;  %v7343_v58 = vadd.f32 %v7151_v7, %v7257_v32  ;;  %vm2209_vm15 = vcmp.gt.f32.partialorder %v7302_v4, 0.5  ;;  %v3540_v26 = vmul.f32 0.01, %v7244_v19 }
 0x2f9   : > { %v4767_v56 = vpop.eup %4766  ;;  %v3348_v35 = vmul.f32 0.25, %v4765_v20  ;;  %v2273_v0 = vsel %vm2209_vm15, %v7302_v4, 1.0  ;;  %v7356_v50 = vadd.f32 %v7151_v7, %v7246_v57  ;;  %v7359_v32 = vadd.f32 %v4287_v13, %v6872_v36 }
 0x2fa   : > { %v7346_v62 = vpop.f32.mrb[62].mxu0  ;;  %v3413_v30 = vsub.f32 1.0, %v3349_v63  ;;  %v2399_v51 = vmul.f32 0.25, %v4767_v56  ;;  %4774 = vrcp.f32 %v2273_v0  ;;  %v2591_v42 = vmul.f32 0.01, %v7155_v17 }
 0x2fb   : > { %v7352_v53 = vpop.f32.mrb[63].mxu0  ;;  %v3412_v1 = vsub.f32 1.0, %v3348_v35  ;;  %v7366_v29 = vadd.f32 %v6872_v36, %v2929_v31  ;;  %vm3161_vm13 = vcmp.gt.f32.partialorder %v7359_v32, 0.5  ;;  %vm2210_vm1 = vcmp.gt.f32.partialorder %v7343_v58, 0.5 }
 0x2fc   : > { %v3605_v47 = vsel %vm3157_vm11, %v3413_v30, %v7234_v28  ;;  %v2463_v22 = vsub.f32 1.0, %v2399_v51  ;;  %v3225_v49 = vsel %vm3161_vm13, %v7359_v32, 1.0  ;;  %vm2528_vm11 = vcmp.le.f32.partialorder %v7251_v23, 0.0 }
 0x2fd   : > { %v3669_v6 = vsel %vm3477_vm4, %v3541_v55, %v3605_v47  ;;  %v3604_v57 = vsel %vm3156_vm6, %v3412_v1, %v7244_v19  ;;  %4776 = vrcp.f32 %v3225_v49  ;;  %vm3479_vm6 = vcmp.le.f32.partialorder %v7284_v41, 0.0 }
 0x2fe   : > { %v4290_v25 = vpop.f32.mrb[24].mxu1  ;;  %v4769_v14 = vpop.eup %4768  ;;  %v3735_v39 = vmul.f32 %v6946_v16, %v3669_v6  ;;  %v3668_v18 = vsel %vm3476_vm14, %v3540_v26, %v3604_v57  ;;  %v2655_v28 = vsel %vm2207_vm2, %v2463_v22, %v7155_v17  ;;  %v3543_v19 = vmul.f32 0.01, %v7284_v41 }
 0x2ff   : > { %v2939_v54 = vpop.f32.mrb[25].mxu1  ;;  %v3734_v37 = vmul.f32 %v6946_v16, %v3668_v18  ;;  %v2719_v5 = vsel %vm2527_vm10, %v2591_v42, %v2655_v28  ;;  %v3351_v59 = vmul.f32 0.25, %v4769_v14  ;;  %vm3478_vm2 = vcmp.le.f32.partialorder %v7291_v48, 0.0 }
 0x300   : > { %3800 = vst.msk [vmem:[%s6970_s22 + $0x98] sm:$0xff] %vm3780_vm8, %v3735_v39  ;;  %4334 = vmatmul.mubr.f32.gmra.mrb[54].mxu1 %v2719_v5  ;;  %vm3160_vm5 = vcmp.gt.f32.partialorder %v7366_v29, 0.5  ;;  %v4771_v52 = vpop.eup %4770  ;;  %v3542_v15 = vmul.f32 0.01, %v7291_v48  ;;  %v2274_v10 = vsel %vm2210_vm1, %v7343_v58, 1.0  ;;  %vm2211_vm3 = vcmp.gt.f32.partialorder %v7356_v50, 0.5 }
 0x301   : > { %3799 = vst.msk [vmem:[%s6970_s22 + $0x90] sm:$0xff] %vm3780_vm8, %v3734_v37  ;;  %v3415_v17 = vsub.f32 1.0, %v3351_v59  ;;  %v3224_v43 = vsel %vm3160_vm5, %v7366_v29, 1.0  ;;  %v4773_v45 = vpop.eup %4772  ;;  %v3350_v33 = vmul.f32 0.25, %v4771_v52  ;;  %v2592_v9 = vmul.f32 0.01, %v7251_v23 }
 0x302   : > { %4778 = vrcp.f32 %v3224_v43  ;;  %v2400_v3 = vmul.f32 0.25, %v4773_v45  ;;  %v2275_v46 = vsel %vm2211_vm3, %v7356_v50, 1.0  ;;  %v7415_v40 = vadd.f32 %v7151_v7, %v7297_v44 }
 0x303   : > { %v3607_v21 = vsel %vm3159_vm0, %v3415_v17, %v7284_v41  ;;  %4780 = vrcp.f32 %v2274_v10  ;;  %v3414_v11 = vsub.f32 1.0, %v3350_v33  ;;  %vm2529_vm7 = vcmp.le.f32.partialorder %v7302_v4, 0.0 }
 0x304   : > { %v3671_v34 = vsel %vm3479_vm6, %v3543_v19, %v3607_v21  ;;  %4782 = vrcp.f32 %v2275_v46  ;;  %v4775_v12 = vpop.eup %4774  ;;  %v2464_v8 = vsub.f32 1.0, %v2400_v3  ;;  %v7421_v61 = vadd.f32 %v7151_v7, %v7307_v38 }
 0x305   : > { %v4293_v27 = vpop.f32.mrb[26].mxu1  ;;  %v3737_v2 = vmul.f32 %v6946_v16, %v3671_v34  ;;  %v3606_v41 = vsel %vm3158_vm9, %v3414_v11, %v7291_v48  ;;  %v2401_v13 = vmul.f32 0.25, %v4775_v12  ;;  %v7427_v44 = vadd.f32 %v4290_v25, %v6872_v36 }
 0x306   : > { %v2949_v24 = vpop.f32.mrb[27].mxu1  ;;  %v7430_v20 = vadd.f32 %v6872_v36, %v2939_v54  ;;  %v3670_v63 = vsel %vm3478_vm2, %v3542_v15, %v3606_v41  ;;  %v2656_v38 = vsel %vm2208_vm12, %v2464_v8, %v7251_v23  ;;  %v2593_v55 = vmul.f32 0.01, %v7302_v4 }
 0x307   : > { %3802 = vst.msk [vmem:[%s6970_s22 + $0xa8] sm:$0xff] %vm3780_vm8, %v3737_v2  ;;  %vm3481_vm0 = vcmp.le.f32.partialorder %v7359_v32, 0.0  ;;  %v3736_v60 = vmul.f32 %v6946_v16, %v3670_v63  ;;  %v2720_v31 = vsel %vm2528_vm11, %v2592_v9, %v2656_v38  ;;  %v2465_v56 = vsub.f32 1.0, %v2401_v13  ;;  %v4777_v35 = vpop.eup %4776 }
 0x308   : > { %vm3163_vm9 = vcmp.gt.f32.partialorder %v7427_v44, 0.5  ;;  %4336 = vmatprep.mubr.f32.mxu1 %v2720_v31  ;;  %v3545_v48 = vmul.f32 0.01, %v7359_v32  ;;  %vm3162_vm12 = vcmp.gt.f32.partialorder %v7430_v20, 0.5  ;;  %vm2212_vm10 = vcmp.gt.f32.partialorder %v7421_v61, 0.5 }
 0x309   : > { %v3227_v30 = vsel %vm3163_vm9, %v7427_v44, 1.0  ;;  %3801 = vst.msk [vmem:[%s6970_s22 + $0xa0] sm:$0xff] %vm3780_vm8, %v3736_v60  ;;  %v2657_v23 = vsel %vm2209_vm15, %v2465_v56, %v7302_v4  ;;  %v3353_v26 = vmul.f32 0.25, %v4777_v35  ;;  %vm2530_vm4 = vcmp.le.f32.partialorder %v7343_v58, 0.0  ;;  %v7542_v60 = vld [vmem:[%s7871_s5 + $0x1] ss:$0 sm:$0xff] }
 0x30a   : > { %4784 = vrcp.f32 %v3227_v30  ;;  %v3226_v51 = vsel %vm3162_vm12, %v7430_v20, 1.0  ;;  %v2721_v0 = vsel %vm2529_vm7, %v2593_v55, %v2657_v23  ;;  %vm3480_vm14 = vcmp.le.f32.partialorder %v7366_v29, 0.0 }
 0x30b   : > { %v3544_v1 = vmul.f32 0.01, %v7366_v29  ;;  %4786 = vrcp.f32 %v3226_v51  ;;  %4337 = vmatmul.mubr.f32.gmra.mrb[56].mxu1 %v2721_v0  ;;  %v3417_v22 = vsub.f32 1.0, %v3353_v26  ;;  %v2594_v42 = vmul.f32 0.01, %v7343_v58 }
 0x30c   : > { %v4779_v47 = vpop.eup %4778  ;;  %v2276_v6 = vsel %vm2212_vm10, %v7421_v61, 1.0  ;;  %vm2213_vm15 = vcmp.gt.f32.partialorder %v7415_v40, 0.5  ;;  %v7471_v4 = vadd.f32 %v7151_v7, %v7346_v62  ;;  %v7481_v49 = vadd.f32 %v7151_v7, %v7352_v53 }
 0x30d   : > { %v4781_v57 = vpop.eup %4780  ;;  %v3352_v25 = vmul.f32 0.25, %v4779_v47  ;;  %4788 = vrcp.f32 %v2276_v6  ;;  %v2277_v14 = vsel %vm2213_vm15, %v7415_v40, 1.0  ;;  %v3609_v18 = vsel %vm3161_vm13, %v3417_v22, %v7359_v32 }
 0x30e   : > { %v4783_v39 = vpop.eup %4782  ;;  %v2402_v28 = vmul.f32 0.25, %v4781_v57  ;;  %4790 = vrcp.f32 %v2277_v14  ;;  %v3673_v62 = vsel %vm3481_vm0, %v3545_v48, %v3609_v18  ;;  %v7486_v5 = vadd.f32 %v4293_v27, %v6872_v36 }
 0x30f   : > { %v3416_v54 = vsub.f32 1.0, %v3352_v25  ;;  %v2403_v37 = vmul.f32 0.25, %v4783_v39  ;;  %v3739_v59 = vmul.f32 %v6946_v16, %v3673_v62  ;;  %vm2531_vm13 = vcmp.le.f32.partialorder %v7356_v50, 0.0 }
 0x310   : > { %v2466_v19 = vsub.f32 1.0, %v2402_v28  ;;  %v7491_v52 = vadd.f32 %v6872_v36, %v2949_v24  ;;  %v2595_v32 = vmul.f32 0.01, %v7356_v50  ;;  %vm3165_vm11 = vcmp.gt.f32.partialorder %v7486_v5, 0.5 }
 0x311   : > { %v3608_v7 = vsel %vm3160_vm5, %v3416_v54, %v7366_v29  ;;  %v2467_v53 = vsub.f32 1.0, %v2403_v37  ;;  %3804 = vst.msk [vmem:[%s6970_s22 + $0xb8] sm:$0xff] %vm3780_vm8, %v3739_v59  ;;  %v3229_v15 = vsel %vm3165_vm11, %v7486_v5, 1.0  ;;  %vm2214_vm6 = vcmp.gt.f32.partialorder %v7481_v49, 0.5 }
 0x312   : > { %v3672_v17 = vsel %vm3480_vm14, %v3544_v1, %v3608_v7  ;;  %v2658_v36 = vsel %vm2210_vm1, %v2466_v19, %v7343_v58  ;;  %4792 = vrcp.f32 %v3229_v15  ;;  %vm2532_vm1 = vcmp.le.f32.partialorder %v7421_v61, 0.0 }
 0x313   : > { %v4296_v43 = vpop.f32.mrb[28].mxu1  ;;  %v3738_v10 = vmul.f32 %v6946_v16, %v3672_v17  ;;  %v2722_v45 = vsel %vm2530_vm4, %v2594_v42, %v2658_v36  ;;  %v2659_v29 = vsel %vm2211_vm3, %v2467_v53, %v7356_v50  ;;  %vm3164_vm2 = vcmp.gt.f32.partialorder %v7491_v52, 0.5 }
 0x314   : > { %v2959_v33 = vpop.f32.mrb[29].mxu1  ;;  %v4785_v9 = vpop.eup %4784  ;;  %4339 = vmatprep.mubr.f32.mxu1 %v2722_v45  ;;  %v2723_v21 = vsel %vm2531_vm13, %v2595_v32, %v2659_v29  ;;  %vm3483_vm5 = vcmp.le.f32.partialorder %v7427_v44, 0.0  ;;  %v3228_v46 = vsel %vm3164_vm2, %v7491_v52, 1.0  ;;  %v2278_v50 = vsel %vm2214_vm6, %v7481_v49, 1.0 }
 0x315   : > { %v4787_v3 = vpop.eup %4786  ;;  %3803 = vst.msk [vmem:[%s6970_s22 + $0xb0] sm:$0xff] %vm3780_vm8, %v3738_v10  ;;  %4340 = vmatmul.mubr.f32.gmra.mrb[58].mxu1 %v2723_v21  ;;  %v3355_v58 = vmul.f32 0.25, %v4785_v9  ;;  %v3547_v27 = vmul.f32 0.01, %v7427_v44  ;;  %4794 = vrcp.f32 %v3228_v46  ;;  %vm2215_vm3 = vcmp.gt.f32.partialorder %v7471_v4, 0.5 }
 0x316   : > { %v3354_v34 = vmul.f32 0.25, %v4787_v3  ;;  %vm3482_vm7 = vcmp.le.f32.partialorder %v7430_v20, 0.0  ;;  %4796 = vrcp.f32 %v2278_v50  ;;  %v2279_v12 = vsel %vm2215_vm3, %v7471_v4, 1.0 }
 0x317   : > { %v4789_v11 = vpop.eup %4788  ;;  %v3419_v24 = vsub.f32 1.0, %v3355_v58  ;;  %v3546_v41 = vmul.f32 0.01, %v7430_v20  ;;  %4798 = vrcp.f32 %v2279_v12  ;;  %v2596_v38 = vmul.f32 0.01, %v7421_v61 }
 0x318   : > { %v4791_v2 = vpop.eup %4790  ;;  %v3418_v8 = vsub.f32 1.0, %v3354_v34  ;;  %v2404_v13 = vmul.f32 0.25, %v4789_v11  ;;  %v7545_v31 = vadd.f32 %v7542_v60, %v4296_v43  ;;  %v7553_v30 = vadd.f32 %v7542_v60, %v2959_v33 }
 0x319   : > { %v3611_v63 = vsel %vm3163_vm9, %v3419_v24, %v7427_v44  ;;  %v2405_v55 = vmul.f32 0.25, %v4791_v2  ;;  %v2597_v47 = vmul.f32 0.01, %v7415_v40  ;;  %vm2533_vm9 = vcmp.le.f32.partialorder %v7415_v40, 0.0 }
 0x31a   : > { %v3675_v56 = vsel %vm3483_vm5, %v3547_v27, %v3611_v63  ;;  %v3610_v35 = vsel %vm3162_vm12, %v3418_v8, %v7430_v20  ;;  %v2468_v48 = vsub.f32 1.0, %v2404_v13  ;;  %vm3167_vm0 = vcmp.gt.f32.partialorder %v7545_v31, 0.5 }
 0x31b   : > { %v3741_v23 = vmul.f32 %v6946_v16, %v3675_v56  ;;  %v3674_v26 = vsel %vm3482_vm7, %v3546_v41, %v3610_v35  ;;  %v2469_v51 = vsub.f32 1.0, %v2405_v55  ;;  %v3231_v22 = vsel %vm3167_vm0, %v7545_v31, 1.0 }
 0x31c   : > { %v3740_v0 = vmul.f32 %v6946_v16, %v3674_v26  ;;  %v2660_v1 = vsel %vm2212_vm10, %v2468_v48, %v7421_v61  ;;  %v4793_v20 = vpop.eup %4792  ;;  %4800 = vrcp.f32 %v3231_v22  ;;  %vm3166_vm12 = vcmp.gt.f32.partialorder %v7553_v30, 0.5 }
 0x31d   : > { %v4299_v44 = vpop.f32.mrb[30].mxu1  ;;  %3806 = vst.msk [vmem:[%s6970_s22 + $0xc8] sm:$0xff] %vm3780_vm8, %v3741_v23  ;;  %v2724_v6 = vsel %vm2532_vm1, %v2596_v38, %v2660_v1  ;;  %v2661_v57 = vsel %vm2213_vm15, %v2469_v51, %v7415_v40  ;;  %v3357_v14 = vmul.f32 0.25, %v4793_v20  ;;  %v3230_v61 = vsel %vm3166_vm12, %v7553_v30, 1.0 }
 0x31e   : > { %v2969_v42 = vpop.f32.mrb[31].mxu1  ;;  %3805 = vst.msk [vmem:[%s6970_s22 + $0xc0] sm:$0xff] %vm3780_vm8, %v3740_v0  ;;  %4342 = vmatprep.mubr.f32.mxu1 %v2724_v6  ;;  %v2725_v25 = vsel %vm2533_vm9, %v2597_v47, %v2661_v57  ;;  %v7582_v39 = vadd.f32 %v7542_v60, %v4299_v44  ;;  %vm3485_vm10 = vcmp.le.f32.partialorder %v7486_v5, 0.0  ;;  %4802 = vrcp.f32 %v3230_v61 }
 0x31f   : > { %4343 = vmatmul.mubr.f32.gmra.mrb[60].mxu1 %v2725_v25  ;;  %v7585_v18 = vadd.f32 %v7542_v60, %v2969_v42  ;;  %v4795_v40 = vpop.eup %4794  ;;  %v3421_v28 = vsub.f32 1.0, %v3357_v14  ;;  %v3549_v54 = vmul.f32 0.01, %v7486_v5  ;;  %vm3484_vm4 = vcmp.le.f32.partialorder %v7491_v52, 0.0 }
 0x320   : > { %v4797_v62 = vpop.eup %4796  ;;  %v3356_v37 = vmul.f32 0.25, %v4795_v40  ;;  %vm3169_vm14 = vcmp.gt.f32.partialorder %v7582_v39, 0.5  ;;  %v3548_v43 = vmul.f32 0.01, %v7491_v52  ;;  %v2598_v29 = vmul.f32 0.01, %v7481_v49 }
 0x321   : > { %v4799_v59 = vpop.eup %4798  ;;  %v3613_v19 = vsel %vm3165_vm11, %v3421_v28, %v7486_v5  ;;  %v2406_v7 = vmul.f32 0.25, %v4797_v62  ;;  %v3233_v53 = vsel %vm3169_vm14, %v7582_v39, 1.0  ;;  %vm3168_vm15 = vcmp.gt.f32.partialorder %v7585_v18, 0.5 }
 0x322   : > { %v3677_v32 = vsel %vm3485_vm10, %v3549_v54, %v3613_v19  ;;  %v3420_v17 = vsub.f32 1.0, %v3356_v37  ;;  %v2407_v36 = vmul.f32 0.25, %v4799_v59  ;;  %4804 = vrcp.f32 %v3233_v53 }
 0x323   : > { %v3743_v15 = vmul.f32 %v6946_v16, %v3677_v32  ;;  %v2470_v10 = vsub.f32 1.0, %v2406_v7  ;;  %v3232_v5 = vsel %vm3168_vm15, %v7585_v18, 1.0  ;;  %vm2534_vm13 = vcmp.le.f32.partialorder %v7481_v49, 0.0 }
 0x324   : > { %v3612_v45 = vsel %vm3164_vm2, %v3420_v17, %v7491_v52  ;;  %v2471_v33 = vsub.f32 1.0, %v2407_v36  ;;  %4806 = vrcp.f32 %v3232_v5  ;;  %v2599_v3 = vmul.f32 0.01, %v7471_v4 }
 0x325   : > { %3808 = vst.msk [vmem:[%s6970_s22 + $0xd8] sm:$0xff] %vm3780_vm8, %v3743_v15  ;;  %v3676_v9 = vsel %vm3484_vm4, %v3548_v43, %v3612_v45  ;;  %v2662_v21 = vsel %vm2214_vm6, %v2470_v10, %v7481_v49  ;;  %vm2535_vm11 = vcmp.le.f32.partialorder %v7471_v4, 0.0  ;;  %v3551_v8 = vmul.f32 0.01, %v7545_v31 }
 0x326   : > { %v4801_v58 = vpop.eup %4800  ;;  %v3742_v46 = vmul.f32 %v6946_v16, %v3676_v9  ;;  %v2726_v50 = vsel %vm2534_vm13, %v2598_v29, %v2662_v21  ;;  %v2663_v27 = vsel %vm2215_vm3, %v2471_v33, %v7471_v4  ;;  %vm3487_vm6 = vcmp.le.f32.partialorder %v7545_v31, 0.0 }
 0x327   : > { %4345 = vmatprep.mubr.f32.mxu1 %v2726_v50  ;;  %v2727_v52 = vsel %vm2535_vm11, %v2599_v3, %v2663_v27  ;;  %v3359_v34 = vmul.f32 0.25, %v4801_v58  ;;  %v3550_v63 = vmul.f32 0.01, %v7553_v30  ;;  %vm3486_vm5 = vcmp.le.f32.partialorder %v7553_v30, 0.0 }
 0x328   : > { %3807 = vst.msk [vmem:[%s6970_s22 + $0xd0] sm:$0xff] %vm3780_vm8, %v3742_v46  ;;  %4346 = vmatmul.mubr.f32.gmra.mrb[62].mxu1 %v2727_v52  ;;  %v4803_v49 = vpop.eup %4802  ;;  %v3553_v22 = vmul.f32 0.01, %v7582_v39  ;;  %vm3489_vm3 = vcmp.le.f32.partialorder %v7582_v39, 0.0  ;;  %v3552_v6 = vmul.f32 0.01, %v7585_v18 }
 0x329   : > { %v3423_v24 = vsub.f32 1.0, %v3359_v34  ;;  %v3358_v41 = vmul.f32 0.25, %v4803_v49  ;;  %vm3488_vm7 = vcmp.le.f32.partialorder %v7585_v18, 0.0 }
 0x32b   : > { %v4302_v11 = vpop.f32.mrb[32].mxu1  ;;  %v3615_v4 = vsel %vm3167_vm0, %v3423_v24, %v7545_v31  ;;  %v3422_v56 = vsub.f32 1.0, %v3358_v41 }
 0x32c   : > { %v7624_v12 = vadd.f32 %v7542_v60, %v4302_v11  ;;  %v2979_v2 = vpop.f32.mrb[33].mxu1  ;;  %v4805_v38 = vpop.eup %4804  ;;  %v3679_v55 = vsel %vm3487_vm6, %v3551_v8, %v3615_v4 }
 0x32d   : > { %v7628_v13 = vadd.f32 %v7542_v60, %v2979_v2  ;;  %v3745_v48 = vmul.f32 %v6946_v16, %v3679_v55  ;;  %v3361_v23 = vmul.f32 0.25, %v4805_v38  ;;  %v3614_v51 = vsel %vm3166_vm12, %v3422_v56, %v7553_v30 }
 0x32e   : > { %vm3171_vm1 = vcmp.gt.f32.partialorder %v7624_v12, 0.5  ;;  %v4807_v26 = vpop.eup %4806  ;;  %v3678_v44 = vsel %vm3486_vm5, %v3550_v63, %v3614_v51  ;;  %v3555_v32 = vmul.f32 0.01, %v7624_v12  ;;  %vm3491_vm12 = vcmp.le.f32.partialorder %v7624_v12, 0.0 }
 0x32f   : > { %v3235_v35 = vsel %vm3171_vm1, %v7624_v12, 1.0  ;;  %vm3170_vm2 = vcmp.gt.f32.partialorder %v7628_v13, 0.5  ;;  %3810 = vst.msk [vmem:[%s6970_s22 + $0xe8] sm:$0xff] %vm3780_vm8, %v3745_v48  ;;  %v3425_v0 = vsub.f32 1.0, %v3361_v23  ;;  %v3360_v1 = vmul.f32 0.25, %v4807_v26 }
 0x330   : > { %4808 = vrcp.f32 %v3235_v35  ;;  %v3234_v31 = vsel %vm3170_vm2, %v7628_v13, 1.0  ;;  %v3744_v47 = vmul.f32 %v6946_v16, %v3678_v44  ;;  %v3554_v15 = vmul.f32 0.01, %v7628_v13 }
 0x331   : > { %4810 = vrcp.f32 %v3234_v31  ;;  %v3617_v42 = vsel %vm3169_vm14, %v3425_v0, %v7582_v39  ;;  %v3424_v20 = vsub.f32 1.0, %v3360_v1  ;;  %vm3490_vm10 = vcmp.le.f32.partialorder %v7628_v13, 0.0 }
 0x332   : > { %3809 = vst.msk [vmem:[%s6970_s22 + $0xe0] sm:$0xff] %vm3780_vm8, %v3744_v47  ;;  %v3681_v30 = vsel %vm3489_vm3, %v3553_v22, %v3617_v42 }
 0x333   : > { %v3747_v25 = vmul.f32 %v6946_v16, %v3681_v30  ;;  %v3616_v14 = vsel %vm3168_vm15, %v3424_v20, %v7585_v18 }
 0x334   : > { %v3680_v39 = vsel %vm3488_vm7, %v3552_v6, %v3616_v14 }
 0x335   : > { %v4305_v57 = vpop.f32.mrb[34].mxu1  ;;  %3812 = vst.msk [vmem:[%s6970_s22 + $0xf8] sm:$0xff] %vm3780_vm8, %v3747_v25  ;;  %v3746_v62 = vmul.f32 %v6946_v16, %v3680_v39 }
 0x336   : > { %v2995_v61 = vadd.f32 %v7542_v60, %v4305_v57  ;;  %v2989_v40 = vpop.f32.mrb[35].mxu1 }
 0x337   : > { %v2990_v28 = vadd.f32 %v7542_v60, %v2989_v40  ;;  %3811 = vst.msk [vmem:[%s6970_s22 + $0xf0] sm:$0xff] %vm3780_vm8, %v3746_v62 }
 0x338   : > { %vm3173_vm0 = vcmp.gt.f32.partialorder %v2995_v61, 0.5  ;;  %v3557_v11 = vmul.f32 0.01, %v2995_v61  ;;  %vm3493_vm15 = vcmp.le.f32.partialorder %v2995_v61, 0.0 }
 0x339   : > { %v3237_v54 = vsel %vm3173_vm0, %v2995_v61, 1.0  ;;  %vm3172_vm9 = vcmp.gt.f32.partialorder %v2990_v28, 0.5  ;;  %v3556_v2 = vmul.f32 0.01, %v2990_v28  ;;  %vm3492_vm13 = vcmp.le.f32.partialorder %v2990_v28, 0.0 }
 0x33a   : > { %v4809_v37 = vpop.eup %4808  ;;  %4812 = vrcp.f32 %v3237_v54  ;;  %v3236_v18 = vsel %vm3172_vm9, %v2990_v28, 1.0 }
 0x33b   : > { %v4811_v59 = vpop.eup %4810  ;;  %v3363_v19 = vmul.f32 0.25, %v4809_v37  ;;  %4814 = vrcp.f32 %v3236_v18 }
 0x33c   : > { %v3362_v7 = vmul.f32 0.25, %v4811_v59 }
 0x33d   : > { %v3427_v53 = vsub.f32 1.0, %v3363_v19 }
 0x33e   : > { %v3426_v17 = vsub.f32 1.0, %v3362_v7 }
 0x33f   : > { %v3619_v36 = vsel %vm3171_vm1, %v3427_v53, %v7624_v12 }
 0x340   : > { %v3683_v43 = vsel %vm3491_vm12, %v3555_v32, %v3619_v36  ;;  %v3618_v10 = vsel %vm3170_vm2, %v3426_v17, %v7628_v13 }
 0x341   : > { %v3749_v5 = vmul.f32 %v6946_v16, %v3683_v43  ;;  %v3682_v45 = vsel %vm3490_vm10, %v3554_v15, %v3618_v10 }
 0x342   : > { %v3748_v29 = vmul.f32 %v6946_v16, %v3682_v45 }
 0x343   : > { %3814 = vst.msk [vmem:[%s6970_s22 + $0x108] sm:$0xff] %vm3780_vm8, %v3749_v5  ;;  %v4308_v33 = vpop.f32.mrb[36].mxu1 }
 0x344   : > { %v4813_v9 = vpop.eup %4812  ;;  %3813 = vst.msk [vmem:[%s6970_s22 + $0x100] sm:$0xff] %vm3780_vm8, %v3748_v29  ;;  %v3005_v21 = vadd.f32 %v7542_v60, %v4308_v33  ;;  %v2999_v3 = vpop.f32.mrb[37].mxu1 }
 0x345   : > { %v4815_v58 = vpop.eup %4814  ;;  %v3365_v46 = vmul.f32 0.25, %v4813_v9  ;;  %v3000_v50 = vadd.f32 %v7542_v60, %v2999_v3 }
 0x346   : > { %v3364_v27 = vmul.f32 0.25, %v4815_v58  ;;  %vm3175_vm4 = vcmp.gt.f32.partialorder %v3005_v21, 0.5  ;;  %v3559_v1 = vmul.f32 0.01, %v3005_v21  ;;  %vm3495_vm1 = vcmp.le.f32.partialorder %v3005_v21, 0.0 }
 0x347   : > { %v3429_v52 = vsub.f32 1.0, %v3365_v46  ;;  %v3239_v34 = vsel %vm3175_vm4, %v3005_v21, 1.0  ;;  %vm3174_vm14 = vcmp.gt.f32.partialorder %v3000_v50, 0.5  ;;  %v3558_v42 = vmul.f32 0.01, %v3000_v50 }
 0x348   : > { %v3428_v49 = vsub.f32 1.0, %v3364_v27  ;;  %4816 = vrcp.f32 %v3239_v34  ;;  %v3238_v24 = vsel %vm3174_vm14, %v3000_v50, 1.0  ;;  %vm3494_vm2 = vcmp.le.f32.partialorder %v3000_v50, 0.0 }
 0x349   : > { %v3621_v12 = vsel %vm3173_vm0, %v3429_v52, %v2995_v61  ;;  %4818 = vrcp.f32 %v3238_v24 }
 0x34a   : > { %v3685_v8 = vsel %vm3493_vm15, %v3557_v11, %v3621_v12  ;;  %v3620_v41 = vsel %vm3172_vm9, %v3428_v49, %v2990_v28 }
 0x34b   : > { %v3751_v13 = vmul.f32 %v6946_v16, %v3685_v8  ;;  %v3684_v4 = vsel %vm3492_vm13, %v3556_v2, %v3620_v41 }
 0x34c   : > { %v3750_v63 = vmul.f32 %v6946_v16, %v3684_v4 }
 0x34d   : > { %3816 = vst.msk [vmem:[%s6970_s22 + $0x118] sm:$0xff] %vm3780_vm8, %v3751_v13  ;;  %v4311_v38 = vpop.f32.mrb[38].mxu1 }
 0x34e   : > { %3815 = vst.msk [vmem:[%s6970_s22 + $0x110] sm:$0xff] %vm3780_vm8, %v3750_v63  ;;  %v3015_v55 = vadd.f32 %v7542_v60, %v4311_v38  ;;  %v3009_v56 = vpop.f32.mrb[39].mxu1 }
 0x34f   : > { %v3010_v35 = vadd.f32 %v7542_v60, %v3009_v56 }
 0x350   : > { %vm3177_vm11 = vcmp.gt.f32.partialorder %v3015_v55, 0.5  ;;  %v3561_v19 = vmul.f32 0.01, %v3015_v55  ;;  %vm3497_vm7 = vcmp.le.f32.partialorder %v3015_v55, 0.0 }
 0x351   : > { %v3241_v48 = vsel %vm3177_vm11, %v3015_v55, 1.0  ;;  %vm3176_vm6 = vcmp.gt.f32.partialorder %v3010_v35, 0.5  ;;  %v3560_v17 = vmul.f32 0.01, %v3010_v35  ;;  %vm3496_vm0 = vcmp.le.f32.partialorder %v3010_v35, 0.0 }
 0x352   : > { %v4817_v23 = vpop.eup %4816  ;;  %4820 = vrcp.f32 %v3241_v48  ;;  %v3240_v31 = vsel %vm3176_vm6, %v3010_v35, 1.0 }
 0x353   : > { %v4819_v26 = vpop.eup %4818  ;;  %v3367_v51 = vmul.f32 0.25, %v4817_v23  ;;  %4822 = vrcp.f32 %v3240_v31 }
 0x354   : > { %v3366_v44 = vmul.f32 0.25, %v4819_v26 }
 0x355   : > { %v3431_v0 = vsub.f32 1.0, %v3367_v51 }
 0x356   : > { %v3430_v47 = vsub.f32 1.0, %v3366_v44 }
 0x357   : > { %v3623_v22 = vsel %vm3175_vm4, %v3431_v0, %v3005_v21 }
 0x358   : > { %v3687_v20 = vsel %vm3495_vm1, %v3559_v1, %v3623_v22  ;;  %v3622_v30 = vsel %vm3174_vm14, %v3430_v47, %v3000_v50 }
 0x359   : > { %v3753_v6 = vmul.f32 %v6946_v16, %v3687_v20  ;;  %v3686_v57 = vsel %vm3494_vm2, %v3558_v42, %v3622_v30 }
 0x35a   : > { %v3752_v25 = vmul.f32 %v6946_v16, %v3686_v57 }
 0x35b   : > { %3818 = vst.msk [vmem:[%s6970_s22 + $0x128] sm:$0xff] %vm3780_vm8, %v3753_v6  ;;  %v4314_v14 = vpop.f32.mrb[40].mxu1 }
 0x35c   : > { %v4821_v61 = vpop.eup %4820  ;;  %3817 = vst.msk [vmem:[%s6970_s22 + $0x120] sm:$0xff] %vm3780_vm8, %v3752_v25  ;;  %v3025_v40 = vadd.f32 %v7542_v60, %v4314_v14  ;;  %v3019_v39 = vpop.f32.mrb[41].mxu1 }
 0x35d   : > { %v4823_v28 = vpop.eup %4822  ;;  %v3369_v62 = vmul.f32 0.25, %v4821_v61  ;;  %v3020_v54 = vadd.f32 %v7542_v60, %v3019_v39 }
 0x35e   : > { %v3368_v37 = vmul.f32 0.25, %v4823_v28  ;;  %vm3179_vm5 = vcmp.gt.f32.partialorder %v3025_v40, 0.5  ;;  %v3563_v34 = vmul.f32 0.01, %v3025_v40  ;;  %vm3499_vm10 = vcmp.le.f32.partialorder %v3025_v40, 0.0 }
 0x35f   : > { %v3433_v18 = vsub.f32 1.0, %v3369_v62  ;;  %v3243_v59 = vsel %vm3179_vm5, %v3025_v40, 1.0  ;;  %vm3178_vm3 = vcmp.gt.f32.partialorder %v3020_v54, 0.5  ;;  %v3562_v24 = vmul.f32 0.01, %v3020_v54 }
 0x360   : > { %v3432_v7 = vsub.f32 1.0, %v3368_v37  ;;  %4824 = vrcp.f32 %v3243_v59  ;;  %v3242_v53 = vsel %vm3178_vm3, %v3020_v54, 1.0  ;;  %vm3498_vm4 = vcmp.le.f32.partialorder %v3020_v54, 0.0 }
 0x361   : > { %v3625_v32 = vsel %vm3177_vm11, %v3433_v18, %v3015_v55  ;;  %4826 = vrcp.f32 %v3242_v53 }
 0x362   : > { %v3689_v36 = vsel %vm3497_vm7, %v3561_v19, %v3625_v32  ;;  %v3624_v15 = vsel %vm3176_vm6, %v3432_v7, %v3010_v35 }
 0x363   : > { %v3755_v43 = vmul.f32 %v6946_v16, %v3689_v36  ;;  %v3688_v10 = vsel %vm3496_vm0, %v3560_v17, %v3624_v15 }
 0x364   : > { %v3754_v5 = vmul.f32 %v6946_v16, %v3688_v10 }
 0x365   : > { %3820 = vst.msk [vmem:[%s6970_s22 + $0x138] sm:$0xff] %vm3780_vm8, %v3755_v43  ;;  %v4317_v45 = vpop.f32.mrb[42].mxu1 }
 0x366   : > { %3819 = vst.msk [vmem:[%s6970_s22 + $0x130] sm:$0xff] %vm3780_vm8, %v3754_v5  ;;  %v3035_v29 = vadd.f32 %v7542_v60, %v4317_v45  ;;  %v3029_v33 = vpop.f32.mrb[43].mxu1 }
 0x367   : > { %v3030_v9 = vadd.f32 %v7542_v60, %v3029_v33 }
 0x368   : > { %vm3181_vm9 = vcmp.gt.f32.partialorder %v3035_v29, 0.5  ;;  %v3565_v51 = vmul.f32 0.01, %v3035_v29  ;;  %vm3501_vm13 = vcmp.le.f32.partialorder %v3035_v29, 0.0 }
 0x369   : > { %v3245_v21 = vsel %vm3181_vm9, %v3035_v29, 1.0  ;;  %vm3180_vm12 = vcmp.gt.f32.partialorder %v3030_v9, 0.5  ;;  %v3564_v47 = vmul.f32 0.01, %v3030_v9  ;;  %vm3500_vm11 = vcmp.le.f32.partialorder %v3030_v9, 0.0 }
 0x36a   : > { %v4825_v3 = vpop.eup %4824  ;;  %4828 = vrcp.f32 %v3245_v21  ;;  %v3244_v58 = vsel %vm3180_vm12, %v3030_v9, 1.0 }
 0x36b   : > { %v4827_v46 = vpop.eup %4826  ;;  %v3371_v50 = vmul.f32 0.25, %v4825_v3  ;;  %4830 = vrcp.f32 %v3244_v58 }
 0x36c   : > { %v3370_v27 = vmul.f32 0.25, %v4827_v46 }
 0x36d   : > { %v3435_v52 = vsub.f32 1.0, %v3371_v50 }
 0x36e   : > { %v3434_v11 = vsub.f32 1.0, %v3370_v27 }
 0x36f   : > { %v3627_v49 = vsel %vm3179_vm5, %v3435_v52, %v3025_v40 }
 0x370   : > { %v3691_v12 = vsel %vm3499_vm10, %v3563_v34, %v3627_v49  ;;  %v3626_v2 = vsel %vm3178_vm3, %v3434_v11, %v3020_v54 }
 0x371   : > { %v3757_v8 = vmul.f32 %v6946_v16, %v3691_v12  ;;  %v3690_v41 = vsel %vm3498_vm4, %v3562_v24, %v3626_v2 }
 0x372   : > { %v3756_v13 = vmul.f32 %v6946_v16, %v3690_v41 }
 0x373   : > { %3822 = vst.msk [vmem:[%s6970_s22 + $0x148] sm:$0xff] %vm3780_vm8, %v3757_v8  ;;  %v4320_v4 = vpop.f32.mrb[44].mxu1 }
 0x374   : > { %v4829_v63 = vpop.eup %4828  ;;  %3821 = vst.msk [vmem:[%s6970_s22 + $0x140] sm:$0xff] %vm3780_vm8, %v3756_v13  ;;  %v3045_v38 = vadd.f32 %v7542_v60, %v4320_v4  ;;  %v3039_v55 = vpop.f32.mrb[45].mxu1 }
 0x375   : > { %v4831_v56 = vpop.eup %4830  ;;  %v3373_v35 = vmul.f32 0.25, %v4829_v63  ;;  %v3040_v48 = vadd.f32 %v7542_v60, %v3039_v55 }
 0x376   : > { %v3372_v23 = vmul.f32 0.25, %v4831_v56  ;;  %vm3183_vm14 = vcmp.gt.f32.partialorder %v3045_v38, 0.5  ;;  %v3567_v59 = vmul.f32 0.01, %v3045_v38  ;;  %vm3503_vm2 = vcmp.le.f32.partialorder %v3045_v38, 0.0 }
 0x377   : > { %v3437_v31 = vsub.f32 1.0, %v3373_v35  ;;  %v3247_v26 = vsel %vm3183_vm14, %v3045_v38, 1.0  ;;  %vm3182_vm15 = vcmp.gt.f32.partialorder %v3040_v48, 0.5  ;;  %v3566_v53 = vmul.f32 0.01, %v3040_v48 }
 0x378   : > { %v3436_v44 = vsub.f32 1.0, %v3372_v23  ;;  %4832 = vrcp.f32 %v3247_v26  ;;  %v3246_v0 = vsel %vm3182_vm15, %v3040_v48, 1.0  ;;  %vm3502_vm5 = vcmp.le.f32.partialorder %v3040_v48, 0.0 }
 0x379   : > { %v3629_v1 = vsel %vm3181_vm9, %v3437_v31, %v3035_v29  ;;  %4834 = vrcp.f32 %v3246_v0 }
 0x37a   : > { %v3693_v22 = vsel %vm3501_vm13, %v3565_v51, %v3629_v1  ;;  %v3628_v42 = vsel %vm3180_vm12, %v3436_v44, %v3030_v9 }
 0x37b   : > { %v3759_v20 = vmul.f32 %v6946_v16, %v3693_v22  ;;  %v3692_v30 = vsel %vm3500_vm11, %v3564_v47, %v3628_v42 }
 0x37c   : > { %v3758_v6 = vmul.f32 %v6946_v16, %v3692_v30 }
 0x37d   : > { %3824 = vst.msk [vmem:[%s6970_s22 + $0x158] sm:$0xff] %vm3780_vm8, %v3759_v20  ;;  %v4323_v57 = vpop.f32.mrb[46].mxu1 }
 0x37e   : > { %3823 = vst.msk [vmem:[%s6970_s22 + $0x150] sm:$0xff] %vm3780_vm8, %v3758_v6  ;;  %v3055_v25 = vadd.f32 %v7542_v60, %v4323_v57  ;;  %v3049_v14 = vpop.f32.mrb[47].mxu1 }
 0x37f   : > { %v3050_v61 = vadd.f32 %v7542_v60, %v3049_v14 }
 0x380   : > { %vm3185_vm6 = vcmp.gt.f32.partialorder %v3055_v25, 0.5  ;;  %vm3505_vm3 = vcmp.le.f32.partialorder %v3055_v25, 0.0  ;;  %v3569_v46 = vmul.f32 0.01, %v3055_v25 }
 0x381   : > { %v3249_v40 = vsel %vm3185_vm6, %v3055_v25, 1.0  ;;  %vm3184_vm1 = vcmp.gt.f32.partialorder %v3050_v61, 0.5  ;;  %v3568_v34 = vmul.f32 0.01, %v3050_v61  ;;  %vm3504_vm9 = vcmp.le.f32.partialorder %v3050_v61, 0.0 }
 0x382   : > { %v4833_v39 = vpop.eup %4832  ;;  %4836 = vrcp.f32 %v3249_v40  ;;  %v3248_v28 = vsel %vm3184_vm1, %v3050_v61, 1.0 }
 0x383   : > { %v4835_v62 = vpop.eup %4834  ;;  %v3375_v54 = vmul.f32 0.25, %v4833_v39  ;;  %4838 = vrcp.f32 %v3248_v28 }
 0x384   : > { %v3374_v37 = vmul.f32 0.25, %v4835_v62 }
 0x385   : > { %v3439_v18 = vsub.f32 1.0, %v3375_v54 }
 0x386   : > { %v3438_v19 = vsub.f32 1.0, %v3374_v37 }
 0x387   : > { %v3631_v7 = vsel %vm3183_vm14, %v3439_v18, %v3045_v38 }
 0x388   : > { %v3695_v32 = vsel %vm3503_vm2, %v3567_v59, %v3631_v7  ;;  %v3630_v17 = vsel %vm3182_vm15, %v3438_v19, %v3040_v48 }
 0x389   : > { %v3761_v36 = vmul.f32 %v6946_v16, %v3695_v32  ;;  %v3694_v15 = vsel %vm3502_vm5, %v3566_v53, %v3630_v17 }
 0x38a   : > { %v3760_v43 = vmul.f32 %v6946_v16, %v3694_v15 }
 0x38b   : > { %3826 = vst.msk [vmem:[%s6970_s22 + $0x168] sm:$0xff] %vm3780_vm8, %v3761_v36  ;;  %v4326_v5 = vpop.f32.mrb[48].mxu1 }
 0x38c   : > { %v4837_v10 = vpop.eup %4836  ;;  %3825 = vst.msk [vmem:[%s6970_s22 + $0x160] sm:$0xff] %vm3780_vm8, %v3760_v43  ;;  %v3065_v33 = vadd.f32 %v7542_v60, %v4326_v5  ;;  %v3059_v9 = vpop.f32.mrb[49].mxu1 }
 0x38d   : > { %v4839_v45 = vpop.eup %4838  ;;  %v3377_v29 = vmul.f32 0.25, %v4837_v10  ;;  %v3060_v3 = vadd.f32 %v7542_v60, %v3059_v9 }
 0x38e   : > { %v3376_v21 = vmul.f32 0.25, %v4839_v45  ;;  %vm3187_vm7 = vcmp.gt.f32.partialorder %v3065_v33, 0.5  ;;  %v3571_v55 = vmul.f32 0.01, %v3065_v33  ;;  %vm3507_vm12 = vcmp.le.f32.partialorder %v3065_v33, 0.0 }
 0x38f   : > { %v3441_v58 = vsub.f32 1.0, %v3377_v29  ;;  %v3251_v27 = vsel %vm3187_vm7, %v3065_v33, 1.0  ;;  %vm3186_vm0 = vcmp.gt.f32.partialorder %v3060_v3, 0.5  ;;  %v3570_v48 = vmul.f32 0.01, %v3060_v3 }
 0x390   : > { %v3440_v50 = vsub.f32 1.0, %v3376_v21  ;;  %4840 = vrcp.f32 %v3251_v27  ;;  %v3250_v11 = vsel %vm3186_vm0, %v3060_v3, 1.0  ;;  %vm3506_vm10 = vcmp.le.f32.partialorder %v3060_v3, 0.0 }
 0x391   : > { %v3633_v52 = vsel %vm3185_vm6, %v3441_v58, %v3055_v25  ;;  %4842 = vrcp.f32 %v3250_v11 }
 0x392   : > { %v3697_v49 = vsel %vm3505_vm3, %v3569_v46, %v3633_v52  ;;  %v3632_v24 = vsel %vm3184_vm1, %v3440_v50, %v3050_v61 }
 0x393   : > { %v3763_v12 = vmul.f32 %v6946_v16, %v3697_v49  ;;  %v3696_v2 = vsel %vm3504_vm9, %v3568_v34, %v3632_v24 }
 0x394   : > { %v3762_v8 = vmul.f32 %v6946_v16, %v3696_v2 }
 0x395   : > { %3828 = vst.msk [vmem:[%s6970_s22 + $0x178] sm:$0xff] %vm3780_vm8, %v3763_v12 }
 0x396   : > { %3827 = vst.msk [vmem:[%s6970_s22 + $0x170] sm:$0xff] %vm3780_vm8, %v3762_v8 }
 0x39a   : > { %v4841_v41 = vpop.eup %4840 }
 0x39b   : > { %v4843_v13 = vpop.eup %4842  ;;  %v3379_v4 = vmul.f32 0.25, %v4841_v41 }
 0x39c   : > { %v3378_v63 = vmul.f32 0.25, %v4843_v13 }
 0x39d   : > { %v3443_v38 = vsub.f32 1.0, %v3379_v4 }
 0x39e   : > { %v3442_v56 = vsub.f32 1.0, %v3378_v63 }
 0x39f   : > { %v3635_v35 = vsel %vm3187_vm7, %v3443_v38, %v3065_v33 }
 0x3a0   : > { %v3699_v23 = vsel %vm3507_vm12, %v3571_v55, %v3635_v35  ;;  %v3634_v31 = vsel %vm3186_vm0, %v3442_v56, %v3060_v3 }
 0x3a1   : > { %v3765_v26 = vmul.f32 %v6946_v16, %v3699_v23  ;;  %v3698_v51 = vsel %vm3506_vm10, %v3570_v48, %v3634_v31 }
 0x3a2   : > { %v3764_v44 = vmul.f32 %v6946_v16, %v3698_v51 }
 0x3a3   : > { %3830 = vst.msk [vmem:[%s6970_s22 + $0x188] sm:$0xff] %vm3780_vm8, %v3765_v26 }
 0x3a4   : > { %3829 = vst.msk [vmem:[%s6970_s22 + $0x180] sm:$0xff] %vm3780_vm8, %v3764_v44 }
 0x3a5   : > { %v4329_v0 = vpop.f32.mrb[50].mxu1 }
 0x3a6   : > { %v3075_v1 = vadd.f32 %v7542_v60, %v4329_v0  ;;  %v3069_v47 = vpop.f32.mrb[51].mxu1 }
 0x3a7   : > { %v3070_v22 = vadd.f32 %v7542_v60, %v3069_v47 }
 0x3a8   : > { %vm3189_vm4 = vcmp.gt.f32.partialorder %v3075_v1, 0.5  ;;  %v3573_v61 = vmul.f32 0.01, %v3075_v1  ;;  %vm3509_vm15 = vcmp.le.f32.partialorder %v3075_v1, 0.0 }
 0x3a9   : > { %v3253_v42 = vsel %vm3189_vm4, %v3075_v1, 1.0  ;;  %vm3188_vm14 = vcmp.gt.f32.partialorder %v3070_v22, 0.5  ;;  %v3572_v28 = vmul.f32 0.01, %v3070_v22  ;;  %vm3508_vm13 = vcmp.le.f32.partialorder %v3070_v22, 0.0 }
 0x3aa   : > { %4844 = vrcp.f32 %v3253_v42  ;;  %v3252_v20 = vsel %vm3188_vm14, %v3070_v22, 1.0 }
 0x3ab   : > { %4846 = vrcp.f32 %v3252_v20 }
 0x3b4   : > { %v4845_v30 = vpop.eup %4844 }
 0x3b5   : > { %v4847_v6 = vpop.eup %4846  ;;  %v3381_v57 = vmul.f32 0.25, %v4845_v30 }
 0x3b6   : > { %v3380_v25 = vmul.f32 0.25, %v4847_v6 }
 0x3b7   : > { %v3445_v14 = vsub.f32 1.0, %v3381_v57 }
 0x3b8   : > { %v3444_v40 = vsub.f32 1.0, %v3380_v25 }
 0x3b9   : > { %v3637_v39 = vsel %vm3189_vm4, %v3445_v14, %v3075_v1 }
 0x3ba   : > { %v3701_v62 = vsel %vm3509_vm15, %v3573_v61, %v3637_v39  ;;  %v3636_v54 = vsel %vm3188_vm14, %v3444_v40, %v3070_v22 }
 0x3bb   : > { %v3767_v37 = vmul.f32 %v6946_v16, %v3701_v62  ;;  %v3700_v18 = vsel %vm3508_vm13, %v3572_v28, %v3636_v54 }
 0x3bc   : > { %v3766_v59 = vmul.f32 %v6946_v16, %v3700_v18 }
 0x3bd   : > { %3832 = vst.msk [vmem:[%s6970_s22 + $0x198] sm:$0xff] %vm3780_vm8, %v3767_v37 }
 0x3be   : > { %3831 = vst.msk [vmem:[%s6970_s22 + $0x190] sm:$0xff] %vm3780_vm8, %v3766_v59 }
 0x3ca   : > { %v4332_v19 = vpop.f32.mrb[52].mxu1 }
 0x3cb   : > { %v3085_v7 = vadd.f32 %v7542_v60, %v4332_v19  ;;  %v3079_v53 = vpop.f32.mrb[53].mxu1 }
 0x3cc   : > { %v3080_v32 = vadd.f32 %v7542_v60, %v3079_v53 }
 0x3cd   : > { %vm3191_vm11 = vcmp.gt.f32.partialorder %v3085_v7, 0.5  ;;  %v3575_v46 = vmul.f32 0.01, %v3085_v7  ;;  %vm3511_vm5 = vcmp.le.f32.partialorder %v3085_v7, 0.0 }
 0x3ce   : > { %v3255_v17 = vsel %vm3191_vm11, %v3085_v7, 1.0  ;;  %vm3190_vm6 = vcmp.gt.f32.partialorder %v3080_v32, 0.5  ;;  %v3574_v52 = vmul.f32 0.01, %v3080_v32  ;;  %vm3510_vm3 = vcmp.le.f32.partialorder %v3080_v32, 0.0 }
 0x3cf   : > { %4848 = vrcp.f32 %v3255_v17  ;;  %v3254_v36 = vsel %vm3190_vm6, %v3080_v32, 1.0 }
 0x3d0   : > { %4850 = vrcp.f32 %v3254_v36 }
 0x3d3   : > { %v4335_v15 = vpop.f32.mrb[54].mxu1 }
 0x3d4   : > { %v3095_v43 = vadd.f32 %v7542_v60, %v4335_v15  ;;  %v3089_v10 = vpop.f32.mrb[55].mxu1 }
 0x3d5   : > { %v3090_v5 = vadd.f32 %v7542_v60, %v3089_v10 }
 0x3d6   : > { %vm3193_vm1 = vcmp.gt.f32.partialorder %v3095_v43, 0.5  ;;  %v3577_v23 = vmul.f32 0.01, %v3095_v43  ;;  %vm3513_vm9 = vcmp.le.f32.partialorder %v3095_v43, 0.0 }
 0x3d7   : > { %v3257_v45 = vsel %vm3193_vm1, %v3095_v43, 1.0  ;;  %vm3192_vm2 = vcmp.gt.f32.partialorder %v3090_v5, 0.5  ;;  %v3576_v51 = vmul.f32 0.01, %v3090_v5  ;;  %vm3512_vm12 = vcmp.le.f32.partialorder %v3090_v5, 0.0 }
 0x3d8   : > { %4852 = vrcp.f32 %v3257_v45  ;;  %v3256_v29 = vsel %vm3192_vm2, %v3090_v5, 1.0 }
 0x3d9   : > { %4854 = vrcp.f32 %v3256_v29  ;;  %v4849_v33 = vpop.eup %4848 }
 0x3da   : > { %v4851_v9 = vpop.eup %4850  ;;  %v3383_v21 = vmul.f32 0.25, %v4849_v33 }
 0x3db   : > { %v3382_v3 = vmul.f32 0.25, %v4851_v9 }
 0x3dc   : > { %v3447_v58 = vsub.f32 1.0, %v3383_v21 }
 0x3dd   : > { %v3446_v50 = vsub.f32 1.0, %v3382_v3 }
 0x3de   : > { %v3639_v27 = vsel %vm3191_vm11, %v3447_v58, %v3085_v7  ;;  %v4338_v34 = vpop.f32.mrb[56].mxu1 }
 0x3df   : > { %v3703_v11 = vsel %vm3511_vm5, %v3575_v46, %v3639_v27  ;;  %v3638_v49 = vsel %vm3190_vm6, %v3446_v50, %v3080_v32  ;;  %v3105_v24 = vadd.f32 %v7542_v60, %v4338_v34  ;;  %v3099_v12 = vpop.f32.mrb[57].mxu1 }
 0x3e0   : > { %v3769_v2 = vmul.f32 %v6946_v16, %v3703_v11  ;;  %v3702_v8 = vsel %vm3510_vm3, %v3574_v52, %v3638_v49  ;;  %v3100_v41 = vadd.f32 %v7542_v60, %v3099_v12 }
 0x3e1   : > { %v3768_v4 = vmul.f32 %v6946_v16, %v3702_v8  ;;  %vm3195_vm7 = vcmp.gt.f32.partialorder %v3105_v24, 0.5  ;;  %v3579_v62 = vmul.f32 0.01, %v3105_v24  ;;  %vm3515_vm14 = vcmp.le.f32.partialorder %v3105_v24, 0.0 }
 0x3e2   : > { %v4853_v13 = vpop.eup %4852  ;;  %3834 = vst.msk [vmem:[%s6970_s22 + $0x1a8] sm:$0xff] %vm3780_vm8, %v3769_v2  ;;  %v3259_v55 = vsel %vm3195_vm7, %v3105_v24, 1.0  ;;  %vm3194_vm0 = vcmp.gt.f32.partialorder %v3100_v41, 0.5  ;;  %v3578_v59 = vmul.f32 0.01, %v3100_v41  ;;  %vm3514_vm15 = vcmp.le.f32.partialorder %v3100_v41, 0.0 }
 0x3e3   : > { %v4855_v63 = vpop.eup %4854  ;;  %v3385_v38 = vmul.f32 0.25, %v4853_v13  ;;  %3833 = vst.msk [vmem:[%s6970_s22 + $0x1a0] sm:$0xff] %vm3780_vm8, %v3768_v4  ;;  %4856 = vrcp.f32 %v3259_v55  ;;  %v3258_v35 = vsel %vm3194_vm0, %v3100_v41, 1.0 }
 0x3e4   : > { %v3384_v56 = vmul.f32 0.25, %v4855_v63  ;;  %4858 = vrcp.f32 %v3258_v35 }
 0x3e5   : > { %v3449_v48 = vsub.f32 1.0, %v3385_v38 }
 0x3e6   : > { %v3448_v31 = vsub.f32 1.0, %v3384_v56 }
 0x3e7   : > { %v3641_v26 = vsel %vm3193_vm1, %v3449_v48, %v3095_v43 }
 0x3e8   : > { %v3705_v44 = vsel %vm3513_vm9, %v3577_v23, %v3641_v26  ;;  %v3640_v0 = vsel %vm3192_vm2, %v3448_v31, %v3090_v5  ;;  %v4341_v1 = vpop.f32.mrb[58].mxu1 }
 0x3e9   : > { %v3771_v47 = vmul.f32 %v6946_v16, %v3705_v44  ;;  %v3704_v22 = vsel %vm3512_vm12, %v3576_v51, %v3640_v0  ;;  %v3115_v42 = vadd.f32 %v7542_v60, %v4341_v1  ;;  %v3109_v20 = vpop.f32.mrb[59].mxu1 }
 0x3ea   : > { %v3770_v30 = vmul.f32 %v6946_v16, %v3704_v22  ;;  %v3110_v6 = vadd.f32 %v7542_v60, %v3109_v20 }
 0x3eb   : > { %3836 = vst.msk [vmem:[%s6970_s22 + $0x1b8] sm:$0xff] %vm3780_vm8, %v3771_v47  ;;  %vm3197_vm10 = vcmp.gt.f32.partialorder %v3115_v42, 0.5  ;;  %v3581_v3 = vmul.f32 0.01, %v3115_v42  ;;  %vm3517_vm6 = vcmp.le.f32.partialorder %v3115_v42, 0.0 }
 0x3ec   : > { %3835 = vst.msk [vmem:[%s6970_s22 + $0x1b0] sm:$0xff] %vm3780_vm8, %v3770_v30  ;;  %v3261_v57 = vsel %vm3197_vm10, %v3115_v42, 1.0  ;;  %vm3196_vm4 = vcmp.gt.f32.partialorder %v3110_v6, 0.5  ;;  %v3580_v50 = vmul.f32 0.01, %v3110_v6  ;;  %vm3516_vm1 = vcmp.le.f32.partialorder %v3110_v6, 0.0 }
 0x3ed   : > { %4860 = vrcp.f32 %v3261_v57  ;;  %v3260_v25 = vsel %vm3196_vm4, %v3110_v6, 1.0  ;;  %v4857_v14 = vpop.eup %4856 }
 0x3ee   : > { %4862 = vrcp.f32 %v3260_v25  ;;  %v4859_v61 = vpop.eup %4858  ;;  %v3387_v40 = vmul.f32 0.25, %v4857_v14 }
 0x3ef   : > { %v3386_v39 = vmul.f32 0.25, %v4859_v61 }
 0x3f0   : > { %v3451_v28 = vsub.f32 1.0, %v3387_v40 }
 0x3f1   : > { %v3450_v54 = vsub.f32 1.0, %v3386_v39 }
 0x3f2   : > { %v4344_v37 = vpop.f32.mrb[60].mxu1  ;;  %v3643_v18 = vsel %vm3195_vm7, %v3451_v28, %v3105_v24 }
 0x3f3   : > { %v3125_v19 = vadd.f32 %v7542_v60, %v4344_v37  ;;  %v3119_v7 = vpop.f32.mrb[61].mxu1  ;;  %v3707_v53 = vsel %vm3515_vm14, %v3579_v62, %v3643_v18  ;;  %v3642_v32 = vsel %vm3194_vm0, %v3450_v54, %v3100_v41 }
 0x3f4   : > { %v3120_v17 = vadd.f32 %v7542_v60, %v3119_v7  ;;  %v3773_v36 = vmul.f32 %v6946_v16, %v3707_v53  ;;  %v3706_v15 = vsel %vm3514_vm15, %v3578_v59, %v3642_v32 }
 0x3f5   : > { %vm3199_vm13 = vcmp.gt.f32.partialorder %v3125_v19, 0.5  ;;  %v3772_v43 = vmul.f32 %v6946_v16, %v3706_v15  ;;  %v3583_v56 = vmul.f32 0.01, %v3125_v19  ;;  %vm3519_vm3 = vcmp.le.f32.partialorder %v3125_v19, 0.0 }
 0x3f6   : > { %v3263_v10 = vsel %vm3199_vm13, %v3125_v19, 1.0  ;;  %vm3198_vm11 = vcmp.gt.f32.partialorder %v3120_v17, 0.5  ;;  %3838 = vst.msk [vmem:[%s6970_s22 + $0x1c8] sm:$0xff] %vm3780_vm8, %v3773_v36  ;;  %v3582_v23 = vmul.f32 0.01, %v3120_v17  ;;  %vm3518_vm7 = vcmp.le.f32.partialorder %v3120_v17, 0.0 }
 0x3f7   : > { %v4861_v5 = vpop.eup %4860  ;;  %4864 = vrcp.f32 %v3263_v10  ;;  %v3262_v45 = vsel %vm3198_vm11, %v3120_v17, 1.0  ;;  %3837 = vst.msk [vmem:[%s6970_s22 + $0x1c0] sm:$0xff] %vm3780_vm8, %v3772_v43 }
 0x3f8   : > { %v4863_v29 = vpop.eup %4862  ;;  %v3389_v33 = vmul.f32 0.25, %v4861_v5  ;;  %4866 = vrcp.f32 %v3262_v45 }
 0x3f9   : > { %v3388_v9 = vmul.f32 0.25, %v4863_v29 }
 0x3fa   : > { %v3453_v21 = vsub.f32 1.0, %v3389_v33 }
 0x3fb   : > { %v3452_v58 = vsub.f32 1.0, %v3388_v9  ;;  %v4347_v27 = vpop.f32.mrb[62].mxu1 }
 0x3fc   : > { %v3645_v46 = vsel %vm3197_vm10, %v3453_v21, %v3115_v42  ;;  %v3135_v11 = vadd.f32 %v7542_v60, %v4347_v27  ;;  %v3129_v49 = vpop.f32.mrb[63].mxu1 }
 0x3fd   : > { %v3709_v52 = vsel %vm3517_vm6, %v3581_v3, %v3645_v46  ;;  %v3644_v34 = vsel %vm3196_vm4, %v3452_v58, %v3110_v6  ;;  %v3130_v2 = vadd.f32 %v7542_v60, %v3129_v49 }
 0x3fe   : > { %v3775_v24 = vmul.f32 %v6946_v16, %v3709_v52  ;;  %v3708_v12 = vsel %vm3516_vm1, %v3580_v50, %v3644_v34  ;;  %vm3201_vm2 = vcmp.gt.f32.partialorder %v3135_v11, 0.5  ;;  %v3585_v30 = vmul.f32 0.01, %v3135_v11 }
 0x3ff   : > { %v3774_v8 = vmul.f32 %v6946_v16, %v3708_v12  ;;  %v3265_v41 = vsel %vm3201_vm2, %v3135_v11, 1.0  ;;  %vm3200_vm5 = vcmp.gt.f32.partialorder %v3130_v2, 0.5  ;;  %vm3521_vm0 = vcmp.le.f32.partialorder %v3135_v11, 0.0 }
 0x400   : > { %3840 = vst.msk [vmem:[%s6970_s22 + $0x1d8] sm:$0xff] %vm3780_vm8, %v3775_v24  ;;  %4868 = vrcp.f32 %v3265_v41  ;;  %v3264_v4 = vsel %vm3200_vm5, %v3130_v2, 1.0  ;;  %v3584_v25 = vmul.f32 0.01, %v3130_v2  ;;  %vm3520_vm9 = vcmp.le.f32.partialorder %v3130_v2, 0.0 }
 0x401   : > { %v4865_v13 = vpop.eup %4864  ;;  %3839 = vst.msk [vmem:[%s6970_s22 + $0x1d0] sm:$0xff] %vm3780_vm8, %v3774_v8  ;;  %4870 = vrcp.f32 %v3264_v4 }
 0x402   : > { %v4867_v63 = vpop.eup %4866  ;;  %v3391_v38 = vmul.f32 0.25, %v4865_v13 }
 0x403   : > { %v3390_v60 = vmul.f32 0.25, %v4867_v63 }
 0x404   : > { %v3455_v55 = vsub.f32 1.0, %v3391_v38 }
 0x405   : > { %v3454_v35 = vsub.f32 1.0, %v3390_v60 }
 0x406   : > { %v3647_v48 = vsel %vm3199_vm13, %v3455_v55, %v3125_v19 }
 0x407   : > { %v3711_v31 = vsel %vm3519_vm3, %v3583_v56, %v3647_v48  ;;  %v3646_v26 = vsel %vm3198_vm11, %v3454_v35, %v3120_v17 }
 0x408   : > { %v3777_v51 = vmul.f32 %v6946_v16, %v3711_v31  ;;  %v3710_v44 = vsel %vm3518_vm7, %v3582_v23, %v3646_v26 }
 0x409   : > { %v3776_v0 = vmul.f32 %v6946_v16, %v3710_v44 }
 0x40a   : > { %3842 = vst.msk [vmem:[%s6970_s22 + $0x1e8] sm:$0xff] %vm3780_vm8, %v3777_v51  ;;  %v4869_v1 = vpop.eup %4868 }
 0x40b   : > { %3841 = vst.msk [vmem:[%s6970_s22 + $0x1e0] sm:$0xff] %vm3780_vm8, %v3776_v0  ;;  %v4871_v47 = vpop.eup %4870  ;;  %v3393_v22 = vmul.f32 0.25, %v4869_v1 }
 0x40c   : > { %v3392_v42 = vmul.f32 0.25, %v4871_v47 }
 0x40d   : > { %v3457_v20 = vsub.f32 1.0, %v3393_v22 }
 0x40e   : > { %v3456_v6 = vsub.f32 1.0, %v3392_v42 }
 0x40f   : > { %v3649_v57 = vsel %vm3201_vm2, %v3457_v20, %v3135_v11 }
 0x410   : > { %v3713_v14 = vsel %vm3521_vm0, %v3585_v30, %v3649_v57  ;;  %v3648_v61 = vsel %vm3200_vm5, %v3456_v6, %v3130_v2 }
 0x411   : > { %v3779_v40 = vmul.f32 %v6946_v16, %v3713_v14  ;;  %v3712_v39 = vsel %vm3520_vm9, %v3584_v25, %v3648_v61 }
 0x412   : > { %v3778_v28 = vmul.f32 %v6946_v16, %v3712_v39 }
 0x413   : > { %3844 = vst.msk [vmem:[%s6970_s22 + $0x1f8] sm:$0xff] %vm3780_vm8, %v3779_v40 }
 0x414   : > { %3843 = vst.msk [vmem:[%s6970_s22 + $0x1f0] sm:$0xff] %vm3780_vm8, %v3778_v28 }
 0x415 PF: > { %s17_s23 = sadd.s32 1, %s4887_s23  }
 0x416   : > { %p14_p4 = scmp.ge.s32.totalorder %s17_s23, 4  }
 0x418   :  { %16 = sbr.rel (!%p14_p4) target bundleno = 2 (0x2), region = 76 }

</bundles_post_ra>
